<compile_context>
chip_gen: v6e
topology: v6e:2x2x1
jax: 0.10.0
libtpu: 0.0.40
codegen_flags: <defaults>
</compile_context>

<pallas_src>
import jax
import jax.numpy as jnp
from jax import lax
from jax.experimental import pallas as pl
from jax.experimental.pallas import tpu as pltpu

NUM_CLASSES = 20
NUM_ANCHORS = 3
BOX_ATTRS = NUM_CLASSES + 5      # 25; 3 * 25 = 75 output channels of the 1x1 conv
IMG_DIM = 416
BN_EPS = 1e-5
LEAKY_SLOPE = 0.1


# --------------------------------------------------------------------------- #
# Kernel A: 3x3 conv (scratch-based im2col, single MXU matmul per channel tile)
#           + per-image BN partial sums
# --------------------------------------------------------------------------- #
def _conv3x3_stats_kernel(x_ref, w_ref, h_ref, stats_ref, xp_ref, p_ref):
    """x_ref:     (1, H, W, Cin)   bf16 NHWC input image
       w_ref:     (9*Cin, TILE_N)  bf16, row index = (dy*3 + dx)*Cin + cin
       h_ref:     (1, HW, TILE_N)  bf16 pre-BN conv output (row p = y*W + x)
       stats_ref: (1, 2, TILE_N)   f32 per-image [sum, sum_of_squares] over HW
       xp_ref:    (H+2, W+2, Cin)  bf16 scratch: zero-padded image
       p_ref:     (HW, 9*Cin)      bf16 scratch: im2col patch matrix
    """
    _, H, W, Cin = x_ref.shape
    j = pl.program_id(1)

    # Build the padded image + patch matrix once per image; reuse for every
    # output-channel tile j (the j grid axis is 'arbitrary', b is 'parallel',
    # so j == 0 always runs first for a given image on its core).
    @pl.when(j == 0)
    def _():
        xp_ref[...] = jnp.zeros_like(xp_ref)                   # zero halo (+ body)
        xp_ref[1:H + 1, 1:W + 1, :] = x_ref[0]                 # interior
        k = 0
        for dy in range(3):
            for dx in range(3):
                p_ref[:, k * Cin:(k + 1) * Cin] = (
                    xp_ref[dy:dy + H, dx:dx + W, :].reshape(H * W, Cin))
                k += 1

    acc = jnp.dot(p_ref[...], w_ref[...],
                  preferred_element_type=jnp.float32)          # (HW, TILE_N) f32

    s1 = jnp.sum(acc, axis=0, keepdims=True)                   # (1, TILE_N)
    s2 = jnp.sum(acc * acc, axis=0, keepdims=True)             # (1, TILE_N)
    stats_ref[0] = jnp.concatenate([s1, s2], axis=0)           # (2, TILE_N)
    h_ref[0] = acc.astype(h_ref.dtype)


# --------------------------------------------------------------------------- #
# Kernel B: BN (folded scale/shift) + LeakyReLU + merged-anchor 1x1 conv
#           + lane-parallel YOLO head transform (128-lane padded output)
# --------------------------------------------------------------------------- #
def _bn_head_kernel(h_ref, scale_ref, shift_ref, w2_ref, b2_ref, mul_ref,
                    add_ref, o_ref):
    """h_ref:               (1, TILE_HW, Cmid) bf16 pre-BN conv activations
       scale_ref/shift_ref: (1, Cmid) f32 folded BN scale / shift
       w2_ref:              (Cmid, 128) bf16 (cols >= 75 zero)
       b2_ref/mul_ref:      (1, 128) f32   (cols >= 75 zero)
       add_ref:             (TILE_HW, 128) f32 precomputed grid offsets*stride
       o_ref:               (1, TILE_HW, 128) f32, column c = anchor*25 + attr
    """
    n_pad = o_ref.shape[2]

    h = h_ref[0].astype(jnp.float32) * scale_ref[...] + shift_ref[...]
    h = jnp.where(h > 0, h, LEAKY_SLOPE * h)                   # LeakyReLU(0.1)

    logits = jnp.dot(h.astype(jnp.bfloat16), w2_ref[...],
                     preferred_element_type=jnp.float32) + b2_ref[...]

    # Lane-parallel transform. attr = c % 25; box w/h lanes use exp, all others
    # sigmoid, computed from ONE exp + an approx reciprocal:
    #   sigmoid(z) = 1 / (1 + exp(-z))
    attr = lax.broadcasted_iota(jnp.int32, (1, n_pad), 1) % BOX_ATTRS
    is_exp = jnp.logical_and(attr >= 2, attr <= 3)
    t = jnp.exp(jnp.where(is_exp, logits, -logits))
    val = jnp.where(is_exp, t, pl.reciprocal(1.0 + t, approx=True))

    # Pad lanes have mul == 0 and add == 0 (and finite logits, since their w2
    # / b2 columns are zero), so they stay benign and are sliced off outside.
    o_ref[0] = val * mul_ref[...] + add_ref[...]


def _vmem_limit(block_bytes, scratch_bytes=0):
    """Explicit scoped-VMEM budget: double-buffered blocks + scratch, a 2x
    factor for in-kernel temporaries, clamped to [32 MiB, 64 MiB] (v7x phys)."""
    est = 2 * (2 * block_bytes + scratch_bytes) + (2 << 20)
    return int(min(64 << 20, max(est, 32 << 20)))


# --------------------------------------------------------------------------- #
# Wrapper
# --------------------------------------------------------------------------- #
def yolo_layer_forward(x_nchw, params, anchors, img_dim=IMG_DIM):
    w1, gamma, beta, w2, b2 = params
    B, C, H, W = x_nchw.shape
    assert H == W, "YOLO layer expects a square feature map"
    Cmid = 2 * C
    A = NUM_ANCHORS
    G = H
    HW = H * W
    n_out = A * BOX_ATTRS                      # 75
    n_pad = ((n_out + 127) // 128) * 128       # 128: lane-dense output width
    stride = float(img_dim) / float(G)

    # bf16 NHWC input (matmul operands are bf16 anyway) -> half the input DMA.
    x = jnp.transpose(x_nchw, (0, 2, 3, 1)).astype(jnp.bfloat16)
    w1_mat = w1.reshape(9 * C, Cmid).astype(jnp.bfloat16)

    # Output-channel tiling of Kernel A (only kicks in for wide real layers).
    if Cmid > 256 and Cmid % 256 == 0:
        tile_n = 256
    else:
        tile_n = Cmid
    n_ct = Cmid // tile_n

    blk_a = (H * W * C * 2 + 9 * C * tile_n * 2 + HW * tile_n * 2
             + 2 * tile_n * 4)
    scr_a = (H + 2) * (W + 2) * C * 2 + HW * 9 * C * 2 + HW * tile_n * 4

    h_pre, stats = pl.pallas_call(
        _conv3x3_stats_kernel,
        out_shape=(jax.ShapeDtypeStruct((B, HW, Cmid), jnp.bfloat16),
                   jax.ShapeDtypeStruct((B, 2, Cmid), jnp.float32)),
        grid=(B, n_ct),
        in_specs=[pl.BlockSpec((1, H, W, C), lambda b, j: (b, 0, 0, 0)),
                  pl.BlockSpec((9 * C, tile_n), lambda b, j: (0, j))],
        out_specs=(pl.BlockSpec((1, HW, tile_n), lambda b, j: (b, 0, j)),
                   pl.BlockSpec((1, 2, tile_n), lambda b, j: (b, 0, j))),
        scratch_shapes=[pltpu.VMEM((H + 2, W + 2, C), jnp.bfloat16),
                        pltpu.VMEM((HW, 9 * C), jnp.bfloat16)],
        compiler_params=pltpu.CompilerParams(
            dimension_semantics=("parallel", "arbitrary"),
            vmem_limit_bytes=_vmem_limit(blk_a, scr_a)),
    )(x, w1_mat)

    # BatchNorm2d training-mode batch statistics (biased variance), combined
    # Welford-style from the per-image [sum, sumsq] (clamped: E[x^2]-E[x]^2 on
    # a whole batch can cancel catastrophically in f32), folded to scale/shift.
    s1 = stats[:, 0, :]                                        # (B, Cmid)
    s2 = stats[:, 1, :]
    n_per = float(HW)
    mean_i = s1 / n_per
    m2_i = jnp.maximum(s2 - s1 * mean_i, 0.0)                  # per-image SSD
    mean = jnp.mean(mean_i, axis=0)                            # (Cmid,)
    m2 = jnp.sum(m2_i, axis=0) + n_per * jnp.sum((mean_i - mean) ** 2, axis=0)
    var = jnp.maximum(m2 / float(B * HW), 0.0)
    scale = (gamma.reshape(1, Cmid) * lax.rsqrt(var + BN_EPS)).astype(jnp.float32)
    shift = (beta.reshape(1, Cmid)
             - mean.reshape(1, Cmid) * scale).astype(jnp.float32)

    # Per-lane multiplier / additive grid offsets of the head transform
    # (column = anchor*25 + attr), zero-padded to 128 lanes:
    #   attr 0,1 -> *stride +grid ; attr 2/3 -> *anchor_w/h ; else *1 +0.
    attr75 = jnp.arange(n_out, dtype=jnp.int32) % BOX_ATTRS
    anc = jnp.asarray(anchors, dtype=jnp.float32)              # (A, 2)
    aw = jnp.repeat(anc[:, 0], BOX_ATTRS)
    ah = jnp.repeat(anc[:, 1], BOX_ATTRS)
    mul75 = jnp.where(attr75 < 2, jnp.float32(stride),
            jnp.where(attr75 == 2, aw,
            jnp.where(attr75 == 3, ah, jnp.float32(1.0))))
    mulp = jnp.zeros((1, n_pad), jnp.float32).at[0, :n_out].set(mul75)

    pos = jnp.arange(HW, dtype=jnp.int32)
    gx = (pos % G).astype(jnp.float32)[:, None]                # x = p % G
    gy = (pos // G).astype(jnp.float32)[:, None]               # y = p // G
    add75 = (jnp.where(attr75 == 0, 1.0, 0.0) * gx
             + jnp.where(attr75 == 1, 1.0, 0.0) * gy) * stride # (HW, 75)
    addp = jnp.zeros((HW, n_pad), jnp.float32).at[:, :n_out].set(add75)

    w2p = (jnp.zeros((Cmid, n_pad), jnp.float32)
           .at[:, :n_out].set(w2.astype(jnp.float32)).astype(jnp.bfloat16))
    b2p = jnp.zeros((1, n_pad), jnp.float32).at[0, :n_out].set(
        b2.astype(jnp.float32))

    # HW tiling of Kernel B: more pipeline steps than B (v7x megacore / DMA
    # hiding); falls back to the full map when HW is not 128-divisible.
    tile_hw = HW
    for cand in (1024, 512, 256, 128):
        if HW % cand == 0 and HW // cand >= 2:
            tile_hw = cand
            break
    n_ht = HW // tile_hw

    blk_b = (tile_hw * Cmid * 2 + 2 * Cmid * 4 + Cmid * n_pad * 2
             + 2 * n_pad * 4 + tile_hw * n_pad * 4 + tile_hw * n_pad * 4)

    out_pad = pl.pallas_call(
        _bn_head_kernel,
        out_shape=jax.ShapeDtypeStruct((B, HW, n_pad), jnp.float32),
        grid=(B, n_ht),
        in_specs=[pl.BlockSpec((1, tile_hw, Cmid), lambda b, t: (b, t, 0)),
                  pl.BlockSpec((1, Cmid), lambda b, t: (0, 0)),
                  pl.BlockSpec((1, Cmid), lambda b, t: (0, 0)),
                  pl.BlockSpec((Cmid, n_pad), lambda b, t: (0, 0)),
                  pl.BlockSpec((1, n_pad), lambda b, t: (0, 0)),
                  pl.BlockSpec((1, n_pad), lambda b, t: (0, 0)),
                  pl.BlockSpec((tile_hw, n_pad), lambda b, t: (t, 0))],
        out_specs=pl.BlockSpec((1, tile_hw, n_pad), lambda b, t: (b, t, 0)),
        compiler_params=pltpu.CompilerParams(
            dimension_semantics=("parallel", "parallel"),
            vmem_limit_bytes=_vmem_limit(blk_b)),
    )(h_pre, scale, shift, w2p, b2p, mulp, addp)

    # Drop the pad lanes, then (B, HW, A, 25) -> (B, A, HW, 25) -> (B, A*HW, 25)
    # anchor-major rows, matching view(B, A, 25, G, G).permute(0, 1, 3, 4, 2).
    out75 = out_pad[:, :, :n_out]
    out = out75.reshape(B, HW, A, BOX_ATTRS).transpose(0, 2, 1, 3)
    return out.reshape(B, A * HW, BOX_ATTRS)


# --------------------------------------------------------------------------- #
# Pure-JAX f32 reference (mirrors the PyTorch forward, NCHW) for a self-check
# --------------------------------------------------------------------------- #
def reference_forward(x_nchw, params, anchors, img_dim=IMG_DIM):
    w1, gamma, beta, w2, b2 = params
    B, C, G, _ = x_nchw.shape
    Cmid = 2 * C
    A = NUM_ANCHORS
    w1_oihw = jnp.transpose(w1.reshape(3, 3, C, Cmid), (3, 2, 0, 1))
    y = lax.conv_general_dilated(x_nchw.astype(jnp.float32), w1_oihw, (1, 1),
                                 ((1, 1), (1, 1)),
                                 dimension_numbers=("NCHW", "OIHW", "NCHW"))
    mean = jnp.mean(y, axis=(0, 2, 3), keepdims=True)
    var = jnp.mean((y - mean) ** 2, axis=(0, 2, 3), keepdims=True)
    y = (y - mean) / jnp.sqrt(var + BN_EPS) * gamma.reshape(1, Cmid, 1, 1) \
        + beta.reshape(1, Cmid, 1, 1)
    y = jnp.where(y > 0, y, LEAKY_SLOPE * y)
    z = jnp.einsum("bchw,co->bohw", y, w2) + b2.reshape(1, -1, 1, 1)
    pred = z.reshape(B, A, BOX_ATTRS, G, G).transpose(0, 1, 3, 4, 2)
    stride = img_dim / G
    gx = jnp.arange(G, dtype=jnp.float32).reshape(1, 1, 1, G)
    gy = jnp.arange(G, dtype=jnp.float32).reshape(1, 1, G, 1)
    sa = jnp.asarray(anchors, jnp.float32) / stride
    aw = sa[:, 0].reshape(1, A, 1, 1)
    ah = sa[:, 1].reshape(1, A, 1, 1)
    bx = (jax.nn.sigmoid(pred[..., 0]) + gx) * stride
    by = (jax.nn.sigmoid(pred[..., 1]) + gy) * stride
    bw = jnp.exp(pred[..., 2]) * aw * stride
    bh = jnp.exp(pred[..., 3]) * ah * stride
    obj = jax.nn.sigmoid(pred[..., 4])
    cls = jax.nn.sigmoid(pred[..., 5:])
    boxes = jnp.stack([bx, by, bw, bh], axis=-1).reshape(B, -1, 4)
    return jnp.concatenate(
        [boxes, obj.reshape(B, -1, 1), cls.reshape(B, -1, NUM_CLASSES)], axis=-1)


if __name__ == "__main__":
    B, C, Hs, Ws = 2, 4, 16, 16
    Cmid = 2 * C
    anchors = [(10.0, 13.0), (16.0, 30.0), (33.0, 23.0)]

    key = jax.random.PRNGKey(0)
    kx, k1, k2, k3, k4, k5 = jax.random.split(key, 6)
    x = jax.random.normal(kx, (B, C, Hs, Ws), jnp.float32)

    # Synthetic, deterministic parameters:
    w1 = jax.random.normal(k1, (9, C, Cmid), jnp.float32) * 0.1      # 3x3 conv, no bias
    gamma = 1.0 + 0.1 * jax.random.normal(k2, (1, Cmid), jnp.float32)  # BN weight
    beta = 0.1 * jax.random.normal(k3, (1, Cmid), jnp.float32)         # BN bias
    w2 = jax.random.normal(k4, (Cmid, NUM_ANCHORS * BOX_ATTRS), jnp.float32) * 0.1
    b2 = jax.random.normal(k5, (NUM_ANCHORS * BOX_ATTRS,), jnp.float32) * 0.1
    params = (w1, gamma, beta, w2, b2)

    out = jax.block_until_ready(yolo_layer_forward(x, params, anchors))
    ref = jax.block_until_ready(reference_forward(x, params, anchors))

    assert out.shape == (B, NUM_ANCHORS * Hs * Ws, BOX_ATTRS), out.shape
    # Kernel matmuls use bf16 operands (f32 accumulation) and the sigmoid uses
    # the EUP approx reciprocal; compare against the f32 reference with a
    # tolerance comfortably above that rounding noise.
    max_err = float(jnp.max(jnp.abs(out - ref)))
    assert jnp.allclose(out, ref, rtol=3e-2, atol=5e-2), max_err

    print("KERNEL_OK")
</pallas_src>

<mosaic_0001>
module attributes {stable_mosaic.version = 11 : i64} {
  func.func @_conv3x3_stats_kernel(%arg0: i32, %arg1: i32, %arg2: memref<1x16x16x4xbf16, #tpu.memory_space<vmem>>, %arg3: memref<36x8xbf16, #tpu.memory_space<vmem>>, %arg4: memref<1x256x8xbf16, #tpu.memory_space<vmem>>, %arg5: memref<1x2x8xf32, #tpu.memory_space<vmem>>, %arg6: memref<18x18x4xbf16, #tpu.memory_space<vmem>>, %arg7: memref<256x36xbf16, #tpu.memory_space<vmem>>) attributes {dimension_semantics = [#tpu.dimension_semantics<parallel>, #tpu.dimension_semantics<arbitrary>], iteration_bounds = array<i64: 2, 1>, scalar_prefetch = 0 : i64, scratch_operands = 2 : i64, tpu.core_type = #tpu.core_type<tc>, window_params = [{transform_indices = @transform_0, window_bounds = array<i64: 1, 16, 16, 4>}, {transform_indices = @transform_1, window_bounds = array<i64: 36, 8>}, {transform_indices = @transform_2, window_bounds = array<i64: 1, 256, 8>}, {transform_indices = @transform_3, window_bounds = array<i64: 1, 2, 8>}]} {
    %c0_i32 = arith.constant 0 : i32
    %0 = arith.cmpi eq, %arg1, %c0_i32 : i32
    %1 = arith.extui %0 : i1 to i32
    %c0_i32_0 = arith.constant 0 : i32
    %2 = arith.cmpi ne, %1, %c0_i32_0 : i32
    scf.if %2 {
      %cst_12 = arith.constant 0.000000e+00 : bf16
      %19 = vector.broadcast %cst_12 : bf16 to vector<18x18x4xbf16>
      %c0_13 = arith.constant 0 : index
      %c0_14 = arith.constant 0 : index
      %c0_15 = arith.constant 0 : index
      %20 = vector.load %arg6[%c0_13, %c0_14, %c0_15] : memref<18x18x4xbf16, #tpu.memory_space<vmem>>, vector<18x18x4xbf16>
      tpu.vector_store %arg6[%c0_13, %c0_14, %c0_15], %19 {strides = array<i32>} : memref<18x18x4xbf16, #tpu.memory_space<vmem>>, vector<18x18x4xbf16>,
      %c0_16 = arith.constant 0 : index
      %c0_17 = arith.constant 0 : index
      %c0_18 = arith.constant 0 : index
      %c0_19 = arith.constant 0 : index
      %21 = vector.load %arg2[%c0_16, %c0_17, %c0_18, %c0_19] : memref<1x16x16x4xbf16, #tpu.memory_space<vmem>>, vector<1x16x16x4xbf16>
      %22 = vector.shape_cast %21 : vector<1x16x16x4xbf16> to vector<16x16x4xbf16>
      %c1 = arith.constant 1 : index
      %c1_20 = arith.constant 1 : index
      %c0_21 = arith.constant 0 : index
      %23 = vector.load %arg6[%c1, %c1_20, %c0_21] : memref<18x18x4xbf16, #tpu.memory_space<vmem>>, vector<16x16x4xbf16>
      tpu.vector_store %arg6[%c1, %c1_20, %c0_21], %22 {strides = array<i32>} : memref<18x18x4xbf16, #tpu.memory_space<vmem>>, vector<16x16x4xbf16>,
      %c0_22 = arith.constant 0 : index
      %c0_23 = arith.constant 0 : index
      %c0_24 = arith.constant 0 : index
      %24 = vector.load %arg6[%c0_22, %c0_23, %c0_24] : memref<18x18x4xbf16, #tpu.memory_space<vmem>>, vector<16x16x4xbf16>
      %25 = vector.shape_cast %24 : vector<16x16x4xbf16> to vector<256x4xbf16>
      %c0_25 = arith.constant 0 : index
      %c0_26 = arith.constant 0 : index
      %26 = vector.load %arg7[%c0_25, %c0_26] : memref<256x36xbf16, #tpu.memory_space<vmem>>, vector<256x4xbf16>
      tpu.vector_store %arg7[%c0_25, %c0_26], %25 {strides = array<i32>} : memref<256x36xbf16, #tpu.memory_space<vmem>>, vector<256x4xbf16>,
      %c0_27 = arith.constant 0 : index
      %c1_28 = arith.constant 1 : index
      %c0_29 = arith.constant 0 : index
      %27 = vector.load %arg6[%c0_27, %c1_28, %c0_29] : memref<18x18x4xbf16, #tpu.memory_space<vmem>>, vector<16x16x4xbf16>
      %28 = vector.shape_cast %27 : vector<16x16x4xbf16> to vector<256x4xbf16>
      %c0_30 = arith.constant 0 : index
      %c4 = arith.constant 4 : index
      %29 = vector.load %arg7[%c0_30, %c4] : memref<256x36xbf16, #tpu.memory_space<vmem>>, vector<256x4xbf16>
      tpu.vector_store %arg7[%c0_30, %c4], %28 {strides = array<i32>} : memref<256x36xbf16, #tpu.memory_space<vmem>>, vector<256x4xbf16>,
      %c0_31 = arith.constant 0 : index
      %c2 = arith.constant 2 : index
      %c0_32 = arith.constant 0 : index
      %30 = vector.load %arg6[%c0_31, %c2, %c0_32] : memref<18x18x4xbf16, #tpu.memory_space<vmem>>, vector<16x16x4xbf16>
      %31 = vector.shape_cast %30 : vector<16x16x4xbf16> to vector<256x4xbf16>
      %c0_33 = arith.constant 0 : index
      %c8 = arith.constant 8 : index
      %32 = vector.load %arg7[%c0_33, %c8] : memref<256x36xbf16, #tpu.memory_space<vmem>>, vector<256x4xbf16>
      tpu.vector_store %arg7[%c0_33, %c8], %31 {strides = array<i32>} : memref<256x36xbf16, #tpu.memory_space<vmem>>, vector<256x4xbf16>,
      %c1_34 = arith.constant 1 : index
      %c0_35 = arith.constant 0 : index
      %c0_36 = arith.constant 0 : index
      %33 = vector.load %arg6[%c1_34, %c0_35, %c0_36] : memref<18x18x4xbf16, #tpu.memory_space<vmem>>, vector<16x16x4xbf16>
      %34 = vector.shape_cast %33 : vector<16x16x4xbf16> to vector<256x4xbf16>
      %c0_37 = arith.constant 0 : index
      %c12 = arith.constant 12 : index
      %35 = vector.load %arg7[%c0_37, %c12] : memref<256x36xbf16, #tpu.memory_space<vmem>>, vector<256x4xbf16>
      tpu.vector_store %arg7[%c0_37, %c12], %34 {strides = array<i32>} : memref<256x36xbf16, #tpu.memory_space<vmem>>, vector<256x4xbf16>,
      %c1_38 = arith.constant 1 : index
      %c1_39 = arith.constant 1 : index
      %c0_40 = arith.constant 0 : index
      %36 = vector.load %arg6[%c1_38, %c1_39, %c0_40] : memref<18x18x4xbf16, #tpu.memory_space<vmem>>, vector<16x16x4xbf16>
      %37 = vector.shape_cast %36 : vector<16x16x4xbf16> to vector<256x4xbf16>
      %c0_41 = arith.constant 0 : index
      %c16 = arith.constant 16 : index
      %38 = vector.load %arg7[%c0_41, %c16] : memref<256x36xbf16, #tpu.memory_space<vmem>>, vector<256x4xbf16>
      tpu.vector_store %arg7[%c0_41, %c16], %37 {strides = array<i32>} : memref<256x36xbf16, #tpu.memory_space<vmem>>, vector<256x4xbf16>,
      %c1_42 = arith.constant 1 : index
      %c2_43 = arith.constant 2 : index
      %c0_44 = arith.constant 0 : index
      %39 = vector.load %arg6[%c1_42, %c2_43, %c0_44] : memref<18x18x4xbf16, #tpu.memory_space<vmem>>, vector<16x16x4xbf16>
      %40 = vector.shape_cast %39 : vector<16x16x4xbf16> to vector<256x4xbf16>
      %c0_45 = arith.constant 0 : index
      %c20 = arith.constant 20 : index
      %41 = vector.load %arg7[%c0_45, %c20] : memref<256x36xbf16, #tpu.memory_space<vmem>>, vector<256x4xbf16>
      tpu.vector_store %arg7[%c0_45, %c20], %40 {strides = array<i32>} : memref<256x36xbf16, #tpu.memory_space<vmem>>, vector<256x4xbf16>,
      %c2_46 = arith.constant 2 : index
      %c0_47 = arith.constant 0 : index
      %c0_48 = arith.constant 0 : index
      %42 = vector.load %arg6[%c2_46, %c0_47, %c0_48] : memref<18x18x4xbf16, #tpu.memory_space<vmem>>, vector<16x16x4xbf16>
      %43 = vector.shape_cast %42 : vector<16x16x4xbf16> to vector<256x4xbf16>
      %c0_49 = arith.constant 0 : index
      %c24 = arith.constant 24 : index
      %44 = vector.load %arg7[%c0_49, %c24] : memref<256x36xbf16, #tpu.memory_space<vmem>>, vector<256x4xbf16>
      tpu.vector_store %arg7[%c0_49, %c24], %43 {strides = array<i32>} : memref<256x36xbf16, #tpu.memory_space<vmem>>, vector<256x4xbf16>,
      %c2_50 = arith.constant 2 : index
      %c1_51 = arith.constant 1 : index
      %c0_52 = arith.constant 0 : index
      %45 = vector.load %arg6[%c2_50, %c1_51, %c0_52] : memref<18x18x4xbf16, #tpu.memory_space<vmem>>, vector<16x16x4xbf16>
      %46 = vector.shape_cast %45 : vector<16x16x4xbf16> to vector<256x4xbf16>
      %c0_53 = arith.constant 0 : index
      %c28 = arith.constant 28 : index
      %47 = vector.load %arg7[%c0_53, %c28] : memref<256x36xbf16, #tpu.memory_space<vmem>>, vector<256x4xbf16>
      tpu.vector_store %arg7[%c0_53, %c28], %46 {strides = array<i32>} : memref<256x36xbf16, #tpu.memory_space<vmem>>, vector<256x4xbf16>,
      %c2_54 = arith.constant 2 : index
      %c2_55 = arith.constant 2 : index
      %c0_56 = arith.constant 0 : index
      %48 = vector.load %arg6[%c2_54, %c2_55, %c0_56] : memref<18x18x4xbf16, #tpu.memory_space<vmem>>, vector<16x16x4xbf16>
      %49 = vector.shape_cast %48 : vector<16x16x4xbf16> to vector<256x4xbf16>
      %c0_57 = arith.constant 0 : index
      %c32 = arith.constant 32 : index
      %50 = vector.load %arg7[%c0_57, %c32] : memref<256x36xbf16, #tpu.memory_space<vmem>>, vector<256x4xbf16>
      tpu.vector_store %arg7[%c0_57, %c32], %49 {strides = array<i32>} : memref<256x36xbf16, #tpu.memory_space<vmem>>, vector<256x4xbf16>,
    } else {
    }
    %c0 = arith.constant 0 : index
    %c0_1 = arith.constant 0 : index
    %3 = vector.load %arg7[%c0, %c0_1] : memref<256x36xbf16, #tpu.memory_space<vmem>>, vector<256x36xbf16>
    %c0_2 = arith.constant 0 : index
    %c0_3 = arith.constant 0 : index
    %4 = vector.load %arg3[%c0_2, %c0_3] : memref<36x8xbf16, #tpu.memory_space<vmem>>, vector<36x8xbf16>
    %cst = arith.constant dense<0.000000e+00> : vector<256x8xf32>
    %5 = tpu.matmul %3, %4, %cst {dimension_numbers = #tpu.dot_dimension_numbers<[1], [0], [0], [1], [0, 0, 1, 1], [], []>} : vector<256x36xbf16>, vector<36x8xbf16>, vector<256x8xf32> -> vector<256x8xf32>
    %cst_4 = arith.constant dense<0.000000e+00> : vector<8xf32>
    %6 = vector.multi_reduction <add>, %5, %cst_4 [0] : vector<256x8xf32> to vector<8xf32>
    %7 = vector.shape_cast %6 : vector<8xf32> to vector<1x8xf32>
    %8 = arith.mulf %5, %5 : vector<256x8xf32>
    %cst_5 = arith.constant dense<0.000000e+00> : vector<8xf32>
    %9 = vector.multi_reduction <add>, %8, %cst_5 [0] : vector<256x8xf32> to vector<8xf32>
    %10 = vector.shape_cast %9 : vector<8xf32> to vector<1x8xf32>
    %11 = tpu.concatenate %7, %10 in 0 : vector<1x8xf32>, vector<1x8xf32> -> vector<2x8xf32>
    %c0_6 = arith.constant 0 : index
    %c0_7 = arith.constant 0 : index
    %c0_8 = arith.constant 0 : index
    %12 = vector.load %arg5[%c0_6, %c0_7, %c0_8] : memref<1x2x8xf32, #tpu.memory_space<vmem>>, vector<1x2x8xf32>
    %13 = vector.shape_cast %12 : vector<1x2x8xf32> to vector<2x8xf32>
    %14 = vector.shape_cast %11 : vector<2x8xf32> to vector<1x2x8xf32>
    tpu.vector_store %arg5[%c0_6, %c0_7, %c0_8], %14 {strides = array<i32>} : memref<1x2x8xf32, #tpu.memory_space<vmem>>, vector<1x2x8xf32>,
    %15 = arith.truncf %5 : vector<256x8xf32> to vector<256x8xbf16>
    %c0_9 = arith.constant 0 : index
    %c0_10 = arith.constant 0 : index
    %c0_11 = arith.constant 0 : index
    %16 = vector.load %arg4[%c0_9, %c0_10, %c0_11] : memref<1x256x8xbf16, #tpu.memory_space<vmem>>, vector<1x256x8xbf16>
    %17 = vector.shape_cast %16 : vector<1x256x8xbf16> to vector<256x8xbf16>
    %18 = vector.shape_cast %15 : vector<256x8xbf16> to vector<1x256x8xbf16>
    tpu.vector_store %arg4[%c0_9, %c0_10, %c0_11], %18 {strides = array<i32>} : memref<1x256x8xbf16, #tpu.memory_space<vmem>>, vector<1x256x8xbf16>,
    return
  }
  func.func @transform_0(%arg0: i32, %arg1: i32) -> (i32, i32, i32, i32) {
    %c0_i32 = arith.constant 0 : i32
    %c0_i32_0 = arith.constant 0 : i32
    %c0_i32_1 = arith.constant 0 : i32
    %c0_i32_2 = arith.constant 0 : i32
    return %arg0, %c0_i32, %c0_i32_0, %c0_i32_1 : i32, i32, i32, i32
  }
  func.func @transform_1(%arg0: i32, %arg1: i32) -> (i32, i32) {
    %c0_i32 = arith.constant 0 : i32
    %c0_i32_0 = arith.constant 0 : i32
    return %c0_i32, %arg1 : i32, i32
  }
  func.func @transform_2(%arg0: i32, %arg1: i32) -> (i32, i32, i32) {
    %c0_i32 = arith.constant 0 : i32
    %c0_i32_0 = arith.constant 0 : i32
    return %arg0, %c0_i32, %arg1 : i32, i32, i32
  }
  func.func @transform_3(%arg0: i32, %arg1: i32) -> (i32, i32, i32) {
    %c0_i32 = arith.constant 0 : i32
    %c0_i32_0 = arith.constant 0 : i32
    return %arg0, %c0_i32, %arg1 : i32, i32, i32
  }
}

</mosaic_0001>

<bundles_post_ra>
// kernel: tpu_custom_call.1
= control target key start
LH: loop header
LB: loop body
LE: loop exit
PB: predicated region body
PF: predicated region fallthrough
CT: control target
= control target key end

     0   :  { %9 = vsyncpa [#allocation5], 0  ;;  %s6641_s0 = inlined_call_operand.vmem [shape: bf16[2,16,16,4], index: 0, kind: input, shape index: {}]   ;;  %s6642_s1 = inlined_call_operand.vmem [shape: bf16[36,8], index: 1, kind: input, shape index: {}]   ;;  %s6643_s2 = inlined_call_operand.vmem [shape: bf16[2,256,8], index: 2, kind: output, shape index: {0}]   ;;  %s6644_s3 = inlined_call_operand.hbm [shape: f32[2,2,8], index: 3, kind: output, shape index: {1}]  }
   0x1   :  { %11 = vsyncpa [#allocation5 + $0x1], 0  ;;  %s5153_s12 = smov 0   ;;  %s5155_s13 = smov 0  }
   0x2   :  { %s5157_s14 = smov 0   ;;  %s5159_s15 = smov 0  }
   0x3   :  { %s5161_s16 = smov 0   ;;  %s5163_s17 = smov 0  }
   0x4 LB: > { %s4733_s18 = sadd.s32 4294967295, %s5121_s17   ;;  %s4734_s19 = sadd.s32 4294967294, %s5121_s17   ;;  %s5121_s17 = sphi %s5163_s17, %s17_s17   ;;  %s5117_s16 = sphi %s5161_s16, %s6661_s16   ;;  %s5113_s15 = sphi %s5159_s15, %s6660_s15   ;;  %s5109_s14 = sphi %s5157_s14, %s6659_s14   ;;  %s5105_s13 = sphi %s5155_s13, %s6658_s13   ;;  %s5101_s12 = sphi %s5153_s12, %s6657_s12  }
   0x5   : > { %s29_s20 = sadd.s32 1, %s5117_s16  ;;  %s118_s21 = sadd.s32 1, %s5109_s14 }
   0x6   : > { %p31_p0 = scmp.ge.s32.totalorder %s29_s20, 2  ;;  %p128_p1 = scmp.ne.s32.totalorder %s5109_s14, %s5105_s13 }
   0x7   : > { %p129_p2 = scmp.eq.s32.totalorder %s4733_s18, 1  ;;  %p134_p3 = scmp.ne.s32.totalorder %s5105_s13, %s5101_s12 }
   0x8   : > { %s6663_s20 = smov (%p31_p0, %s29_s20), 0  ;;  %p135_p5 = scmp.eq.s32.totalorder %s4734_s19, 1 }
   0x9   : > { %p5193_p4 = por %p129_p2, %p128_p1  ;;  %s113_s23 = ssub.s32 %s5117_s16, %s6663_s20 }
   0xa   : > { %p4738_p6 = scmp.ge.s32.totalorder %s5121_s17, 1  ;;  %p116_p7 = scmp.eq.s32.totalorder %s113_s23, 0 }
   0xb   : > { %p5200_p8 = por %p135_p5, %p134_p3  ;;  %p168_p9 = scmp.lt.s32.totalorder %s5121_s17, 3 }
   0xc   : > { %s5206_s25 = scalar_select %p116_p7, %s5109_s14, %s118_s21  }
   0xd   : > { %p169_p10 = pnand %p4738_p6, %p168_p9 }
   0xe   : > { %p204_p11 = scmp.lt.s32.totalorder (!%p169_p10), %s5113_s15, 1  ;;  %s5124_s4 = smov (!%p169_p10), 4  }
   0xf   : > { %172 = sbr.rel (%p169_p10) target bundleno = 971 (0x3cb), region = 28  ;;  %s5125_s5 = smov (!%p169_p10), 8  }
  0x10   : > { %s5126_s6 = smov (!%p169_p10), 12   ;;  %s5127_s7 = smov (!%p169_p10), 16  }
  0x11   : > { %s5128_s8 = smov (!%p169_p10), 20   ;;  %s5129_s9 = smov (!%p169_p10), 24  }
  0x12   : > { %s5130_s18 = smov (!%p169_p10), 28   ;;  %s5131_s29 = smov (!%p169_p10), 32  }
  0x14   : > { %vm226_vm0 = vcmask 27648   ;;  %v5123_v0 = vmov 0   ;;  %vm229_vm1 = vcmask 24576   ;;  %s5266_s26 = scalar_select %p204_p11, %s5113_s15, 1  ;;  %vm867_vm2 = vsmask.f32 3328 }
  0x15   : > { %227 = vst.msk [vmem:[#allocation2] sm:$0xf] %vm226_vm0, %v5123_v0  ;;  %228 = vst.msk [vmem:[#allocation2 + $0x4] sm:$0xf] %vm226_vm0, %v5123_v0  ;;  %vm868_vm3 = vsmask.f32 7440 }
  0x16   : > { %231 = vst.msk [vmem:[#allocation2 + $0xc] sm:$0xf] %vm226_vm0, %v5123_v0  ;;  %232 = vst.msk [vmem:[#allocation2 + $0x10] sm:$0xf] %vm226_vm0, %v5123_v0  ;;  %s4863_s27 = sshll.u32 %s5266_s26, 7  ;;  %vm1479_vm11 = vcmask 1042432  }
  0x17   : > { %234 = vst.msk [vmem:[#allocation2 + $0x18] sm:$0xf] %vm226_vm0, %v5123_v0  ;;  %235 = vst.msk [vmem:[#allocation2 + $0x1c] sm:$0xf] %vm226_vm0, %v5123_v0  ;;  %s5274_s30 = scalar_lea.vmem %s6641_s0, %s4863_s27  ;;  %vm314_vm4 = vsmask.f32 256 }
  0x18   : > { %237 = vst.msk [vmem:[#allocation2 + $0x24] sm:$0xf] %vm226_vm0, %v5123_v0  ;;  %238 = vst.msk [vmem:[#allocation2 + $0x28] sm:$0xf] %vm226_vm0, %v5123_v0  ;;  %vm315_vm5 = vsmask.f32 4368 }
  0x19   : > { %240 = vst.msk [vmem:[#allocation2 + $0x30] sm:$0xf] %vm226_vm0, %v5123_v0  ;;  %241 = vst.msk [vmem:[#allocation2 + $0x34] sm:$0xf] %vm226_vm0, %v5123_v0  ;;  %v282_v1 = vld [vmem:[%s5274_s30] sm:$0xf] }
  0x1a   : > { %243 = vst.msk [vmem:[#allocation2 + $0x3c] sm:$0xf] %vm226_vm0, %v5123_v0  ;;  %244 = vst.msk [vmem:[#allocation2 + $0x40] sm:$0xf] %vm226_vm0, %v5123_v0  ;;  %v283_v2 = vld [vmem:[%s5274_s30 + $0x4] sm:$0xf] }
  0x1b   : > { %246 = vst.msk [vmem:[#allocation2 + $0x48] sm:$0xf] %vm226_vm0, %v5123_v0  ;;  %247 = vst.msk [vmem:[#allocation2 + $0x4c] sm:$0xf] %vm226_vm0, %v5123_v0  ;;  %vm639_vm6 = vsmask.f32 7938 }
  0x1c   : > { %249 = vst.msk [vmem:[#allocation2 + $0x54] sm:$0xf] %vm226_vm0, %v5123_v0  ;;  %250 = vst.msk [vmem:[#allocation2 + $0x58] sm:$0xf] %vm226_vm0, %v5123_v0  ;;  %v819_v3 = vld [vmem:[#allocation2] sm:$0xf] }
  0x1d   : > { %252 = vst.msk [vmem:[#allocation2 + $0x60] sm:$0xf] %vm226_vm0, %v5123_v0  ;;  %253 = vst.msk [vmem:[#allocation2 + $0x64] sm:$0xf] %vm226_vm0, %v5123_v0  ;;  %v820_v4 = vld [vmem:[#allocation2 + $0x4] sm:$0xf] }
  0x1e   : > { %255 = vst.msk [vmem:[#allocation2 + $0x6c] sm:$0xf] %vm226_vm0, %v5123_v0  ;;  %256 = vst.msk [vmem:[#allocation2 + $0x70] sm:$0xf] %vm226_vm0, %v5123_v0  ;;  %v318_v5 = vshrl.u32 %v282_v1, 16  ;;  %v321_v6 = vshll.u32 %v282_v1, 16 }
  0x1f   : > { %258 = vst.msk [vmem:[#allocation2 + $0x78] sm:$0xf] %vm226_vm0, %v5123_v0  ;;  %259 = vst.msk [vmem:[#allocation2 + $0x7c] sm:$0xf] %vm226_vm0, %v5123_v0  ;;  %v284_v7 = vld [vmem:[%s5274_s30 + $0x8] sm:$0xf] }
  0x20   : > { %261 = vst.msk [vmem:[#allocation2 + $0x84] sm:$0xf] %vm226_vm0, %v5123_v0  ;;  %262 = vst.msk [vmem:[#allocation2 + $0x88] sm:$0xf] %vm226_vm0, %v5123_v0  ;;  %v871_v8 = vshrl.u32 %v819_v3, 16  ;;  %v874_v9 = vshll.u32 %v819_v3, 16 }
  0x21   : > { %264 = vst.msk [vmem:[#allocation2 + $0x90] sm:$0xf] %vm226_vm0, %v5123_v0  ;;  %265 = vst.msk [vmem:[#allocation2 + $0x94] sm:$0xf] %vm226_vm0, %v5123_v0  ;;  %v880_v10 = vshll.u32 %v820_v4, 16  ;;  %v884_v11 = vshrl.u32 %v820_v4, 16 }
  0x22   : > { %267 = vst.msk [vmem:[#allocation2 + $0x9c] sm:$0xf] %vm226_vm0, %v5123_v0  ;;  %268 = vst.msk [vmem:[#allocation2 + $0xa0] sm:$0xf] %vm226_vm0, %v5123_v0  ;;  %v320_v14 = vrot.slane %v318_v5, 7  ;;  %v326_v15 = vshrl.u32 %v283_v2, 16 }
  0x23   : > { %270 = vst.msk [vmem:[#allocation2 + $0xa8] sm:$0xf] %vm226_vm0, %v5123_v0  ;;  %271 = vst.msk [vmem:[#allocation2 + $0xac] sm:$0xf] %vm226_vm0, %v5123_v0  ;;  %v329_v16 = vshll.u32 %v283_v2, 16  ;;  %v873_v18 = vrot.slane %v871_v8, 4 }
  0x24   : > { %273 = vst.msk [vmem:[#allocation2 + $0xb4] sm:$0xf] %vm226_vm0, %v5123_v0  ;;  %274 = vst.msk [vmem:[#allocation2 + $0xb8] sm:$0xf] %vm226_vm0, %v5123_v0  ;;  %v641_v17 = vld [vmem:[#allocation2 + $0xc] sm:$0xf]  ;;  %v323_v25 = vor.u32 %v321_v6, %v320_v14 }
  0x25   : > { %276 = vst.msk [vmem:[#allocation2 + $0xc0] sm:$0xf] %vm226_vm0, %v5123_v0  ;;  %277 = vst.msk [vmem:[#allocation2 + $0xc4] sm:$0xf] %vm226_vm0, %v5123_v0  ;;  %v876_v19 = vrot.slane %v874_v9, 5  ;;  %v882_v20 = vrot.slane %v880_v10, 5 }
  0x26   : > { %279 = vst.msk [vmem:[#allocation2 + $0xcc] sm:$0xf] %vm226_vm0, %v5123_v0  ;;  %280 = vst.msk [vmem:[#allocation2 + $0xd0] sm:$0xf] %vm226_vm0, %v5123_v0  ;;  %v886_v21 = vrot.slane %v884_v11, 4  ;;  %v324_v26 = vrot.slane %v320_v14, 4 }
  0x27   : > { %230 = vst.msk [vmem:[#allocation2 + $0x8] sm:$0x1] %vm229_vm1, %v5123_v0  ;;  %233 = vst.msk [vmem:[#allocation2 + $0x14] sm:$0x1] %vm229_vm1, %v5123_v0  ;;  %v285_v23 = vld [vmem:[%s5274_s30 + $0xc] sm:$0xf]  ;;  %v877_v28 = vor.u32 %v876_v19, %v873_v18 }
  0x28   : > { %236 = vst.msk [vmem:[#allocation2 + $0x20] sm:$0x1] %vm229_vm1, %v5123_v0  ;;  %239 = vst.msk [vmem:[#allocation2 + $0x2c] sm:$0x1] %vm229_vm1, %v5123_v0  ;;  %v328_v27 = vrot.slane %v326_v15, 7  ;;  %v887_v29 = vor.u32 %v886_v21, %v882_v20  ;;  %v335_v31 = vshrl.u32 %v284_v7, 16 }
  0x29   : > { %242 = vst.msk [vmem:[#allocation2 + $0x38] sm:$0x1] %vm229_vm1, %v5123_v0  ;;  %245 = vst.msk [vmem:[#allocation2 + $0x44] sm:$0x1] %vm229_vm1, %v5123_v0  ;;  %v338_v32 = vshll.u32 %v284_v7, 16  ;;  %v343_v37 = vshrl.u32 %v285_v23, 16 }
  0x2a   : > { %248 = vst.msk [vmem:[#allocation2 + $0x50] sm:$0x1] %vm229_vm1, %v5123_v0  ;;  %251 = vst.msk [vmem:[#allocation2 + $0x5c] sm:$0x1] %vm229_vm1, %v5123_v0  ;;  %v286_v33 = vld [vmem:[%s5274_s30 + $0x10] sm:$0xf]  ;;  %v331_v35 = vor.u32 %v329_v16, %v328_v27 }
  0x2b   : > { %254 = vst.msk [vmem:[#allocation2 + $0x68] sm:$0x1] %vm229_vm1, %v5123_v0  ;;  %257 = vst.msk [vmem:[#allocation2 + $0x74] sm:$0x1] %vm229_vm1, %v5123_v0  ;;  %v346_v38 = vshll.u32 %v285_v23, 16  ;;  %v878_v41 = vrot.slane %v877_v28, 4 }
  0x2c   : > { %260 = vst.msk [vmem:[#allocation2 + $0x80] sm:$0x1] %vm229_vm1, %v5123_v0  ;;  %263 = vst.msk [vmem:[#allocation2 + $0x8c] sm:$0x1] %vm229_vm1, %v5123_v0  ;;  %v650_v39 = vld [vmem:[#allocation2 + $0x18] sm:$0xf] }
  0x2d   : > { %266 = vst.msk [vmem:[#allocation2 + $0x98] sm:$0x1] %vm229_vm1, %v5123_v0  ;;  %269 = vst.msk [vmem:[#allocation2 + $0xa4] sm:$0x1] %vm229_vm1, %v5123_v0  ;;  %v888_v42 = vrot.slane %v887_v29, 4  ;;  %v337_v43 = vrot.slane %v335_v31, 7 }
  0x2e   : > { %272 = vst.msk [vmem:[#allocation2 + $0xb0] sm:$0x1] %vm229_vm1, %v5123_v0  ;;  %275 = vst.msk [vmem:[#allocation2 + $0xbc] sm:$0x1] %vm229_vm1, %v5123_v0  ;;  %v821_v12 = vld [vmem:[#allocation2 + $0x8] sm:$0x1] }
  0x2f   : > { %278 = vst.msk [vmem:[#allocation2 + $0xc8] sm:$0x1] %vm229_vm1, %v5123_v0  ;;  %281 = vst.msk [vmem:[#allocation2 + $0xd4] sm:$0x1] %vm229_vm1, %v5123_v0  ;;  %v890_v13 = vshll.u32 %v821_v12, 16  ;;  %v333_v44 = vrot.slane %v328_v27, 4  ;;  %v340_v54 = vor.u32 %v338_v32, %v337_v43 }
  0x30   : > { %vm5281_vm7 = vmand %vm226_vm0, %vm639_vm6  ;;  %v647_v40 = vld [vmem:[#allocation2 + $0x14] sm:$0x1]  ;;  %v345_v48 = vrot.slane %v343_v37, 7  ;;  %v352_v49 = vshrl.u32 %v286_v33, 16  ;;  %v355_v50 = vshll.u32 %v286_v33, 16  ;;  %v341_v55 = vrot.slane %v337_v43, 4 }
  0x31   : > { %v892_v24 = vrot.slane %v890_v13, 5  ;;  %vm5288_vm8 = vmor %vm314_vm4, %vm315_vm5  ;;  %v642_v36 = vsel %vm5281_vm7, %v323_v25, %v641_v17  ;;  %v287_v46 = vld [vmem:[%s5274_s30 + $0x14] sm:$0xf]  ;;  %v288_v51 = vld [vmem:[%s5274_s30 + $0x18] sm:$0xf]  ;;  %v651_v62 = vsel %vm5281_vm7, %v340_v54, %v650_v39  ;;  %vm1480_vm12 = vcmask 1046532  }
  0x32   : > { %vm5295_vm9 = vmor %vm867_vm2, %vm868_vm3  ;;  %643 = vst [vmem:[#allocation2 + $0xc] sm:$0xf] %v642_v36  ;;  %v332_v47 = vsel %vm5288_vm8, %v324_v26, %v331_v35  ;;  %v348_v56 = vor.u32 %v346_v38, %v345_v48  ;;  %v354_v58 = vrot.slane %v352_v49, 7  ;;  %v360_v59 = vshrl.u32 %v287_v46, 16  ;;  %v654_v60 = vld [vmem:[#allocation2 + $0x20] sm:$0x1] }
  0x33   : > { %vm5303_vm10 = vmand %vm229_vm1, %vm314_vm4  ;;  %v883_v52 = vsel %vm5295_vm9, %v878_v41, %v882_v20  ;;  %v893_v53 = vsel %vm5295_vm9, %v888_v42, %v892_v24  ;;  %644 = vst.msk [vmem:[#allocation2 + $0x10] sm:$0xf] %vm226_vm0, %v332_v47  ;;  %v289_v61 = vld [vmem:[%s5274_s30 + $0x1c] sm:$0xf]  ;;  %v363_v63 = vshll.u32 %v287_v46, 16  ;;  %v350_v1 = vrot.slane %v345_v48, 4 }
  0x34   : > { %1254 = vrot.lane.b32.xlu0 %v883_v52, %s5124_s4  ;;  %v648_v57 = vsel %vm5303_vm10, %v333_v44, %v647_v40  ;;  %v657_v0 = vld [vmem:[#allocation2 + $0x24] sm:$0xf]  ;;  %v369_v2 = vshrl.u32 %v288_v51, 16  ;;  %v349_v3 = vsel %vm5288_vm8, %v341_v55, %v348_v56  ;;  %652 = vst [vmem:[#allocation2 + $0x18] sm:$0xf] %v651_v62  ;;  %v357_v4 = vor.u32 %v355_v50, %v354_v58  ;;  %vm5565_vm13 = vmor %vm1479_vm11, %vm1480_vm12  ;;  %s201_s26 = sand.u32 1, %s5105_s13  }
  0x35   : > { %649 = vst [vmem:[#allocation2 + $0x14] sm:$0x1] %v648_v57  ;;  %v358_v5 = vrot.slane %v354_v58, 4  ;;  %v362_v6 = vrot.slane %v360_v59, 7  ;;  %v661_v7 = vld [vmem:[#allocation2 + $0x2c] sm:$0x1]  ;;  %v655_v8 = vsel %vm5303_vm10, %v350_v1, %v654_v60 }
  0x36   : > { %653 = vst.msk [vmem:[#allocation2 + $0x1c] sm:$0xf] %vm226_vm0, %v349_v3  ;;  %v371_v9 = vrot.slane %v369_v2, 7  ;;  %v372_v10 = vshll.u32 %v288_v51, 16  ;;  %v377_v11 = vshrl.u32 %v289_v61, 16  ;;  %v658_v15 = vsel %vm5281_vm7, %v357_v4, %v657_v0 }
  0x37   : > { %v290_v12 = vld [vmem:[%s5274_s30 + $0x20] sm:$0xf]  ;;  %v365_v14 = vor.u32 %v363_v63, %v362_v6  ;;  %656 = vst [vmem:[#allocation2 + $0x20] sm:$0x1] %v655_v8  ;;  %v380_v16 = vshll.u32 %v289_v61, 16  ;;  %v367_v17 = vrot.slane %v362_v6, 4 }
  0x38   : > { %1256 = vrot.lane.b32.xlu0 %v893_v53, %s5124_s4  ;;  %659 = vst [vmem:[#allocation2 + $0x24] sm:$0xf] %v658_v15  ;;  %v374_v20 = vor.u32 %v372_v10, %v371_v9  ;;  %v375_v21 = vrot.slane %v371_v9, 4  ;;  %v664_v23 = vld [vmem:[#allocation2 + $0x30] sm:$0xf]  ;;  %v5333_v26 = vrot.slane %v377_v11, 7 }
  0x39   : > { %v822_v13 = vld [vmem:[#allocation2 + $0xc] sm:$0xf]  ;;  %v366_v25 = vsel %vm5288_vm8, %v358_v5, %v365_v14  ;;  %v662_v27 = vsel %vm5303_vm10, %v367_v17, %v661_v7  ;;  %v386_v28 = vshrl.u32 %v290_v12, 16  ;;  %v389_v39 = vshll.u32 %v290_v12, 16 }
  0x3a   : > { %v895_v18 = vshrl.u32 %v822_v13, 16  ;;  %v898_v19 = vshll.u32 %v822_v13, 16  ;;  %v823_v24 = vld [vmem:[#allocation2 + $0x10] sm:$0xf]  ;;  %660 = vst.msk [vmem:[#allocation2 + $0x28] sm:$0xf] %vm226_vm0, %v366_v25  ;;  %v382_v36 = vor.u32 %v380_v16, %v5333_v26  ;;  %v665_v37 = vsel %vm5281_vm7, %v374_v20, %v664_v23 }
  0x3b   : > { %v904_v32 = vshll.u32 %v823_v24, 16  ;;  %v908_v33 = vshrl.u32 %v823_v24, 16  ;;  %663 = vst [vmem:[#allocation2 + $0x2c] sm:$0x1] %v662_v27  ;;  %v5341_v38 = vrot.slane %v386_v28, 7  ;;  %vm1350_vm14 = vcmask 60448  }
  0x3c   : > { %v897_v29 = vrot.slane %v895_v18, 4  ;;  %v900_v31 = vrot.slane %v898_v19, 5  ;;  %v824_v35 = vld [vmem:[#allocation2 + $0x14] sm:$0x1]  ;;  %v825_v43 = vld [vmem:[#allocation2 + $0x18] sm:$0xf]  ;;  %v383_v49 = vsel %vm5288_vm8, %v375_v21, %v382_v36 }
  0x3d   : > { %v906_v41 = vrot.slane %v904_v32, 5  ;;  %v910_v42 = vrot.slane %v908_v33, 4  ;;  %v914_v44 = vshll.u32 %v824_v35, 16  ;;  %666 = vst [vmem:[#allocation2 + $0x30] sm:$0xf] %v665_v37  ;;  %v919_v47 = vshrl.u32 %v825_v43, 16 }
  0x3e   : > { %v901_v40 = vor.u32 %v900_v31, %v897_v29  ;;  %v826_v46 = vld [vmem:[#allocation2 + $0x1c] sm:$0xf]  ;;  %v922_v48 = vshll.u32 %v825_v43, 16  ;;  %v5346_v50 = vor.u32 %v389_v39, %v5341_v38  ;;  %v827_v55 = vld [vmem:[#allocation2 + $0x20] sm:$0x1]  ;;  %v392_v39 = vrot.slane %v5341_v38, 4 }
  0x3f   : > { %v928_v52 = vshll.u32 %v826_v46, 16  ;;  %v932_v53 = vshrl.u32 %v826_v46, 16  ;;  %v911_v54 = vor.u32 %v910_v42, %v906_v41  ;;  %667 = vst.msk [vmem:[#allocation2 + $0x34] sm:$0xf] %vm226_vm0, %v383_v49  ;;  %v921_v56 = vrot.slane %v919_v47, 4 }
  0x40   : > { %v902_v51 = vrot.slane %v901_v40, 4  ;;  %v924_v57 = vrot.slane %v922_v48, 5  ;;  %v916_v58 = vrot.slane %v914_v44, 5  ;;  %v828_v59 = vld [vmem:[#allocation2 + $0x24] sm:$0xf]  ;;  %v938_v60 = vshll.u32 %v827_v55, 16 }
  0x41   : > { %v930_v62 = vrot.slane %v928_v52, 5  ;;  %v912_v63 = vrot.slane %v911_v54, 4  ;;  %v943_v0 = vshrl.u32 %v828_v59, 16  ;;  %v829_v2 = vld [vmem:[#allocation2 + $0x28] sm:$0xf]  ;;  %v946_v3 = vshll.u32 %v828_v59, 16 }
  0x42   : > { %v907_v61 = vsel %vm5295_vm9, %v902_v51, %v906_v41  ;;  %v925_v1 = vor.u32 %v924_v57, %v921_v56  ;;  %v934_v4 = vrot.slane %v932_v53, 4  ;;  %v940_v5 = vrot.slane %v938_v60, 5  ;;  %v830_v10 = vld [vmem:[#allocation2 + $0x2c] sm:$0x1]  ;;  %v291_v27 = vld [vmem:[%s5274_s30 + $0x24] sm:$0xf] }
  0x43   : > { %1258 = vrot.lane.b32.xlu1 %v907_v61, %s5124_s4  ;;  %v917_v6 = vsel %vm5295_vm9, %v912_v63, %v916_v58  ;;  %v945_v7 = vrot.slane %v943_v0, 4  ;;  %v952_v8 = vshll.u32 %v829_v2, 16  ;;  %v956_v9 = vshrl.u32 %v829_v2, 16  ;;  %v671_v33 = vld [vmem:[#allocation2 + $0x3c] sm:$0xf] }
  0x44   : > { %v926_v11 = vrot.slane %v925_v1, 4  ;;  %v948_v12 = vrot.slane %v946_v3, 5  ;;  %v935_v13 = vor.u32 %v934_v4, %v930_v62  ;;  %v831_v14 = vld [vmem:[#allocation2 + $0x30] sm:$0xf]  ;;  %v962_v15 = vshll.u32 %v830_v10, 16 }
  0x45   : > { %v954_v16 = vrot.slane %v952_v8, 5  ;;  %v967_v17 = vshrl.u32 %v831_v14, 16  ;;  %v970_v18 = vshll.u32 %v831_v14, 16  ;;  %v958_v19 = vrot.slane %v956_v9, 4  ;;  %v668_v40 = vld [vmem:[#allocation2 + $0x38] sm:$0x1] }
  0x46   : > { %v931_v20 = vsel %vm5295_vm9, %v926_v11, %v930_v62  ;;  %v949_v21 = vor.u32 %v948_v12, %v945_v7  ;;  %v936_v23 = vrot.slane %v935_v13, 4  ;;  %v832_v24 = vld [vmem:[#allocation2 + $0x34] sm:$0xf]  ;;  %v964_v25 = vrot.slane %v962_v15, 5  ;;  %v292_v41 = vld [vmem:[%s5274_s30 + $0x28] sm:$0xf] }
  0x47   : > { %1260 = vrot.lane.b32.xlu1 %v917_v6, %s5124_s4  ;;  %1262 = vrot.lane.b32.xlu0 %v931_v20, %s5124_s4  ;;  %v969_v28 = vrot.slane %v967_v17, 4  ;;  %v972_v29 = vrot.slane %v970_v18, 5  ;;  %v976_v31 = vshll.u32 %v832_v24, 16  ;;  %v980_v32 = vshrl.u32 %v832_v24, 16  ;;  %v293_v47 = vld [vmem:[%s5274_s30 + $0x2c] sm:$0xf] }
  0x48   : > { %v950_v35 = vrot.slane %v949_v21, 4  ;;  %v941_v36 = vsel %vm5295_vm9, %v936_v23, %v940_v5  ;;  %v959_v37 = vor.u32 %v958_v19, %v954_v16  ;;  %v394_v44 = vshrl.u32 %v291_v27, 16  ;;  %v294_v56 = vld [vmem:[%s5274_s30 + $0x30] sm:$0xf]  ;;  %v678_v63 = vld [vmem:[#allocation2 + $0x48] sm:$0xf] }
  0x49   : > { %v973_v42 = vor.u32 %v972_v29, %v969_v28  ;;  %v978_v43 = vrot.slane %v976_v31, 5  ;;  %v397_v46 = vshll.u32 %v291_v27, 16  ;;  %v672_v51 = vsel %vm5281_vm7, %v5346_v50, %v671_v33  ;;  %v675_v0 = vld [vmem:[#allocation2 + $0x44] sm:$0x1]  ;;  %v295_v4 = vld [vmem:[%s5274_s30 + $0x34] sm:$0xf] }
  0x4a   : > { %v955_v48 = vsel %vm5295_vm9, %v950_v35, %v954_v16  ;;  %v960_v49 = vrot.slane %v959_v37, 4  ;;  %v384_v38 = vrot.slane %v5333_v26, 4  ;;  %v396_v53 = vrot.slane %v394_v44, 7  ;;  %673 = vst [vmem:[#allocation2 + $0x3c] sm:$0xf] %v672_v51 }
  0x4b   : > { %1264 = vrot.lane.b32.xlu1 %v941_v36, %s5124_s4  ;;  %1266 = vrot.lane.b32.xlu0 %v955_v48, %s5124_s4  ;;  %v974_v52 = vrot.slane %v973_v42, 4  ;;  %v982_v54 = vrot.slane %v980_v32, 4  ;;  %v403_v55 = vshrl.u32 %v292_v41, 16  ;;  %v406_v59 = vshll.u32 %v292_v41, 16  ;;  %v296_v10 = vld [vmem:[%s5274_s30 + $0x38] sm:$0xf] }
  0x4c   : > { %v965_v57 = vsel %vm5295_vm9, %v960_v49, %v964_v25  ;;  %v669_v58 = vsel %vm5303_vm10, %v384_v38, %v668_v40  ;;  %v411_v60 = vshrl.u32 %v293_v47, 16  ;;  %v399_v50 = vor.u32 %v397_v46, %v396_v53  ;;  %v685_v15 = vld [vmem:[#allocation2 + $0x54] sm:$0xf]  ;;  %v682_v16 = vld [vmem:[#allocation2 + $0x50] sm:$0x1] }
  0x4d   : > { %v979_v26 = vsel %vm5295_vm9, %v974_v52, %v978_v43  ;;  %670 = vst [vmem:[#allocation2 + $0x38] sm:$0x1] %v669_v58  ;;  %v983_v61 = vor.u32 %v982_v54, %v978_v43  ;;  %v405_v62 = vrot.slane %v403_v55, 7  ;;  %v414_v2 = vshll.u32 %v293_v47, 16  ;;  %v297_v21 = vld [vmem:[%s5274_s30 + $0x3c] sm:$0xf] }
  0x4e   : > { %v413_v1 = vrot.slane %v411_v60, 7  ;;  %v401_v3 = vrot.slane %v396_v53, 4  ;;  %v420_v5 = vshrl.u32 %v294_v56, 16  ;;  %v400_v6 = vsel %vm5288_vm8, %v392_v39, %v399_v50  ;;  %v692_v46 = vld [vmem:[#allocation2 + $0x60] sm:$0xf] }
  0x4f   : > { %1268 = vrot.lane.b32.xlu1 %v965_v57, %s5124_s4  ;;  %1270 = vrot.lane.b32.xlu0 %v979_v26, %s5124_s4  ;;  %v5384_v7 = vrot.slane %v983_v61, 4  ;;  %v408_v8 = vor.u32 %v406_v59, %v405_v62  ;;  %v409_v9 = vrot.slane %v405_v62, 4  ;;  %674 = vst.msk [vmem:[#allocation2 + $0x40] sm:$0xf] %vm226_vm0, %v400_v6  ;;  %v423_v14 = vshll.u32 %v294_v56, 16 }
  0x50   : > { %v416_v11 = vor.u32 %v414_v2, %v413_v1  ;;  %v676_v12 = vsel %vm5303_vm10, %v401_v3, %v675_v0  ;;  %v422_v13 = vrot.slane %v420_v5, 7  ;;  %v428_v18 = vshrl.u32 %v295_v4, 16  ;;  %v689_v38 = vld [vmem:[#allocation2 + $0x5c] sm:$0x1] }
  0x51   : > { %v679_v17 = vsel %vm5281_vm7, %v408_v8, %v678_v63  ;;  %677 = vst [vmem:[#allocation2 + $0x44] sm:$0x1] %v676_v12  ;;  %v431_v19 = vshll.u32 %v295_v4, 16  ;;  %v418_v20 = vrot.slane %v413_v1, 4  ;;  %v834_v23 = vld [vmem:[#allocation2 + $0x3c] sm:$0xf] }
  0x52   : > { %v417_v24 = vsel %vm5288_vm8, %v409_v9, %v416_v11  ;;  %680 = vst [vmem:[#allocation2 + $0x48] sm:$0xf] %v679_v17  ;;  %v425_v25 = vor.u32 %v423_v14, %v422_v13  ;;  %v426_v27 = vrot.slane %v422_v13, 4  ;;  %v437_v28 = vshrl.u32 %v296_v10, 16  ;;  %v5414_v1 = vld [vmem:[%s5274_s30 + $0x40] sm:$0xf] }
  0x53   : > { %v991_v29 = vshrl.u32 %v834_v23, 16  ;;  %v994_v31 = vshll.u32 %v834_v23, 16  ;;  %681 = vst.msk [vmem:[#allocation2 + $0x4c] sm:$0xf] %vm226_vm0, %v417_v24  ;;  %v430_v32 = vrot.slane %v428_v18, 7  ;;  %v683_v33 = vsel %vm5303_vm10, %v418_v20, %v682_v16 }
  0x54   : > { %v833_v35 = vld [vmem:[#allocation2 + $0x38] sm:$0x1]  ;;  %v686_v36 = vsel %vm5281_vm7, %v425_v25, %v685_v15  ;;  %684 = vst [vmem:[#allocation2 + $0x50] sm:$0x1] %v683_v33  ;;  %v439_v37 = vrot.slane %v437_v28, 7  ;;  %v440_v39 = vshll.u32 %v296_v10, 16 }
  0x55   : > { %v445_v40 = vshrl.u32 %v297_v21, 16  ;;  %v993_v41 = vrot.slane %v991_v29, 4  ;;  %v996_v42 = vrot.slane %v994_v31, 5  ;;  %v986_v43 = vshll.u32 %v833_v35, 16  ;;  %687 = vst [vmem:[#allocation2 + $0x54] sm:$0xf] %v686_v36 }
  0x56   : > { %v433_v44 = vor.u32 %v431_v19, %v430_v32  ;;  %v442_v47 = vor.u32 %v440_v39, %v439_v37  ;;  %v443_v48 = vrot.slane %v439_v37, 4  ;;  %v448_v51 = vshll.u32 %v297_v21, 16  ;;  %v835_v52 = vld [vmem:[#allocation2 + $0x40] sm:$0xf] }
  0x57   : > { %v5400_v49 = vrot.slane %v445_v40, 7  ;;  %v997_v53 = vor.u32 %v996_v42, %v993_v41  ;;  %v988_v54 = vrot.slane %v986_v43, 5  ;;  %v435_v56 = vrot.slane %v430_v32, 4 }
  0x58   : > { %v434_v55 = vsel %vm5288_vm8, %v426_v27, %v433_v44  ;;  %v1000_v57 = vshll.u32 %v835_v52, 16  ;;  %v1004_v58 = vshrl.u32 %v835_v52, 16  ;;  %v836_v59 = vld [vmem:[#allocation2 + $0x44] sm:$0x1]  ;;  %v693_v26 = vsel %vm5281_vm7, %v442_v47, %v692_v46 }
  0x59   : > { %688 = vst.msk [vmem:[#allocation2 + $0x58] sm:$0xf] %vm226_vm0, %v434_v55  ;;  %v450_v60 = vor.u32 %v448_v51, %v5400_v49  ;;  %v998_v50 = vrot.slane %v997_v53, 4  ;;  %v989_v61 = vsel %vm5295_vm9, %v5384_v7, %v988_v54  ;;  %v837_v62 = vld [vmem:[#allocation2 + $0x48] sm:$0xf]  ;;  %v1010_v63 = vshll.u32 %v836_v59, 16 }
  0x5a   : > { %694 = vst [vmem:[#allocation2 + $0x60] sm:$0xf] %v693_v26  ;;  %v690_v0 = vsel %vm5303_vm10, %v435_v56, %v689_v38  ;;  %v1002_v2 = vrot.slane %v1000_v57, 5  ;;  %1272 = vrot.lane.b32.xlu1 %v989_v61, %s5124_s4  ;;  %v838_v3 = vld [vmem:[#allocation2 + $0x4c] sm:$0xf]  ;;  %v1015_v4 = vshrl.u32 %v837_v62, 16 }
  0x5b   : > { %v1018_v5 = vshll.u32 %v837_v62, 16  ;;  %v1006_v6 = vrot.slane %v1004_v58, 4  ;;  %691 = vst [vmem:[#allocation2 + $0x5c] sm:$0x1] %v690_v0  ;;  %v1024_v8 = vshll.u32 %v838_v3, 16  ;;  %v1028_v9 = vshrl.u32 %v838_v3, 16 }
  0x5c   : > { %v1012_v10 = vrot.slane %v1010_v63, 5  ;;  %v839_v7 = vld [vmem:[#allocation2 + $0x50] sm:$0x1]  ;;  %v451_v11 = vsel %vm5288_vm8, %v443_v48, %v450_v60  ;;  %v1003_v12 = vsel %vm5295_vm9, %v998_v50, %v1002_v2  ;;  %v1017_v13 = vrot.slane %v1015_v4, 4  ;;  %v840_v16 = vld [vmem:[#allocation2 + $0x54] sm:$0xf] }
  0x5d   : > { %v1020_v14 = vrot.slane %v1018_v5, 5  ;;  %v1007_v15 = vor.u32 %v1006_v6, %v1002_v2  ;;  %695 = vst.msk [vmem:[#allocation2 + $0x64] sm:$0xf] %vm226_vm0, %v451_v11  ;;  %1274 = vrot.lane.b32.xlu0 %v1003_v12, %s5124_s4  ;;  %v1026_v17 = vrot.slane %v1024_v8, 5  ;;  %v1039_v18 = vshrl.u32 %v840_v16, 16 }
  0x5e   : > { %v1042_v19 = vshll.u32 %v840_v16, 16  ;;  %v1030_v20 = vrot.slane %v1028_v9, 4  ;;  %v1034_v24 = vshll.u32 %v839_v7, 16  ;;  %v454_v25 = vshrl.u32 %v5414_v1, 16  ;;  %v299_v38 = vld [vmem:[%s5274_s30 + $0x44] sm:$0xf] }
  0x5f   : > { %v1021_v21 = vor.u32 %v1020_v14, %v1017_v13  ;;  %v1008_v23 = vrot.slane %v1007_v15, 4  ;;  %v1041_v28 = vrot.slane %v1039_v18, 4  ;;  %v457_v32 = vshll.u32 %v5414_v1, 16  ;;  %v699_v26 = vld [vmem:[#allocation2 + $0x6c] sm:$0xf] }
  0x60   : > { %v841_v27 = vld [vmem:[#allocation2 + $0x58] sm:$0xf]  ;;  %v1044_v29 = vrot.slane %v1042_v19, 5  ;;  %v1031_v31 = vor.u32 %v1030_v20, %v1026_v17  ;;  %v1036_v42 = vrot.slane %v1034_v24, 5  ;;  %v456_v62 = vrot.slane %v454_v25, 7 }
  0x61   : > { %v1022_v33 = vrot.slane %v1021_v21, 4  ;;  %v1013_v35 = vsel %vm5295_vm9, %v1008_v23, %v1012_v10  ;;  %v1048_v36 = vshll.u32 %v841_v27, 16  ;;  %v1052_v37 = vshrl.u32 %v841_v27, 16  ;;  %v843_v39 = vld [vmem:[#allocation2 + $0x60] sm:$0xf] }
  0x62   : > { %1276 = vrot.lane.b32.xlu1 %v1013_v35, %s5124_s4  ;;  %v1045_v40 = vor.u32 %v1044_v29, %v1041_v28  ;;  %v1032_v41 = vrot.slane %v1031_v31, 4  ;;  %v1063_v43 = vshrl.u32 %v843_v39, 16  ;;  %v842_v44 = vld [vmem:[#allocation2 + $0x5c] sm:$0x1]  ;;  %v1066_v48 = vshll.u32 %v843_v39, 16 }
  0x63   : > { %v1027_v46 = vsel %vm5295_vm9, %v1022_v33, %v1026_v17  ;;  %v1050_v47 = vrot.slane %v1048_v36, 5  ;;  %v1054_v51 = vrot.slane %v1052_v37, 4  ;;  %v1058_v56 = vshll.u32 %v842_v44, 16  ;;  %v300_v0 = vld [vmem:[%s5274_s30 + $0x48] sm:$0xf] }
  0x64   : > { %1278 = vrot.lane.b32.xlu0 %v1027_v46, %s5124_s4  ;;  %v1046_v52 = vrot.slane %v1045_v40, 4  ;;  %v1037_v53 = vsel %vm5295_vm9, %v1032_v41, %v1036_v42  ;;  %v844_v54 = vld [vmem:[#allocation2 + $0x64] sm:$0xf]  ;;  %v1065_v55 = vrot.slane %v1063_v43, 4  ;;  %v1068_v57 = vrot.slane %v1066_v48, 5 }
  0x65   : > { %v1072_v58 = vshll.u32 %v844_v54, 16  ;;  %v1076_v59 = vshrl.u32 %v844_v54, 16  ;;  %v1055_v60 = vor.u32 %v1054_v51, %v1050_v47  ;;  %v1060_v61 = vrot.slane %v1058_v56, 5  ;;  %v696_v5 = vld [vmem:[#allocation2 + $0x68] sm:$0x1] }
  0x66   : > { %v1051_v50 = vsel %vm5295_vm9, %v1046_v52, %v1050_v47  ;;  %1280 = vrot.lane.b32.xlu1 %v1037_v53, %s5124_s4  ;;  %v462_v63 = vshrl.u32 %v299_v38, 16  ;;  %v1069_v1 = vor.u32 %v1068_v57, %v1065_v55  ;;  %v465_v4 = vshll.u32 %v299_v38, 16  ;;  %v301_v7 = vld [vmem:[%s5274_s30 + $0x4c] sm:$0xf]  ;;  %v302_v15 = vld [vmem:[%s5274_s30 + $0x50] sm:$0xf] }
  0x67   : > { %v1074_v2 = vrot.slane %v1072_v58, 5  ;;  %v1056_v3 = vrot.slane %v1055_v60, 4  ;;  %v459_v6 = vor.u32 %v457_v32, %v456_v62  ;;  %v460_v8 = vrot.slane %v456_v62, 4  ;;  %v703_v25 = vld [vmem:[#allocation2 + $0x74] sm:$0x1] }
  0x68   : > { %1282 = vrot.lane.b32.xlu0 %v1051_v50, %s5124_s4  ;;  %v464_v9 = vrot.slane %v462_v63, 7  ;;  %v452_v10 = vrot.slane %v5400_v49, 4  ;;  %v1070_v11 = vrot.slane %v1069_v1, 4  ;;  %v1078_v13 = vrot.slane %v1076_v59, 4  ;;  %v706_v49 = vld [vmem:[#allocation2 + $0x78] sm:$0xf] }
  0x69   : > { %v1061_v12 = vsel %vm5295_vm9, %v1056_v3, %v1060_v61  ;;  %v471_v14 = vshrl.u32 %v300_v0, 16  ;;  %v700_v17 = vsel %vm5281_vm7, %v459_v6, %v699_v26  ;;  %v474_v19 = vshll.u32 %v300_v0, 16  ;;  %v303_v27 = vld [vmem:[%s5274_s30 + $0x54] sm:$0xf]  ;;  %v710_v33 = vld [vmem:[#allocation2 + $0x80] sm:$0x1] }
  0x6a   : > { %1284 = vrot.lane.b32.xlu1 %v1061_v12, %s5124_s4  ;;  %v467_v16 = vor.u32 %v465_v4, %v464_v9  ;;  %v697_v18 = vsel %vm5303_vm10, %v452_v10, %v696_v5  ;;  %v1075_v20 = vsel %vm5295_vm9, %v1070_v11, %v1074_v2  ;;  %701 = vst [vmem:[#allocation2 + $0x6c] sm:$0xf] %v700_v17  ;;  %v479_v24 = vshrl.u32 %v301_v7, 16  ;;  %v304_v40 = vld [vmem:[%s5274_s30 + $0x58] sm:$0xf] }
  0x6b   : > { %698 = vst [vmem:[#allocation2 + $0x68] sm:$0x1] %v697_v18  ;;  %v1079_v21 = vor.u32 %v1078_v13, %v1074_v2  ;;  %v473_v23 = vrot.slane %v471_v14, 7  ;;  %v482_v29 = vshll.u32 %v301_v7, 16  ;;  %v469_v31 = vrot.slane %v464_v9, 4 }
  0x6c   : > { %1286 = vrot.lane.b32.xlu0 %v1075_v20, %s5124_s4  ;;  %v468_v28 = vsel %vm5288_vm8, %v460_v8, %v467_v16  ;;  %v488_v32 = vshrl.u32 %v302_v15, 16  ;;  %v481_v39 = vrot.slane %v479_v24, 7  ;;  %v491_v43 = vshll.u32 %v302_v15, 16  ;;  %v305_v46 = vld [vmem:[%s5274_s30 + $0x5c] sm:$0xf] }
  0x6d   : > { %702 = vst.msk [vmem:[#allocation2 + $0x70] sm:$0xf] %vm226_vm0, %v468_v28  ;;  %v5456_v35 = vrot.slane %v1079_v21, 4  ;;  %v476_v36 = vor.u32 %v474_v19, %v473_v23  ;;  %v477_v37 = vrot.slane %v473_v23, 4  ;;  %v704_v41 = vsel %vm5303_vm10, %v469_v31, %v703_v25  ;;  %v713_v38 = vld [vmem:[#allocation2 + $0x84] sm:$0xf] }
  0x6e   : > { %v490_v42 = vrot.slane %v488_v32, 7  ;;  %v496_v44 = vshrl.u32 %v303_v27, 16  ;;  %v484_v47 = vor.u32 %v482_v29, %v481_v39  ;;  %705 = vst [vmem:[#allocation2 + $0x74] sm:$0x1] %v704_v41  ;;  %v499_v51 = vshll.u32 %v303_v27, 16 }
  0x6f   : > { %v707_v48 = vsel %vm5281_vm7, %v476_v36, %v706_v49  ;;  %v486_v52 = vrot.slane %v481_v39, 4  ;;  %v505_v56 = vshrl.u32 %v304_v40, 16  ;;  %v508_v59 = vshll.u32 %v304_v40, 16  ;;  %v720_v26 = vld [vmem:[#allocation2 + $0x90] sm:$0xf] }
  0x70   : > { %708 = vst [vmem:[#allocation2 + $0x78] sm:$0xf] %v707_v48  ;;  %v493_v53 = vor.u32 %v491_v43, %v490_v42  ;;  %v494_v54 = vrot.slane %v490_v42, 4  ;;  %v498_v55 = vrot.slane %v496_v44, 7  ;;  %v485_v57 = vsel %vm5288_vm8, %v477_v37, %v484_v47  ;;  %v717_v6 = vld [vmem:[#allocation2 + $0x8c] sm:$0x1] }
  0x71   : > { %v711_v58 = vsel %vm5303_vm10, %v486_v52, %v710_v33  ;;  %v513_v60 = vshrl.u32 %v305_v46, 16  ;;  %v846_v50 = vld [vmem:[#allocation2 + $0x6c] sm:$0xf]  ;;  %709 = vst.msk [vmem:[#allocation2 + $0x7c] sm:$0xf] %vm226_vm0, %v485_v57  ;;  %v507_v0 = vrot.slane %v505_v56, 7 }
  0x72   : > { %v845_v61 = vld [vmem:[#allocation2 + $0x68] sm:$0x1]  ;;  %v501_v62 = vor.u32 %v499_v51, %v498_v55  ;;  %v714_v63 = vsel %vm5281_vm7, %v493_v53, %v713_v38  ;;  %712 = vst [vmem:[#allocation2 + $0x80] sm:$0x1] %v711_v58  ;;  %v516_v1 = vshll.u32 %v305_v46, 16  ;;  %v1087_v2 = vshrl.u32 %v846_v50, 16 }
  0x73   : > { %v1090_v3 = vshll.u32 %v846_v50, 16  ;;  %v1082_v4 = vshll.u32 %v845_v61, 16  ;;  %715 = vst [vmem:[#allocation2 + $0x84] sm:$0xf] %v714_v63  ;;  %v5471_v5 = vrot.slane %v513_v60, 7  ;;  %v510_v10 = vor.u32 %v508_v59, %v507_v0 }
  0x74   : > { %v847_v8 = vld [vmem:[#allocation2 + $0x70] sm:$0xf]  ;;  %v502_v9 = vsel %vm5288_vm8, %v494_v54, %v501_v62  ;;  %v511_v7 = vrot.slane %v507_v0, 4  ;;  %v503_v11 = vrot.slane %v498_v55, 4  ;;  %v1089_v12 = vrot.slane %v1087_v2, 4 }
  0x75   : > { %v1092_v13 = vrot.slane %v1090_v3, 5  ;;  %v1096_v14 = vshll.u32 %v847_v8, 16  ;;  %v1100_v15 = vshrl.u32 %v847_v8, 16  ;;  %716 = vst.msk [vmem:[#allocation2 + $0x88] sm:$0xf] %vm226_vm0, %v502_v9  ;;  %v1084_v16 = vrot.slane %v1082_v4, 5 }
  0x76   : > { %v848_v17 = vld [vmem:[#allocation2 + $0x74] sm:$0x1]  ;;  %v518_v18 = vor.u32 %v516_v1, %v5471_v5  ;;  %v721_v19 = vsel %vm5281_vm7, %v510_v10, %v720_v26  ;;  %v718_v49 = vsel %vm5303_vm10, %v503_v11, %v717_v6  ;;  %v306_v62 = vld [vmem:[%s5274_s30 + $0x60] sm:$0xf]  ;;  %vm1690_vm15 = vcmask 93248  }
  0x77   : > { %v1093_v20 = vor.u32 %v1092_v13, %v1089_v12  ;;  %v1098_v21 = vrot.slane %v1096_v14, 5  ;;  %v849_v23 = vld [vmem:[#allocation2 + $0x78] sm:$0xf]  ;;  %v1102_v24 = vrot.slane %v1100_v15, 4  ;;  %v1106_v25 = vshll.u32 %v848_v17, 16 }
  0x78   : > { %722 = vst [vmem:[#allocation2 + $0x90] sm:$0xf] %v721_v19  ;;  %719 = vst [vmem:[#allocation2 + $0x8c] sm:$0x1] %v718_v49  ;;  %v1085_v27 = vsel %vm5295_vm9, %v5456_v35, %v1084_v16  ;;  %v1111_v28 = vshrl.u32 %v849_v23, 16  ;;  %v1114_v29 = vshll.u32 %v849_v23, 16  ;;  %v519_v31 = vsel %vm5288_vm8, %v511_v7, %v518_v18 }
  0x79   : > { %v1094_v32 = vrot.slane %v1093_v20, 4  ;;  %1288 = vrot.lane.b32.xlu1 %v1085_v27, %s5124_s4  ;;  %v850_v33 = vld [vmem:[#allocation2 + $0x7c] sm:$0xf]  ;;  %v1103_v36 = vor.u32 %v1102_v24, %v1098_v21  ;;  %v1108_v37 = vrot.slane %v1106_v25, 5  ;;  %v851_v39 = vld [vmem:[#allocation2 + $0x80] sm:$0x1] }
  0x7a   : > { %723 = vst.msk [vmem:[#allocation2 + $0x94] sm:$0xf] %vm226_vm0, %v519_v31  ;;  %v1113_v40 = vrot.slane %v1111_v28, 4  ;;  %v1116_v41 = vrot.slane %v1114_v29, 5  ;;  %v1120_v42 = vshll.u32 %v850_v33, 16  ;;  %v1124_v43 = vshrl.u32 %v850_v33, 16 }
  0x7b   : > { %v852_v44 = vld [vmem:[#allocation2 + $0x84] sm:$0xf]  ;;  %v1099_v35 = vsel %vm5295_vm9, %v1094_v32, %v1098_v21  ;;  %v1104_v46 = vrot.slane %v1103_v36, 4  ;;  %v1130_v54 = vshll.u32 %v851_v39, 16  ;;  %v522_v21 = vshrl.u32 %v306_v62, 16 }
  0x7c   : > { %v1135_v47 = vshrl.u32 %v852_v44, 16  ;;  %v1138_v48 = vshll.u32 %v852_v44, 16  ;;  %1290 = vrot.lane.b32.xlu0 %v1099_v35, %s5124_s4  ;;  %v1117_v51 = vor.u32 %v1116_v41, %v1113_v40  ;;  %v1122_v38 = vrot.slane %v1120_v42, 5  ;;  %v853_v52 = vld [vmem:[#allocation2 + $0x88] sm:$0xf] }
  0x7d   : > { %v1126_v53 = vrot.slane %v1124_v43, 4  ;;  %v1109_v55 = vsel %vm5295_vm9, %v1104_v46, %v1108_v37  ;;  %v1144_v58 = vshll.u32 %v853_v52, 16  ;;  %v1148_v60 = vshrl.u32 %v853_v52, 16  ;;  %v307_v14 = vld [vmem:[%s5274_s30 + $0x64] sm:$0xf] }
  0x7e   : > { %v1137_v56 = vrot.slane %v1135_v47, 4  ;;  %v1140_v57 = vrot.slane %v1138_v48, 5  ;;  %v1118_v59 = vrot.slane %v1117_v51, 4  ;;  %1292 = vrot.lane.b32.xlu1 %v1109_v55, %s5124_s4  ;;  %v1132_v50 = vrot.slane %v1130_v54, 5  ;;  %v308_v23 = vld [vmem:[%s5274_s30 + $0x68] sm:$0xf] }
  0x7f   : > { %v1127_v26 = vor.u32 %v1126_v53, %v1122_v38  ;;  %v855_v61 = vld [vmem:[#allocation2 + $0x90] sm:$0xf]  ;;  %v1146_v0 = vrot.slane %v1144_v58, 5  ;;  %v854_v3 = vld [vmem:[#allocation2 + $0x8c] sm:$0x1]  ;;  %v1150_v9 = vrot.slane %v1148_v60, 4 }
  0x80   : > { %v1141_v63 = vor.u32 %v1140_v57, %v1137_v56  ;;  %v1159_v1 = vshrl.u32 %v855_v61, 16  ;;  %v1162_v2 = vshll.u32 %v855_v61, 16  ;;  %v1123_v4 = vsel %vm5295_vm9, %v1118_v59, %v1122_v38  ;;  %v727_v29 = vld [vmem:[#allocation2 + $0x9c] sm:$0xf]  ;;  %v724_v31 = vld [vmem:[#allocation2 + $0x98] sm:$0x1] }
  0x81   : > { %v1128_v6 = vrot.slane %v1127_v26, 4  ;;  %v856_v8 = vld [vmem:[#allocation2 + $0x94] sm:$0xf]  ;;  %v1154_v10 = vshll.u32 %v854_v3, 16  ;;  %1294 = vrot.lane.b32.xlu0 %v1123_v4, %s5124_s4  ;;  %v1151_v17 = vor.u32 %v1150_v9, %v1146_v0  ;;  %v525_v25 = vshll.u32 %v306_v62, 16 }
  0x82   : > { %v1142_v7 = vrot.slane %v1141_v63, 4  ;;  %v1161_v11 = vrot.slane %v1159_v1, 4  ;;  %v1164_v12 = vrot.slane %v1162_v2, 5  ;;  %v1168_v13 = vshll.u32 %v856_v8, 16  ;;  %v309_v39 = vld [vmem:[%s5274_s30 + $0x6c] sm:$0xf] }
  0x83   : > { %v1133_v15 = vsel %vm5295_vm9, %v1128_v6, %v1132_v50  ;;  %v1172_v16 = vshrl.u32 %v856_v8, 16  ;;  %v1156_v18 = vrot.slane %v1154_v10, 5  ;;  %v1152_v24 = vrot.slane %v1151_v17, 4  ;;  %v310_v44 = vld [vmem:[%s5274_s30 + $0x70] sm:$0xf] }
  0x84   : > { %v1147_v19 = vsel %vm5295_vm9, %v1142_v7, %v1146_v0  ;;  %1296 = vrot.lane.b32.xlu1 %v1133_v15, %s5124_s4  ;;  %v1165_v49 = vor.u32 %v1164_v12, %v1161_v11  ;;  %v5504_v20 = vrot.slane %v1168_v13, 5  ;;  %v530_v27 = vshrl.u32 %v307_v14, 16  ;;  %v734_v52 = vld [vmem:[#allocation2 + $0xa8] sm:$0xf]  ;;  %v731_v53 = vld [vmem:[#allocation2 + $0xa4] sm:$0x1] }
  0x85   : > { %v533_v28 = vshll.u32 %v307_v14, 16  ;;  %1298 = vrot.lane.b32.xlu0 %v1147_v19, %s5124_s4  ;;  %v524_v33 = vrot.slane %v522_v21, 7  ;;  %v520_v36 = vrot.slane %v5471_v5, 4  ;;  %v1174_v37 = vrot.slane %v1172_v16, 4  ;;  %v311_v57 = vld [vmem:[%s5274_s30 + $0x74] sm:$0xf] }
  0x86   : > { %v1166_v32 = vrot.slane %v1165_v49, 4  ;;  %v1157_v40 = vsel %vm5295_vm9, %v1152_v24, %v1156_v18  ;;  %v532_v41 = vrot.slane %v530_v27, 7  ;;  %v539_v42 = vshrl.u32 %v308_v23, 16  ;;  %v741_v1 = vld [vmem:[#allocation2 + $0xb4] sm:$0xf] }
  0x87   : > { %v542_v43 = vshll.u32 %v308_v23, 16  ;;  %v527_v46 = vor.u32 %v525_v25, %v524_v33  ;;  %v528_v47 = vrot.slane %v524_v33, 4  ;;  %v725_v5 = vsel %vm5303_vm10, %v520_v36, %v724_v31  ;;  %v738_v6 = vld [vmem:[#allocation2 + $0xb0] sm:$0x1]  ;;  %v755_v8 = vld [vmem:[#allocation2] sm:$0xf] }
  0x88   : > { %v1171_v35 = vsel %vm5295_vm9, %v1166_v32, %v5504_v20  ;;  %1300 = vrot.lane.b32.xlu1 %v1157_v40, %s5124_s4  ;;  %v535_v48 = vor.u32 %v533_v28, %v532_v41  ;;  %726 = vst [vmem:[#allocation2 + $0x98] sm:$0x1] %v725_v5  ;;  %v541_v51 = vrot.slane %v539_v42, 7  ;;  %v547_v38 = vshrl.u32 %v309_v39, 16  ;;  %787 = vst.msk [vmem:[#allocation3] sm:$0xf] %vm226_vm0, %v755_v8 }
  0x89   : > { %1302 = vrot.lane.b32.xlu0 %v1171_v35, %s5124_s4  ;;  %v728_v54 = vsel %vm5281_vm7, %v527_v46, %v727_v29  ;;  %v550_v55 = vshll.u32 %v309_v39, 16  ;;  %v537_v56 = vrot.slane %v532_v41, 4  ;;  %v556_v58 = vshrl.u32 %v310_v44, 16  ;;  %v756_v11 = vld [vmem:[#allocation2 + $0x4] sm:$0xf] }
  0x8a   : > { %v536_v59 = vsel %vm5288_vm8, %v528_v47, %v535_v48  ;;  %729 = vst [vmem:[#allocation2 + $0x9c] sm:$0xf] %v728_v54  ;;  %v1175_v60 = vor.u32 %v1174_v37, %v5504_v20  ;;  %v544_v26 = vor.u32 %v542_v43, %v541_v51  ;;  %v545_v50 = vrot.slane %v541_v51, 4  ;;  %v757_v12 = vld [vmem:[#allocation2 + $0xc] sm:$0xf] }
  0x8b   : > { %730 = vst.msk [vmem:[#allocation2 + $0xa0] sm:$0xf] %vm226_vm0, %v536_v59  ;;  %v549_v61 = vrot.slane %v547_v38, 7  ;;  %v732_v62 = vsel %vm5303_vm10, %v537_v56, %v731_v53  ;;  %v558_v63 = vrot.slane %v556_v58, 7  ;;  %v559_v0 = vshll.u32 %v310_v44, 16 }
  0x8c   : > { %v735_v2 = vsel %vm5281_vm7, %v544_v26, %v734_v52  ;;  %733 = vst [vmem:[#allocation2 + $0xa4] sm:$0x1] %v732_v62  ;;  %v564_v3 = vshrl.u32 %v311_v57, 16  ;;  %v567_v4 = vshll.u32 %v311_v57, 16  ;;  %788 = vst.msk [vmem:[#allocation3 + $0x4] sm:$0xf] %vm226_vm0, %v756_v11 }
  0x8d   : > { %v552_v9 = vor.u32 %v550_v55, %v549_v61  ;;  %736 = vst [vmem:[#allocation2 + $0xa8] sm:$0xf] %v735_v2  ;;  %v561_v10 = vor.u32 %v559_v0, %v558_v63  ;;  %v554_v7 = vrot.slane %v549_v61, 4  ;;  %v562_v13 = vrot.slane %v558_v63, 4  ;;  %789 = vst.msk [vmem:[#allocation3 + $0x8] sm:$0xf] %vm226_vm0, %v757_v12 }
  0x8e   : > { %v566_v14 = vrot.slane %v564_v3, 7  ;;  %v759_v15 = vld [vmem:[#allocation2 + $0x18] sm:$0xf]  ;;  %v1176_v17 = vrot.slane %v1175_v60, 4  ;;  %v745_v20 = vld [vmem:[#allocation2 + $0xbc] sm:$0x1] }
  0x8f   : > { %v857_v16 = vld [vmem:[#allocation2 + $0x98] sm:$0x1]  ;;  %v553_v18 = vsel %vm5288_vm8, %v545_v50, %v552_v9  ;;  %v742_v19 = vsel %vm5281_vm7, %v561_v10, %v741_v1  ;;  %v739_v49 = vsel %vm5303_vm10, %v554_v7, %v738_v6  ;;  %791 = vst.msk [vmem:[#allocation3 + $0x10] sm:$0xf] %vm226_vm0, %v759_v15  ;;  %v758_v25 = vld [vmem:[#allocation2 + $0x10] sm:$0xf] }
  0x90   : > { %v1178_v21 = vshll.u32 %v857_v16, 16  ;;  %737 = vst.msk [vmem:[#allocation2 + $0xac] sm:$0xf] %vm226_vm0, %v553_v18  ;;  %v569_v23 = vor.u32 %v567_v4, %v566_v14  ;;  %743 = vst [vmem:[#allocation2 + $0xb4] sm:$0xf] %v742_v19  ;;  %v571_v24 = vrot.slane %v566_v14, 4 }
  0x91   : > { %740 = vst [vmem:[#allocation2 + $0xb0] sm:$0x1] %v739_v49  ;;  %v761_v27 = vld [vmem:[#allocation2 + $0x24] sm:$0xf]  ;;  %v858_v28 = vld [vmem:[#allocation2 + $0x9c] sm:$0xf] }
  0x92   : > { %790 = vst.msk [vmem:[#allocation3 + $0xc] sm:$0xf] %vm226_vm0, %v758_v25  ;;  %793 = vst.msk [vmem:[#allocation3 + $0x18] sm:$0xf] %vm226_vm0, %v761_v27  ;;  %v859_v29 = vld [vmem:[#allocation2 + $0xa0] sm:$0xf]  ;;  %v570_v36 = vsel %vm5288_vm8, %v562_v13, %v569_v23  ;;  %v746_v41 = vsel %vm5303_vm10, %v571_v24, %v745_v20 }
  0x93   : > { %v1183_v31 = vshrl.u32 %v858_v28, 16  ;;  %v1186_v32 = vshll.u32 %v858_v28, 16  ;;  %v1180_v33 = vrot.slane %v1178_v21, 5  ;;  %v1192_v37 = vshll.u32 %v859_v29, 16  ;;  %v860_v40 = vld [vmem:[#allocation2 + $0xa4] sm:$0x1] }
  0x94   : > { %v1196_v39 = vshrl.u32 %v859_v29, 16  ;;  %744 = vst.msk [vmem:[#allocation2 + $0xb8] sm:$0xf] %vm226_vm0, %v570_v36  ;;  %v861_v35 = vld [vmem:[#allocation2 + $0xa8] sm:$0xf]  ;;  %v1202_v46 = vshll.u32 %v860_v40, 16 }
  0x95   : > { %v1185_v42 = vrot.slane %v1183_v31, 4  ;;  %v1188_v43 = vrot.slane %v1186_v32, 5  ;;  %v1181_v44 = vsel %vm5295_vm9, %v1176_v17, %v1180_v33  ;;  %747 = vst [vmem:[#allocation2 + $0xbc] sm:$0x1] %v746_v41  ;;  %v1194_v47 = vrot.slane %v1192_v37, 5 }
  0x96   : > { %1304 = vrot.lane.b32.xlu1 %v1181_v44, %s5124_s4  ;;  %v1207_v5 = vshrl.u32 %v861_v35, 16  ;;  %v1210_v48 = vshll.u32 %v861_v35, 16  ;;  %v1198_v51 = vrot.slane %v1196_v39, 4  ;;  %v1204_v52 = vrot.slane %v1202_v46, 5  ;;  %v1383_v15 = vld [vmem:[#allocation2] sm:$0xe] }
  0x97   : > { %v1189_v38 = vor.u32 %v1188_v43, %v1185_v42  ;;  %v862_v53 = vld [vmem:[#allocation2 + $0xac] sm:$0xf]  ;;  %v864_v57 = vld [vmem:[#allocation2 + $0xb4] sm:$0xf]  ;;  %v1384_v49 = vld [vmem:[#allocation2 + $0x4] sm:$0xf] }
  0x98   : > { %v1209_v54 = vrot.slane %v1207_v5, 4  ;;  %v1212_v55 = vrot.slane %v1210_v48, 5  ;;  %v1199_v56 = vor.u32 %v1198_v51, %v1194_v47  ;;  %v1216_v59 = vshll.u32 %v862_v53, 16  ;;  %v863_v50 = vld [vmem:[#allocation2 + $0xb0] sm:$0x1] }
  0x99   : > { %v1190_v58 = vrot.slane %v1189_v38, 4  ;;  %v1220_v60 = vshrl.u32 %v862_v53, 16  ;;  %v1231_v26 = vshrl.u32 %v864_v57, 16  ;;  %v1234_v63 = vshll.u32 %v864_v57, 16  ;;  %v760_v23 = vld [vmem:[#allocation2 + $0x1c] sm:$0xf] }
  0x9a   : > { %v1213_v61 = vor.u32 %v1212_v55, %v1209_v54  ;;  %v1200_v62 = vrot.slane %v1199_v56, 4  ;;  %v1226_v0 = vshll.u32 %v863_v50, 16  ;;  %v1218_v2 = vrot.slane %v1216_v59, 5  ;;  %v1385_v27 = vld [vmem:[#allocation2 + $0x8] sm:$0x1] }
  0x9b   : > { %v1195_v1 = vsel %vm5295_vm9, %v1190_v58, %v1194_v47  ;;  %v865_v3 = vld [vmem:[#allocation2 + $0xb8] sm:$0xf]  ;;  %v1233_v4 = vrot.slane %v1231_v26, 4  ;;  %v1222_v6 = vrot.slane %v1220_v60, 4  ;;  %v1236_v10 = vrot.slane %v1234_v63, 5 }
  0x9c   : > { %1306 = vrot.lane.b32.xlu0 %v1195_v1, %s5124_s4  ;;  %v1214_v8 = vrot.slane %v1213_v61, 4  ;;  %v1205_v9 = vsel %vm5295_vm9, %v1200_v62, %v1204_v52  ;;  %v1240_v7 = vshll.u32 %v865_v3, 16  ;;  %v866_v11 = vld [vmem:[#allocation2 + $0xbc] sm:$0x1]  ;;  %v1244_v12 = vshrl.u32 %v865_v3, 16 }
  0x9d   : > { %1308 = vrot.lane.b32.xlu1 %v1205_v9, %s5124_s4  ;;  %v1223_v13 = vor.u32 %v1222_v6, %v1218_v2  ;;  %v1228_v14 = vrot.slane %v1226_v0, 5  ;;  %v1250_v16 = vshll.u32 %v866_v11, 16  ;;  %v1237_v18 = vor.u32 %v1236_v10, %v1233_v4  ;;  %792 = vst.msk [vmem:[#allocation3 + $0x14] sm:$0xf] %vm226_vm0, %v760_v23  ;;  %v763_v36 = vld [vmem:[#allocation2 + $0x30] sm:$0xf] }
  0x9e   : > { %v1219_v17 = vsel %vm5295_vm9, %v1214_v8, %v1218_v2  ;;  %v1242_v19 = vrot.slane %v1240_v7, 5  ;;  %v1246_v21 = vrot.slane %v1244_v12, 4  ;;  %v4744_v25 = vrot.slane %v1383_v15, 9  ;;  %v1386_v39 = vld [vmem:[#allocation2 + $0xc] sm:$0xe] }
  0x9f   : > { %v1224_v20 = vrot.slane %v1223_v13, 4  ;;  %v1238_v24 = vrot.slane %v1237_v18, 4  ;;  %v1484_v31 = vrot.slane %v1384_v49, 5  ;;  %v1252_v33 = vrot.slane %v1250_v16, 5  ;;  %v1387_v40 = vld [vmem:[#allocation2 + $0x10] sm:$0xf] }
  0xa0   : > { %1310 = vrot.lane.b32.xlu0 %v1219_v17, %s5124_s4  ;;  %v1247_v32 = vor.u32 %v1246_v21, %v1242_v19  ;;  %795 = vst.msk [vmem:[#allocation3 + $0x20] sm:$0xf] %vm226_vm0, %v763_v36  ;;  %v762_v41 = vld [vmem:[#allocation2 + $0x28] sm:$0xf]  ;;  %v1487_v44 = vrot.slane %v1385_v27, 5  ;;  %v4745_v48 = vrot.slane %v1386_v39, 9 }
  0xa1   : > { %v1229_v28 = vsel %vm5295_vm9, %v1224_v20, %v1228_v14  ;;  %v1243_v37 = vsel %vm5295_vm9, %v1238_v24, %v1242_v19  ;;  %v1486_v43 = vrot.slane %v1484_v31, 4  ;;  %794 = vst.msk [vmem:[#allocation3 + $0x1c] sm:$0xf] %vm226_vm0, %v762_v41  ;;  %v1388_v35 = vld [vmem:[#allocation2 + $0x14] sm:$0x1]  ;;  %v1485_v47 = vsel %vm5565_vm13, %v4744_v25, %v1484_v31 }
  0xa2   : > { %1312 = vrot.lane.b32.xlu1 %v1229_v28, %s5124_s4  ;;  %v1248_v42 = vrot.slane %v1247_v32, 4  ;;  %v765_v46 = vld [vmem:[#allocation2 + $0x3c] sm:$0xf]  ;;  %v1491_v51 = vrot.slane %v1387_v40, 5  ;;  %v764_v38 = vld [vmem:[#allocation2 + $0x34] sm:$0xf] }
  0xa3   : > { %797 = vst.msk [vmem:[#allocation3 + $0x28] sm:$0xf] %vm226_vm0, %v765_v46  ;;  %v1389_v52 = vld [vmem:[#allocation2 + $0x18] sm:$0xe]  ;;  %v1390_v53 = vld [vmem:[#allocation2 + $0x1c] sm:$0xf]  ;;  %v1488_v55 = vsel %vm5565_vm13, %v1486_v43, %v1487_v44 }
  0xa4   : > { %1314 = vrot.lane.b32.xlu0 %v1243_v37, %s5124_s4  ;;  %v1253_v5 = vsel %vm5295_vm9, %v1248_v42, %v1252_v33  ;;  %796 = vst.msk [vmem:[#allocation3 + $0x24] sm:$0xf] %vm226_vm0, %v764_v38  ;;  %v767_v54 = vld [vmem:[#allocation2 + $0x48] sm:$0xf]  ;;  %v1493_v56 = vrot.slane %v1491_v51, 4  ;;  %v1494_v57 = vrot.slane %v1388_v35, 5  ;;  %v1492_v60 = vsel %vm5565_vm13, %v4745_v48, %v1491_v51 }
  0xa5   : > { %799 = vst.msk [vmem:[#allocation3 + $0x30] sm:$0xf] %vm226_vm0, %v767_v54  ;;  %v766_v58 = vld [vmem:[#allocation2 + $0x40] sm:$0xf]  ;;  %v4746_v26 = vrot.slane %v1389_v52, 9  ;;  %v1498_v50 = vrot.slane %v1390_v53, 5 }
  0xa6   : > { %1316 = vrot.lane.b32.xlu1 %v1253_v5, %s5124_s4  ;;  %v1391_v59 = vld [vmem:[#allocation2 + $0x20] sm:$0x1]  ;;  %798 = vst.msk [vmem:[#allocation3 + $0x2c] sm:$0xf] %vm226_vm0, %v766_v58  ;;  %v1392_v61 = vld [vmem:[#allocation2 + $0x24] sm:$0xe]  ;;  %v1255_v62 = vpop.permute.xlu0 %1254  ;;  %v1495_v2 = vsel %vm5565_vm13, %v1493_v56, %v1494_v57 }
  0xa7   : > { %v1393_v63 = vld [vmem:[#allocation2 + $0x28] sm:$0xf]  ;;  %v769_v0 = vld [vmem:[#allocation2 + $0x54] sm:$0xf]  ;;  %v768_v1 = vld [vmem:[#allocation2 + $0x4c] sm:$0xf]  ;;  %v1499_v8 = vsel %vm5565_vm13, %v4746_v26, %v1498_v50 }
  0xa8   : > { %1594 = vrot.lane.b32.xlu0 %v1485_v47, %s5125_s5  ;;  %v1500_v3 = vrot.slane %v1498_v50, 4  ;;  %v1501_v4 = vrot.slane %v1391_v59, 5  ;;  %801 = vst.msk [vmem:[#allocation3 + $0x38] sm:$0xf] %vm226_vm0, %v769_v0  ;;  %800 = vst.msk [vmem:[#allocation3 + $0x34] sm:$0xf] %vm226_vm0, %v768_v1 }
  0xa9   : > { %v1394_v6 = vld [vmem:[#allocation2 + $0x2c] sm:$0x1]  ;;  %v4747_v9 = vrot.slane %v1392_v61, 9  ;;  %v1505_v10 = vrot.slane %v1393_v63, 5  ;;  %v771_v7 = vld [vmem:[#allocation2 + $0x60] sm:$0xf] }
  0xaa   : > { %1596 = vrot.lane.b32.xlu1 %v1488_v55, %s5125_s5  ;;  %v770_v11 = vld [vmem:[#allocation2 + $0x58] sm:$0xf]  ;;  %v1395_v12 = vld [vmem:[#allocation2 + $0x30] sm:$0xe]  ;;  %v1396_v13 = vld [vmem:[#allocation2 + $0x34] sm:$0xf]  ;;  %v1502_v14 = vsel %vm5565_vm13, %v1500_v3, %v1501_v4  ;;  %v1257_v17 = vpop.permute.xlu0 %1256 }
  0xab   : > { %803 = vst.msk [vmem:[#allocation3 + $0x40] sm:$0xf] %vm226_vm0, %v771_v7  ;;  %802 = vst.msk [vmem:[#allocation3 + $0x3c] sm:$0xf] %vm226_vm0, %v770_v11  ;;  %v1507_v15 = vrot.slane %v1505_v10, 4  ;;  %v1508_v16 = vrot.slane %v1394_v6, 5  ;;  %v1506_v20 = vsel %vm5565_vm13, %v4747_v9, %v1505_v10 }
  0xac   : > { %1598 = vrot.lane.b32.xlu0 %v1492_v60, %s5125_s5  ;;  %v1397_v18 = vld [vmem:[#allocation2 + $0x38] sm:$0x1]  ;;  %1351 = vst.msk [vmem:[#allocation3] sm:$0xf] %vm1350_vm14, %v1255_v62  ;;  %1352 = vst.msk [vmem:[#allocation3 + $0x4] sm:$0xf] %vm1350_vm14, %v1257_v17 }
  0xad   : > { %v773_v19 = vld [vmem:[#allocation2 + $0x6c] sm:$0xf]  ;;  %v772_v49 = vld [vmem:[#allocation2 + $0x64] sm:$0xf]  ;;  %v4748_v21 = vrot.slane %v1395_v12, 9  ;;  %v1512_v23 = vrot.slane %v1396_v13, 5  ;;  %v1509_v27 = vsel %vm5565_vm13, %v1507_v15, %v1508_v16 }
  0xae   : > { %1600 = vrot.lane.b32.xlu1 %v1495_v2, %s5125_s5  ;;  %805 = vst.msk [vmem:[#allocation3 + $0x48] sm:$0xf] %vm226_vm0, %v773_v19  ;;  %804 = vst.msk [vmem:[#allocation3 + $0x44] sm:$0xf] %vm226_vm0, %v772_v49  ;;  %v1398_v24 = vld [vmem:[#allocation2 + $0x3c] sm:$0xe] }
  0xaf   : > { %v1399_v25 = vld [vmem:[#allocation2 + $0x40] sm:$0xf]  ;;  %v1514_v28 = vrot.slane %v1512_v23, 4  ;;  %v1515_v31 = vrot.slane %v1397_v18, 5  ;;  %v775_v32 = vld [vmem:[#allocation2 + $0x78] sm:$0xf]  ;;  %v1513_v37 = vsel %vm5565_vm13, %v4748_v21, %v1512_v23 }
  0xb0   : > { %1602 = vrot.lane.b32.xlu0 %v1499_v8, %s5125_s5  ;;  %v1400_v33 = vld [vmem:[#allocation2 + $0x44] sm:$0x1]  ;;  %807 = vst.msk [vmem:[#allocation3 + $0x50] sm:$0xf] %vm226_vm0, %v775_v32  ;;  %v774_v36 = vld [vmem:[#allocation2 + $0x70] sm:$0xf] }
  0xb1   : > { %v4749_v39 = vrot.slane %v1398_v24, 9  ;;  %v1519_v40 = vrot.slane %v1399_v25, 5  ;;  %806 = vst.msk [vmem:[#allocation3 + $0x4c] sm:$0xf] %vm226_vm0, %v774_v36  ;;  %v777_v41 = vld [vmem:[#allocation2 + $0x84] sm:$0xf]  ;;  %v1516_v46 = vsel %vm5565_vm13, %v1514_v28, %v1515_v31 }
  0xb2   : > { %1604 = vrot.lane.b32.xlu1 %v1502_v14, %s5125_s5  ;;  %v1401_v42 = vld [vmem:[#allocation2 + $0x48] sm:$0xe]  ;;  %v1402_v43 = vld [vmem:[#allocation2 + $0x4c] sm:$0xf]  ;;  %809 = vst.msk [vmem:[#allocation3 + $0x58] sm:$0xf] %vm226_vm0, %v777_v41 }
  0xb3   : > { %v776_v35 = vld [vmem:[#allocation2 + $0x7c] sm:$0xf]  ;;  %v1521_v47 = vrot.slane %v1519_v40, 4  ;;  %v1522_v5 = vrot.slane %v1400_v33, 5  ;;  %v779_v48 = vld [vmem:[#allocation2 + $0x90] sm:$0xf]  ;;  %v1520_v52 = vsel %vm5565_vm13, %v4749_v39, %v1519_v40 }
  0xb4   : > { %1606 = vrot.lane.b32.xlu0 %v1506_v20, %s5125_s5  ;;  %808 = vst.msk [vmem:[#allocation3 + $0x54] sm:$0xf] %vm226_vm0, %v776_v35  ;;  %v778_v51 = vld [vmem:[#allocation2 + $0x88] sm:$0xf]  ;;  %v1403_v38 = vld [vmem:[#allocation2 + $0x50] sm:$0x1] }
  0xb5   : > { %v1259_v44 = vpop.permute.xlu1 %1258  ;;  %811 = vst.msk [vmem:[#allocation3 + $0x60] sm:$0xf] %vm226_vm0, %v779_v48  ;;  %810 = vst.msk [vmem:[#allocation3 + $0x5c] sm:$0xf] %vm226_vm0, %v778_v51  ;;  %v4750_v53 = vrot.slane %v1401_v42, 9  ;;  %v1526_v54 = vrot.slane %v1402_v43, 5  ;;  %v1523_v60 = vsel %vm5565_vm13, %v1521_v47, %v1522_v5 }
  0xb6   : > { %1608 = vrot.lane.b32.xlu1 %v1509_v27, %s5125_s5  ;;  %1353 = vst.msk [vmem:[#allocation3 + $0x8] sm:$0xf] %vm1350_vm14, %v1259_v44  ;;  %v781_v55 = vld [vmem:[#allocation2 + $0x9c] sm:$0xf]  ;;  %v1404_v56 = vld [vmem:[#allocation2 + $0x54] sm:$0xe] }
  0xb7   : > { %v1405_v57 = vld [vmem:[#allocation2 + $0x58] sm:$0xf]  ;;  %813 = vst.msk [vmem:[#allocation3 + $0x68] sm:$0xf] %vm226_vm0, %v781_v55  ;;  %v780_v59 = vld [vmem:[#allocation2 + $0x94] sm:$0xf]  ;;  %v1527_v0 = vsel %vm5565_vm13, %v4750_v53, %v1526_v54 }
  0xb8   : > { %1610 = vrot.lane.b32.xlu0 %v1513_v37, %s5125_s5  ;;  %v1528_v26 = vrot.slane %v1526_v54, 4  ;;  %v1529_v50 = vrot.slane %v1403_v38, 5  ;;  %812 = vst.msk [vmem:[#allocation3 + $0x64] sm:$0xf] %vm226_vm0, %v780_v59  ;;  %v1406_v62 = vld [vmem:[#allocation2 + $0x5c] sm:$0x1] }
  0xb9   : > { %v1261_v58 = vpop.permute.xlu1 %1260  ;;  %v1263_v61 = vpop.permute.xlu0 %1262  ;;  %v783_v63 = vld [vmem:[#allocation2 + $0xa8] sm:$0xf]  ;;  %v4751_v1 = vrot.slane %v1404_v56, 9  ;;  %v1533_v2 = vrot.slane %v1405_v57, 5  ;;  %v782_v3 = vld [vmem:[#allocation2 + $0xa0] sm:$0xf] }
  0xba   : > { %1612 = vrot.lane.b32.xlu1 %v1516_v46, %s5125_s5  ;;  %1354 = vst.msk [vmem:[#allocation3 + $0xc] sm:$0xf] %vm1350_vm14, %v1261_v58  ;;  %1355 = vst.msk [vmem:[#allocation3 + $0x10] sm:$0xf] %vm1350_vm14, %v1263_v61  ;;  %v1407_v4 = vld [vmem:[#allocation2 + $0x60] sm:$0xe]  ;;  %v1530_v9 = vsel %vm5565_vm13, %v1528_v26, %v1529_v50 }
  0xbb   : > { %815 = vst.msk [vmem:[#allocation3 + $0x70] sm:$0xf] %vm226_vm0, %v783_v63  ;;  %v1408_v6 = vld [vmem:[#allocation2 + $0x64] sm:$0xf]  ;;  %814 = vst.msk [vmem:[#allocation3 + $0x6c] sm:$0xf] %vm226_vm0, %v782_v3  ;;  %v1534_v14 = vsel %vm5565_vm13, %v4751_v1, %v1533_v2 }
  0xbc   : > { %1614 = vrot.lane.b32.xlu0 %v1520_v52, %s5125_s5  ;;  %v1535_v10 = vrot.slane %v1533_v2, 4  ;;  %v1536_v7 = vrot.slane %v1406_v62, 5  ;;  %v1409_v12 = vld [vmem:[#allocation2 + $0x68] sm:$0x1]  ;;  %v785_v13 = vld [vmem:[#allocation2 + $0xb4] sm:$0xf] }
  0xbd   : > { %v1265_v8 = vpop.permute.xlu1 %1264  ;;  %v1267_v11 = vpop.permute.xlu0 %1266  ;;  %v4752_v15 = vrot.slane %v1407_v4, 9  ;;  %v1540_v16 = vrot.slane %v1408_v6, 5  ;;  %817 = vst.msk [vmem:[#allocation3 + $0x78] sm:$0xf] %vm226_vm0, %v785_v13  ;;  %v784_v17 = vld [vmem:[#allocation2 + $0xac] sm:$0xf] }
  0xbe   : > { %1616 = vrot.lane.b32.xlu1 %v1523_v60, %s5125_s5  ;;  %1356 = vst.msk [vmem:[#allocation3 + $0x14] sm:$0xf] %vm1350_vm14, %v1265_v8  ;;  %1357 = vst.msk [vmem:[#allocation3 + $0x18] sm:$0xf] %vm1350_vm14, %v1267_v11  ;;  %v1410_v18 = vld [vmem:[#allocation2 + $0x6c] sm:$0xe]  ;;  %v1537_v20 = vsel %vm5565_vm13, %v1535_v10, %v1536_v7 }
  0xbf   : > { %v1411_v19 = vld [vmem:[#allocation2 + $0x70] sm:$0xf]  ;;  %816 = vst.msk [vmem:[#allocation3 + $0x74] sm:$0xf] %vm226_vm0, %v784_v17  ;;  %v1542_v21 = vrot.slane %v1540_v16, 4  ;;  %v1543_v23 = vrot.slane %v1409_v12, 5  ;;  %v1541_v28 = vsel %vm5565_vm13, %v4752_v15, %v1540_v16 }
  0xc0   : > { %1618 = vrot.lane.b32.xlu0 %v1527_v0, %s5125_s5  ;;  %v786_v25 = vld [vmem:[#allocation2 + $0xb8] sm:$0xf]  ;;  %v1412_v27 = vld [vmem:[#allocation2 + $0x74] sm:$0x1]  ;;  %v4753_v31 = vrot.slane %v1410_v18, 9  ;;  %v1547_v32 = vrot.slane %v1411_v19, 5 }
  0xc1   : > { %v1269_v49 = vpop.permute.xlu1 %1268  ;;  %v1271_v24 = vpop.permute.xlu0 %1270  ;;  %818 = vst.msk [vmem:[#allocation3 + $0x7c] sm:$0xf] %vm226_vm0, %v786_v25  ;;  %v1413_v33 = vld [vmem:[#allocation2 + $0x78] sm:$0xe]  ;;  %v1414_v36 = vld [vmem:[#allocation2 + $0x7c] sm:$0xf]  ;;  %v1544_v37 = vsel %vm5565_vm13, %v1542_v21, %v1543_v23 }
  0xc2   : > { %1620 = vrot.lane.b32.xlu1 %v1530_v9, %s5125_s5  ;;  %1358 = vst.msk [vmem:[#allocation3 + $0x1c] sm:$0xf] %vm1350_vm14, %v1269_v49  ;;  %1359 = vst.msk [vmem:[#allocation3 + $0x20] sm:$0xf] %vm1350_vm14, %v1271_v24  ;;  %v1549_v39 = vrot.slane %v1547_v32, 4  ;;  %v1550_v40 = vrot.slane %v1412_v27, 5  ;;  %v1548_v42 = vsel %vm5565_vm13, %v4753_v31, %v1547_v32 }
  0xc3   : > { %v1415_v41 = vld [vmem:[#allocation2 + $0x80] sm:$0x1]  ;;  %v4754_v43 = vrot.slane %v1413_v33, 9  ;;  %v1554_v44 = vrot.slane %v1414_v36, 5  ;;  %v1416_v35 = vld [vmem:[#allocation2 + $0x84] sm:$0xe] }
  0xc4   : > { %1622 = vrot.lane.b32.xlu0 %v1534_v14, %s5125_s5  ;;  %v1417_v46 = vld [vmem:[#allocation2 + $0x88] sm:$0xf]  ;;  %v1551_v47 = vsel %vm5565_vm13, %v1549_v39, %v1550_v40  ;;  %v1557_v48 = vrot.slane %v1415_v41, 5  ;;  %v1418_v51 = vld [vmem:[#allocation2 + $0x8c] sm:$0x1]  ;;  %v4755_v52 = vrot.slane %v1416_v35, 9 }
  0xc5   : > { %v1556_v5 = vrot.slane %v1554_v44, 4  ;;  %v1555_v38 = vsel %vm5565_vm13, %v4754_v43, %v1554_v44  ;;  %v1561_v53 = vrot.slane %v1417_v46, 5  ;;  %v1419_v54 = vld [vmem:[#allocation2 + $0x90] sm:$0xe]  ;;  %v1420_v55 = vld [vmem:[#allocation2 + $0x94] sm:$0xf] }
  0xc6   : > { %1624 = vrot.lane.b32.xlu1 %v1537_v20, %s5125_s5  ;;  %v1564_v59 = vrot.slane %v1418_v51, 5  ;;  %v1421_v60 = vld [vmem:[#allocation2 + $0x98] sm:$0x1]  ;;  %v4756_v50 = vrot.slane %v1419_v54, 9  ;;  %v1568_v61 = vrot.slane %v1420_v55, 5  ;;  %vm4087_vm1 = vcmask 1041408  }
  0xc7   : > { %v1558_v57 = vsel %vm5565_vm13, %v1556_v5, %v1557_v48  ;;  %v1563_v58 = vrot.slane %v1561_v53, 4  ;;  %v1562_v26 = vsel %vm5565_vm13, %v4755_v52, %v1561_v53  ;;  %v1422_v63 = vld [vmem:[#allocation2 + $0x9c] sm:$0xe]  ;;  %v1423_v0 = vld [vmem:[#allocation2 + $0xa0] sm:$0xf]  ;;  %v1571_v3 = vrot.slane %v1421_v60, 5 }
  0xc8   : > { %1626 = vrot.lane.b32.xlu0 %v1541_v28, %s5125_s5  ;;  %v1570_v2 = vrot.slane %v1568_v61, 4  ;;  %v1424_v4 = vld [vmem:[#allocation2 + $0xa4] sm:$0x1]  ;;  %v1569_v6 = vsel %vm5565_vm13, %v4756_v50, %v1568_v61  ;;  %v4757_v8 = vrot.slane %v1422_v63, 9  ;;  %v1575_v9 = vrot.slane %v1423_v0, 5 }
  0xc9   : > { %v1565_v1 = vsel %vm5565_vm13, %v1563_v58, %v1564_v59  ;;  %v1425_v7 = vld [vmem:[#allocation2 + $0xa8] sm:$0xe]  ;;  %v1426_v11 = vld [vmem:[#allocation2 + $0xac] sm:$0xf]  ;;  %v1578_v14 = vrot.slane %v1424_v4, 5  ;;  %vm1883_vm2 = vcmask 126048  }
  0xca   : > { %1628 = vrot.lane.b32.xlu1 %v1544_v37, %s5125_s5  ;;  %v1572_v12 = vsel %vm5565_vm13, %v1570_v2, %v1571_v3  ;;  %v1577_v13 = vrot.slane %v1575_v9, 4  ;;  %v1427_v16 = vld [vmem:[#allocation2 + $0xb0] sm:$0x1]  ;;  %v1576_v17 = vsel %vm5565_vm13, %v4757_v8, %v1575_v9  ;;  %v4758_v18 = vrot.slane %v1425_v7, 9  ;;  %v1428_v20 = vld [vmem:[#allocation2 + $0xb4] sm:$0xe] }
  0xcb   : > { %v1582_v19 = vrot.slane %v1426_v11, 5  ;;  %v1429_v21 = vld [vmem:[#allocation2 + $0xb8] sm:$0xf]  ;;  %v1585_v25 = vrot.slane %v1427_v16, 5  ;;  %v1430_v28 = vld [vmem:[#allocation2 + $0xbc] sm:$0x1] }
  0xcc   : > { %1630 = vrot.lane.b32.xlu0 %v1548_v42, %s5125_s5  ;;  %v1273_v56 = vpop.permute.xlu1 %1272  ;;  %v1579_v23 = vsel %vm5565_vm13, %v1577_v13, %v1578_v14  ;;  %v4759_v32 = vrot.slane %v1428_v20, 9  ;;  %v1589_v33 = vrot.slane %v1429_v21, 5  ;;  %v1592_v40 = vrot.slane %v1430_v28, 5  ;;  %v1723_v44 = vld [vmem:[#allocation2 + $0xc] sm:$0xf] }
  0xcd   : > { %1360 = vst.msk [vmem:[#allocation3 + $0x24] sm:$0xf] %vm1350_vm14, %v1273_v56  ;;  %v1584_v24 = vrot.slane %v1582_v19, 4  ;;  %v1583_v31 = vsel %vm5565_vm13, %v4758_v18, %v1582_v19  ;;  %v1724_v35 = vld [vmem:[#allocation2 + $0x10] sm:$0xf]  ;;  %vm2444_vm3 = vcmask 158848  }
  0xce   : > { %1632 = vrot.lane.b32.xlu1 %v1551_v47, %s5125_s5  ;;  %v1591_v39 = vrot.slane %v1589_v33, 4  ;;  %v1590_v42 = vsel %vm5565_vm13, %v4759_v32, %v1589_v33  ;;  %v1725_v46 = vld [vmem:[#allocation2 + $0x18] sm:$0xf]  ;;  %v1726_v47 = vld [vmem:[#allocation2 + $0x1c] sm:$0xf]  ;;  %vm2781_vm4 = vcmask 191648  }
  0xcf   : > { %v1275_v62 = vpop.permute.xlu0 %1274  ;;  %v1586_v37 = vsel %vm5565_vm13, %v1584_v24, %v1585_v25  ;;  %v1727_v48 = vld [vmem:[#allocation2 + $0x24] sm:$0xf]  ;;  %v1728_v51 = vld [vmem:[#allocation2 + $0x28] sm:$0xf]  ;;  %v1729_v52 = vld [vmem:[#allocation2 + $0x30] sm:$0xf] }
  0xd0   : > { %1634 = vrot.lane.b32.xlu0 %v1555_v38, %s5125_s5  ;;  %1361 = vst.msk [vmem:[#allocation3 + $0x28] sm:$0xf] %vm1350_vm14, %v1275_v62  ;;  %v1593_v43 = vsel %vm5565_vm13, %v1591_v39, %v1592_v40  ;;  %v1730_v54 = vld [vmem:[#allocation2 + $0x34] sm:$0xf]  ;;  %v1916_v56 = vld [vmem:[#allocation2 + $0xc] sm:$0xf] }
  0xd1   : > { %v1917_v59 = vld [vmem:[#allocation2 + $0x10] sm:$0xf]  ;;  %v1732_v60 = vld [vmem:[#allocation2 + $0x40] sm:$0xf]  ;;  %v1968_v50 = vshll.u32 %v1916_v56, 16  ;;  %vm2975_vm5 = vcmask 224448  }
  0xd2   : > { %1636 = vrot.lane.b32.xlu1 %v1558_v57, %s5125_s5  ;;  %v1731_v57 = vld [vmem:[#allocation2 + $0x3c] sm:$0xf]  ;;  %v1919_v62 = vld [vmem:[#allocation2 + $0x18] sm:$0xf]  ;;  %v1733_v63 = vld [vmem:[#allocation2 + $0x48] sm:$0xf] }
  0xd3   : > { %v1974_v0 = vshll.u32 %v1917_v59, 16  ;;  %v1920_v3 = vld [vmem:[#allocation2 + $0x1c] sm:$0xf]  ;;  %v1734_v4 = vld [vmem:[#allocation2 + $0x4c] sm:$0xf]  ;;  %v1970_v8 = vrot.slane %v1968_v50, 5 }
  0xd4   : > { %1638 = vrot.lane.b32.xlu0 %v1562_v26, %s5125_s5  ;;  %v1277_v10 = vpop.permute.xlu1 %1276  ;;  %v1965_v26 = vshrl.u32 %v1916_v56, 16  ;;  %v1989_v9 = vshrl.u32 %v1919_v62, 16  ;;  %v1735_v11 = vld [vmem:[#allocation2 + $0x54] sm:$0xf]  ;;  %v1998_v14 = vshll.u32 %v1920_v3, 16  ;;  %vm3536_vm6 = vcmask 257248  }
  0xd5   : > { %1362 = vst.msk [vmem:[#allocation3 + $0x2c] sm:$0xf] %vm1350_vm14, %v1277_v10  ;;  %v1992_v10 = vshll.u32 %v1919_v62, 16  ;;  %v1918_v16 = vld [vmem:[#allocation2 + $0x14] sm:$0x1]  ;;  %vm3873_vm11 = vcmask 290048  }
  0xd6   : > { %1640 = vrot.lane.b32.xlu1 %v1565_v1, %s5125_s5  ;;  %v1279_v15 = vpop.permute.xlu0 %1278  ;;  %v1978_v1 = vshrl.u32 %v1917_v59, 16  ;;  %v1991_v19 = vrot.slane %v1989_v9, 4  ;;  %v1737_v20 = vld [vmem:[#allocation2 + $0x60] sm:$0xf]  ;;  %v2000_v24 = vrot.slane %v1998_v14, 5  ;;  %vm4038_vm12 = vcmask 293888  }
  0xd7   : > { %1363 = vst.msk [vmem:[#allocation3 + $0x30] sm:$0xf] %vm1350_vm14, %v1279_v15  ;;  %v2002_v15 = vshrl.u32 %v1920_v3, 16  ;;  %v1738_v28 = vld [vmem:[#allocation2 + $0x64] sm:$0xf] }
  0xd8   : > { %1642 = vrot.lane.b32.xlu0 %v1569_v6, %s5125_s5  ;;  %v1281_v49 = vpop.permute.xlu1 %1280  ;;  %v1967_v6 = vrot.slane %v1965_v26, 4  ;;  %v1980_v13 = vrot.slane %v1978_v1, 4  ;;  %v1739_v33 = vld [vmem:[#allocation2 + $0x6c] sm:$0xf]  ;;  %v2480_v56 = vld [vmem:[#allocation2 + $0x18] sm:$0xe] }
  0xd9   : > { %1364 = vst.msk [vmem:[#allocation3 + $0x34] sm:$0xf] %vm1350_vm14, %v1281_v49  ;;  %v1994_v49 = vrot.slane %v1992_v10, 5  ;;  %v2004_v25 = vrot.slane %v2002_v15, 4  ;;  %v2482_v26 = vld [vmem:[#allocation2 + $0x20] sm:$0x1] }
  0xda   : > { %1644 = vrot.lane.b32.xlu1 %v1572_v12, %s5125_s5  ;;  %v1283_v27 = vpop.permute.xlu0 %1282  ;;  %v1976_v12 = vrot.slane %v1974_v0, 5  ;;  %v1971_v18 = vor.u32 %v1970_v8, %v1967_v6  ;;  %v3009_v50 = vld [vmem:[#allocation2 + $0x1c] sm:$0xf]  ;;  %v2585_v6 = vrot.slane %v2482_v26, 5  ;;  %v3012_v10 = vld [vmem:[#allocation2 + $0x28] sm:$0xf] }
  0xdb   : > { %1365 = vst.msk [vmem:[#allocation3 + $0x38] sm:$0xf] %vm1350_vm14, %v1283_v27  ;;  %v1921_v27 = vld [vmem:[#allocation2 + $0x20] sm:$0x1]  ;;  %v1995_v32 = vor.u32 %v1994_v49, %v1991_v19  ;;  %v2005_v39 = vor.u32 %v2004_v25, %v2000_v24  ;;  %v3066_v8 = vshll.u32 %v3009_v50, 16  ;;  %v3070_v9 = vshrl.u32 %v3009_v50, 16 }
  0xdc   : > { %1646 = vrot.lane.b32.xlu0 %v1576_v17, %s5125_s5  ;;  %v1285_v36 = vpop.permute.xlu1 %1284  ;;  %v1736_v17 = vld [vmem:[#allocation2 + $0x58] sm:$0xf]  ;;  %v1981_v21 = vor.u32 %v1980_v13, %v1976_v12  ;;  %v2008_v40 = vshll.u32 %v1921_v27, 16  ;;  %v2832_v45 = vld [vmem:[#allocation2 + $0x7c] sm:$0xf] }
  0xdd   : > { %1366 = vst.msk [vmem:[#allocation3 + $0x3c] sm:$0xf] %vm1350_vm14, %v1285_v36  ;;  %v5766_v49 = vrot.slane %v3066_v8, 5  ;;  %v2815_v27 = vld [vmem:[#allocation2 + $0x18] sm:$0xf] }
  0xde   : > { %1648 = vrot.lane.b32.xlu1 %v1579_v23, %s5125_s5  ;;  %v1287_v41 = vpop.permute.xlu0 %1286  ;;  %v1984_v23 = vshll.u32 %v1918_v16, 16  ;;  %v1982_v36 = vrot.slane %v1981_v21, 4 }
  0xdf   : > { %1367 = vst.msk [vmem:[#allocation3 + $0x40] sm:$0xf] %vm1350_vm14, %v1287_v41  ;;  %v2478_v41 = vld [vmem:[#allocation2 + $0x10] sm:$0xf] }
  0xe0   : > { %1650 = vrot.lane.b32.xlu0 %v1583_v31, %s5125_s5  ;;  %v1972_v31 = vrot.slane %v1971_v18, 4  ;;  %v3094_v18 = vshrl.u32 %v3012_v10, 16 }
  0xe2   : > { %1652 = vrot.lane.b32.xlu1 %v1586_v37, %s5125_s5  ;;  %v1986_v37 = vrot.slane %v1984_v23, 5  ;;  %v3010_v23 = vld [vmem:[#allocation2 + $0x20] sm:$0x1] }
  0xe4   : > { %1654 = vrot.lane.b32.xlu0 %v1590_v42, %s5125_s5  ;;  %v1977_v42 = vsel %vm5295_vm9, %v1972_v31, %v1976_v12 }
  0xe6   : > { %1656 = vrot.lane.b32.xlu1 %v1593_v43, %s5125_s5  ;;  %v1996_v43 = vrot.slane %v1995_v32, 4  ;;  %s6405_s5 = scalar_lea.vmem %s6643_s2, %s4863_s27  ;;  %s4739_s27 = sshll.u32 %s201_s26, 1 }
  0xe8   : > { %1787 = vrot.lane.b32.xlu0 %v1723_v44, %s5126_s6 }
  0xea   : > { %1789 = vrot.lane.b32.xlu1 %v1724_v35, %s5126_s6  ;;  %v2575_v35 = vrot.slane %v2478_v41, 5 }
  0xeb   : > { %v1289_v5 = vpop.permute.xlu1 %1288 }
  0xec   : > { %1791 = vrot.lane.b32.xlu0 %v1725_v46, %s5126_s6  ;;  %1368 = vst.msk [vmem:[#allocation3 + $0x44] sm:$0xf] %vm1350_vm14, %v1289_v5  ;;  %v2477_v46 = vld [vmem:[#allocation2 + $0xc] sm:$0xe]  ;;  %v2006_v5 = vrot.slane %v2005_v39, 4  ;;  %v3076_v39 = vshll.u32 %v3010_v23, 16 }
  0xee   : > { %1793 = vrot.lane.b32.xlu1 %v1726_v47, %s5126_s6  ;;  %v1291_v38 = vpop.permute.xlu0 %1290  ;;  %v1987_v47 = vsel %vm5295_vm9, %v1982_v36, %v1986_v37  ;;  %v2816_v36 = vld [vmem:[#allocation2 + $0x1c] sm:$0xf] }
  0xef   : > { %1369 = vst.msk [vmem:[#allocation3 + $0x48] sm:$0xf] %vm1350_vm14, %v1291_v38  ;;  %v2481_v38 = vld [vmem:[#allocation2 + $0x1c] sm:$0xf] }
  0xf0   : > { %1795 = vrot.lane.b32.xlu0 %v1727_v48, %s5126_s6  ;;  %v1293_v53 = vpop.permute.xlu1 %1292  ;;  %v2010_v48 = vrot.slane %v2008_v40, 5  ;;  %v2582_v59 = vrot.slane %v2481_v38, 5  ;;  %v3013_v40 = vld [vmem:[#allocation2 + $0x2c] sm:$0x1]  ;;  %v3078_v38 = vrot.slane %v3076_v39, 5 }
  0xf1   : > { %1370 = vst.msk [vmem:[#allocation3 + $0x4c] sm:$0xf] %vm1350_vm14, %v1293_v53  ;;  %v4760_v53 = vrot.slane %v2477_v46, 9 }
  0xf2   : > { %1797 = vrot.lane.b32.xlu1 %v1728_v51, %s5126_s6  ;;  %v2479_v51 = vld [vmem:[#allocation2 + $0x14] sm:$0x1] }
  0xf3   : > { %v1295_v55 = vpop.permute.xlu0 %1294  ;;  %v2576_v62 = vsel %vm5565_vm13, %v4760_v53, %v2575_v35 }
  0xf4   : > { %1799 = vrot.lane.b32.xlu0 %v1729_v52, %s5126_s6  ;;  %1371 = vst.msk [vmem:[#allocation3 + $0x50] sm:$0xf] %vm1350_vm14, %v1295_v55  ;;  %v2001_v52 = vsel %vm5295_vm9, %v1996_v43, %v2000_v24  ;;  %v2578_v55 = vrot.slane %v2479_v51, 5  ;;  %v2817_v43 = vld [vmem:[#allocation2 + $0x24] sm:$0xf] }
  0xf6   : > { %1801 = vrot.lane.b32.xlu1 %v1730_v54, %s5126_s6  ;;  %v1297_v58 = vpop.permute.xlu1 %1296  ;;  %v2577_v54 = vrot.slane %v2575_v35, 4 }
  0xf7   : > { %1372 = vst.msk [vmem:[#allocation3 + $0x54] sm:$0xf] %vm1350_vm14, %v1297_v58  ;;  %v1299_v61 = vpop.permute.xlu0 %1298  ;;  %v2011_v58 = vsel %vm5295_vm9, %v2006_v5, %v2010_v48  ;;  %v1922_v5 = vld [vmem:[#allocation2 + $0x24] sm:$0xf]  ;;  %v2818_v48 = vld [vmem:[#allocation2 + $0x28] sm:$0xf] }
  0xf8   : > { %1803 = vrot.lane.b32.xlu0 %v1731_v57, %s5126_s6  ;;  %1373 = vst.msk [vmem:[#allocation3 + $0x58] sm:$0xf] %vm1350_vm14, %v1299_v61  ;;  %v3008_v57 = vld [vmem:[#allocation2 + $0x18] sm:$0xf]  ;;  %v2579_v3 = vsel %vm5565_vm13, %v2577_v54, %v2578_v55  ;;  %v1923_v55 = vld [vmem:[#allocation2 + $0x28] sm:$0xf] }
  0xf9   : > { %v3057_v0 = vshrl.u32 %v3008_v57, 16  ;;  %v3060_v1 = vshll.u32 %v3008_v57, 16 }
  0xfa   : > { %1805 = vrot.lane.b32.xlu1 %v1732_v60, %s5126_s6  ;;  %v1301_v2 = vpop.permute.xlu1 %1300 }
  0xfb   : > { %1374 = vst.msk [vmem:[#allocation3 + $0x5c] sm:$0xf] %vm1350_vm14, %v1301_v2  ;;  %v1303_v7 = vpop.permute.xlu0 %1302  ;;  %v3011_v2 = vld [vmem:[#allocation2 + $0x24] sm:$0xf]  ;;  %v3059_v14 = vrot.slane %v3057_v0, 4  ;;  %v3062_v15 = vrot.slane %v3060_v1, 5 }
  0xfc   : > { %1807 = vrot.lane.b32.xlu0 %v1733_v63, %s5126_s6  ;;  %1375 = vst.msk [vmem:[#allocation3 + $0x60] sm:$0xf] %vm1350_vm14, %v1303_v7  ;;  %v4761_v63 = vrot.slane %v2480_v56, 9  ;;  %v3084_v12 = vshll.u32 %v3011_v2, 16 }
  0xfd   : > { %v5026_v56 = vld [vmem:[%s6642_s1 + $0x10] ss:$0 sps:$4 sm:$0x33]  }
  0xfe   : > { %1809 = vrot.lane.b32.xlu1 %v1734_v4, %s5126_s6  ;;  %v2584_v4 = vrot.slane %v2582_v59, 4  ;;  %v2583_v13 = vsel %vm5565_vm13, %v4761_v63, %v2582_v59  ;;  %v3086_v25 = vrot.slane %v3084_v12, 5  ;;  %v2013_v59 = vshrl.u32 %v1922_v5, 16  ;;  %v1925_v63 = vld [vmem:[#allocation2 + $0x30] sm:$0xf]  ;;  %4960 = vmatprep.subr.msk.bf16.mxu0 %vm4087_vm1, %v5026_v56 }
  0xff   : > { %v4089_v0 = vsel %vm4087_vm1, %v5026_v56, 0  ;;  %4961 = vmatprep.subr.msk.bf16.mxu1 %vm4087_vm1, %v5026_v56 }
 0x100   : > { %1811 = vrot.lane.b32.xlu0 %v1735_v11, %s5126_s6  ;;  %v3081_v11 = vshrl.u32 %v3011_v2, 16  ;;  %v2586_v19 = vsel %vm5565_vm13, %v2584_v4, %v2585_v6  ;;  %v3571_v2 = vld [vmem:[#allocation2 + $0x20] sm:$0x1]  ;;  %v2022_v4 = vshll.u32 %v1923_v55, 16  ;;  %v2026_v6 = vshrl.u32 %v1923_v55, 16  ;;  %4917 = vmatpush3.bf16.msra.mxu0 %v4089_v0 }
 0x101   : > { %4957 = vmatpush3.bf16.msra.mxu1 %v4089_v0  ;;  %v2015_v12 = vrot.slane %v2013_v59, 4  ;;  %v2483_v0 = vld [vmem:[#allocation2 + $0x24] sm:$0xe] }
 0x102   : > { %1813 = vrot.lane.b32.xlu1 %v1736_v17, %s5126_s6  ;;  %v3090_v17 = vshll.u32 %v3012_v10, 16  ;;  %v3083_v24 = vrot.slane %v3081_v11, 4  ;;  %v5027_v11 = vld [vmem:[%s6642_s1 + $0x8] sm:$0xff]   ;;  %v5810_v23 = vrot.slane %v2022_v4, 5 }
 0x103   : > { %4918 = vmatprep.subr.bf16.mxu0 %v5027_v11  ;;  %4955 = vmatprep.subr.bf16.mxu1 %v5027_v11  ;;  %v2485_v4 = vld [vmem:[#allocation2 + $0x2c] sm:$0x1] }
 0x104   : > { %1815 = vrot.lane.b32.xlu0 %v1737_v20, %s5126_s6  ;;  %v3072_v20 = vrot.slane %v3070_v9, 4  ;;  %v5771_v32 = vrot.slane %v3090_v17, 5  ;;  %4919 = vmatpush3.bf16.msra.mxu0 %v5027_v11 }
 0x105   : > { %4958 = vmatpush3.bf16.msra.mxu1 %v5027_v11 }
 0x106   : > { %1817 = vrot.lane.b32.xlu1 %v1738_v28, %s5126_s6  ;;  %v3063_v28 = vor.u32 %v3062_v15, %v3059_v14  ;;  %v3073_v37 = vor.u32 %v3072_v20, %v5766_v49  ;;  %v2037_v14 = vshrl.u32 %v1925_v63, 16  ;;  %v2040_v15 = vshll.u32 %v1925_v63, 16  ;;  %v3572_v20 = vld [vmem:[#allocation2 + $0x24] sm:$0xe] }
 0x108   : > { %1819 = vrot.lane.b32.xlu0 %v1739_v33, %s5126_s6  ;;  %v1305_v44 = vpop.permute.xlu1 %1304  ;;  %v3096_v33 = vrot.slane %v3094_v18, 4  ;;  %v3074_v51 = vrot.slane %v3073_v37, 4  ;;  %v2039_v39 = vrot.slane %v2037_v14, 4  ;;  %v3014_v14 = vld [vmem:[#allocation2 + $0x30] sm:$0xf] }
 0x109   : > { %1376 = vst.msk [vmem:[#allocation3 + $0x64] sm:$0xf] %vm1350_vm14, %v1305_v44  ;;  %v3064_v44 = vrot.slane %v3063_v28, 4 }
 0x10a   : > { %2348 = vrot.lane.b32.xlu1 %v1977_v42, %s5127_s7  ;;  %v3087_v42 = vor.u32 %v3086_v25, %v3083_v24  ;;  %v3097_v46 = vor.u32 %v3096_v33, %v5771_v32  ;;  %v3079_v1 = vsel %vm5295_vm9, %v3074_v51, %v3078_v38  ;;  %v2028_v24 = vrot.slane %v2026_v6, 4  ;;  %v5028_v33 = vld [vmem:[%s6642_s1] sm:$0xff]   ;;  %v1927_v51 = vld [vmem:[#allocation2 + $0x38] sm:$0x1] }
 0x10b   : > { %v3069_v57 = vsel %vm5295_vm9, %v3064_v44, %v5766_v49  ;;  %4920 = vmatprep.subr.bf16.mxu0 %v5028_v33  ;;  %4956 = vmatprep.subr.bf16.mxu1 %v5028_v33  ;;  %v2056_v59 = vshll.u32 %v1927_v51, 16 }
 0x10c   : > { %2350 = vrot.lane.b32.xlu0 %v1987_v47, %s5127_s7  ;;  %v3100_v47 = vshll.u32 %v3013_v40, 16  ;;  %v3088_v54 = vrot.slane %v3087_v42, 4  ;;  %v3098_v50 = vrot.slane %v3097_v46, 4  ;;  %v2042_v40 = vrot.slane %v2040_v15, 5  ;;  %4921 = vmatpush3.bf16.msra.mxu0 %v5028_v33 }
 0x10d   : > { %4959 = vmatpush3.bf16.msra.mxu1 %v5028_v33 }
 0x10e   : > { %v1307_v60 = vpop.permute.xlu0 %1306  ;;  %2352 = vrot.lane.b32.xlu1 %v2001_v52, %s5127_s7  ;;  %v3570_v52 = vld [vmem:[#allocation2 + $0x1c] sm:$0xf]  ;;  %v3093_v9 = vsel %vm5295_vm9, %v3088_v54, %v5771_v32  ;;  %v1924_v32 = vld [vmem:[#allocation2 + $0x2c] sm:$0x1] }
 0x10f   : > { %1377 = vst.msk [vmem:[#allocation3 + $0x68] sm:$0xf] %vm1350_vm14, %v1307_v60  ;;  %v1309_v61 = vpop.permute.xlu1 %1308  ;;  %v2016_v60 = vshll.u32 %v1922_v5, 16  ;;  %v2032_v46 = vshll.u32 %v1924_v32, 16 }
 0x110   : > { %2354 = vrot.lane.b32.xlu0 %v2011_v58, %s5127_s7  ;;  %1378 = vst.msk [vmem:[#allocation3 + $0x6c] sm:$0xf] %vm1350_vm14, %v1309_v61  ;;  %v3569_v58 = vld [vmem:[#allocation2 + $0x18] sm:$0xe]  ;;  %v3102_v61 = vrot.slane %v3100_v47, 5 }
 0x111   : > { %v4776_v10 = vrot.slane %v3569_v58, 9 }
 0x112   : > { %v1311_v7 = vpop.permute.xlu0 %1310  ;;  %2685 = vrot.lane.b32.xlu1 %v2576_v62, %s5128_s8  ;;  %v3667_v62 = vrot.slane %v3570_v52, 5  ;;  %v3103_v17 = vsel %vm5295_vm9, %v3098_v50, %v3102_v61 }
 0x113   : > { %1379 = vst.msk [vmem:[#allocation3 + $0x70] sm:$0xf] %vm1350_vm14, %v1311_v7  ;;  %v1926_v7 = vld [vmem:[#allocation2 + $0x34] sm:$0xf] }
 0x114   : > { %2687 = vrot.lane.b32.xlu0 %v2579_v3, %s5128_s8  ;;  %v1313_v16 = vpop.permute.xlu1 %1312  ;;  %v5794_v3 = vld [vmem:[#allocation2 + $0x28] sm:$0xf]  ;;  %v3669_v18 = vrot.slane %v3667_v62, 4  ;;  %v2046_v25 = vshll.u32 %v1926_v7, 16 }
 0x115   : > { %1380 = vst.msk [vmem:[#allocation3 + $0x74] sm:$0xf] %vm1350_vm14, %v1313_v16  ;;  %v3674_v49 = vrot.slane %v5794_v3, 5  ;;  %v2058_v3 = vrot.slane %v2056_v59, 5  ;;  %v2820_v59 = vld [vmem:[#allocation2 + $0x34] sm:$0xf] }
 0x116   : > { %v1315_v21 = vpop.permute.xlu0 %1314  ;;  %2689 = vrot.lane.b32.xlu1 %v2583_v13, %s5128_s8  ;;  %v2018_v13 = vrot.slane %v2016_v60, 5  ;;  %v2048_v47 = vrot.slane %v2046_v25, 5  ;;  %v2484_v60 = vld [vmem:[#allocation2 + $0x28] sm:$0xf] }
 0x117   : > { %1381 = vst.msk [vmem:[#allocation3 + $0x78] sm:$0xf] %vm1350_vm14, %v1315_v21  ;;  %v3574_v21 = vld [vmem:[#allocation2 + $0x2c] sm:$0x1]  ;;  %v2589_v63 = vrot.slane %v2484_v60, 5 }
 0x118   : > { %2691 = vrot.lane.b32.xlu0 %v2586_v19, %s5128_s8  ;;  %v1317_v31 = vpop.permute.xlu1 %1316  ;;  %v3670_v19 = vrot.slane %v3571_v2, 5  ;;  %v2019_v37 = vor.u32 %v2018_v13, %v2015_v12  ;;  %v3677_v44 = vrot.slane %v3574_v21, 5  ;;  %v2592_v12 = vrot.slane %v2485_v4, 5  ;;  %v2486_v13 = vld [vmem:[#allocation2 + $0x30] sm:$0xe] }
 0x119   : > { %1382 = vst.msk [vmem:[#allocation3 + $0x7c] sm:$0xf] %vm1350_vm14, %v1317_v31  ;;  %v3668_v31 = vsel %vm5565_vm13, %v4776_v10, %v3667_v62  ;;  %v4762_v10 = vrot.slane %v2483_v0, 9  ;;  %v2591_v11 = vrot.slane %v2589_v63, 4  ;;  %v3105_v21 = vshrl.u32 %v3014_v14, 16 }
 0x11a   : > { %v1595_v41 = vpop.permute.xlu0 %1594  ;;  %2879 = vrot.lane.b32.xlu1 %v2815_v27, %s5129_s9  ;;  %v2050_v27 = vshrl.u32 %v1926_v7, 16  ;;  %v3671_v42 = vsel %vm5565_vm13, %v3669_v18, %v3670_v19  ;;  %v2020_v52 = vrot.slane %v2019_v37, 4  ;;  %v2488_v18 = vld [vmem:[#allocation2 + $0x38] sm:$0x1]  ;;  %v3015_v19 = vld [vmem:[#allocation2 + $0x34] sm:$0xf] }
 0x11b   : > { %1691 = vst.msk [vmem:[#allocation3] sm:$0xf] %vm1690_vm15, %v1595_v41  ;;  %v3114_v32 = vshll.u32 %v3015_v19, 16  ;;  %v3118_v33 = vshrl.u32 %v3015_v19, 16  ;;  %v1928_v4 = vld [vmem:[#allocation2 + $0x3c] sm:$0xf] }
 0x11c   : > { %2881 = vrot.lane.b32.xlu0 %v2816_v36, %s5129_s9  ;;  %v1597_v35 = vpop.permute.xlu1 %1596  ;;  %v4777_v36 = vrot.slane %v3572_v20, 9  ;;  %v2052_v5 = vrot.slane %v2050_v27, 4  ;;  %v2025_v50 = vsel %vm5295_vm9, %v2020_v52, %v5810_v23  ;;  %v4763_v20 = vrot.slane %v2486_v13, 9 }
 0x11d   : > { %1692 = vst.msk [vmem:[#allocation3 + $0x4] sm:$0xf] %vm1690_vm15, %v1597_v35  ;;  %v2029_v35 = vor.u32 %v2028_v24, %v5810_v23  ;;  %v3108_v23 = vshll.u32 %v3014_v14, 16  ;;  %v3017_v24 = vld [vmem:[#allocation2 + $0x3c] sm:$0xf]  ;;  %v2593_v27 = vsel %vm5565_vm13, %v2591_v11, %v2592_v12 }
 0x11e   : > { %v1599_v53 = vpop.permute.xlu0 %1598  ;;  %2883 = vrot.lane.b32.xlu1 %v2817_v43, %s5129_s9  ;;  %v3676_v43 = vrot.slane %v3674_v49, 4  ;;  %v3675_v38 = vsel %vm5565_vm13, %v4777_v36, %v3674_v49  ;;  %v2053_v58 = vor.u32 %v2052_v5, %v2048_v47  ;;  %v2590_v49 = vsel %vm5565_vm13, %v4762_v10, %v2589_v63  ;;  %v3018_v36 = vld [vmem:[#allocation2 + $0x40] sm:$0xf]  ;;  %v2821_v63 = vld [vmem:[#allocation2 + $0x3c] sm:$0xf] }
 0x11f   : > { %1693 = vst.msk [vmem:[#allocation3 + $0x8] sm:$0xf] %vm1690_vm15, %v1599_v53  ;;  %v2043_v53 = vor.u32 %v2042_v40, %v2039_v39  ;;  %v2030_v56 = vrot.slane %v2029_v35, 4  ;;  %v3129_v39 = vshrl.u32 %v3017_v24, 16  ;;  %v3132_v40 = vshll.u32 %v3017_v24, 16 }
 0x120   : > { %2885 = vrot.lane.b32.xlu0 %v2818_v48, %s5129_s9  ;;  %v1601_v26 = vpop.permute.xlu1 %1600  ;;  %v3678_v55 = vsel %vm5565_vm13, %v3676_v43, %v3677_v44  ;;  %v2054_v2 = vrot.slane %v2053_v58, 4  ;;  %v3110_v43 = vrot.slane %v3108_v23, 5  ;;  %v3138_v35 = vshll.u32 %v3018_v36, 16  ;;  %v3576_v10 = vld [vmem:[#allocation2 + $0x34] sm:$0xf] }
 0x121   : > { %1694 = vst.msk [vmem:[#allocation3 + $0xc] sm:$0xf] %vm1690_vm15, %v1601_v26  ;;  %v2044_v61 = vrot.slane %v2043_v53, 4  ;;  %v3116_v5 = vrot.slane %v3114_v32, 5  ;;  %v3131_v52 = vrot.slane %v3129_v39, 4  ;;  %v3134_v53 = vrot.slane %v3132_v40, 5 }
 0x122   : > { %v1603_v8 = vpop.permute.xlu0 %1602  ;;  %3440 = vrot.lane.b32.xlu1 %v3069_v57, %s5130_s18  ;;  %v2034_v57 = vrot.slane %v2032_v46, 5  ;;  %v2059_v15 = vsel %vm5295_vm9, %v2054_v2, %v2058_v3  ;;  %v3142_v46 = vshrl.u32 %v3018_v36, 16  ;;  %v1929_v12 = vld [vmem:[#allocation2 + $0x40] sm:$0xf]  ;;  %v3575_v14 = vld [vmem:[#allocation2 + $0x30] sm:$0xe] }
 0x123   : > { %1695 = vst.msk [vmem:[#allocation3 + $0x10] sm:$0xf] %vm1690_vm15, %v1603_v8  ;;  %v2487_v8 = vld [vmem:[#allocation2 + $0x34] sm:$0xf]  ;;  %v3577_v23 = vld [vmem:[#allocation2 + $0x38] sm:$0x1] }
 0x124   : > { %3442 = vrot.lane.b32.xlu0 %v3079_v1, %s5130_s18  ;;  %v1605_v16 = vpop.permute.xlu1 %1604  ;;  %v2035_v1 = vsel %vm5295_vm9, %v2030_v56, %v2034_v57  ;;  %v5868_v57 = vrot.slane %v3138_v35, 5  ;;  %v3144_v58 = vrot.slane %v3142_v46, 4  ;;  %v3579_v24 = vld [vmem:[#allocation2 + $0x40] sm:$0xf]  ;;  %v4778_v32 = vrot.slane %v3575_v14, 9 }
 0x125   : > { %1696 = vst.msk [vmem:[#allocation3 + $0x14] sm:$0xf] %vm1690_vm15, %v1605_v16  ;;  %v2596_v16 = vrot.slane %v2487_v8, 5  ;;  %v3688_v35 = vrot.slane %v3579_v24, 5  ;;  %v3578_v46 = vld [vmem:[#allocation2 + $0x3c] sm:$0xe] }
 0x126   : > { %v1607_v28 = vpop.permute.xlu0 %1606  ;;  %3444 = vrot.lane.b32.xlu1 %v3093_v9, %s5130_s18  ;;  %v2049_v9 = vsel %vm5295_vm9, %v2044_v61, %v2048_v47  ;;  %v3145_v2 = vor.u32 %v3144_v58, %v5868_v57  ;;  %v2490_v14 = vld [vmem:[#allocation2 + $0x40] sm:$0xf]  ;;  %v2491_v24 = vld [vmem:[#allocation2 + $0x44] sm:$0x1] }
 0x127   : > { %1697 = vst.msk [vmem:[#allocation3 + $0x18] sm:$0xf] %vm1690_vm15, %v1607_v28  ;;  %v2598_v28 = vrot.slane %v2596_v16, 4 }
 0x128   : > { %3446 = vrot.lane.b32.xlu0 %v3103_v17, %s5130_s18  ;;  %v1609_v41 = vpop.permute.xlu1 %1608 }
 0x129   : > { %1698 = vst.msk [vmem:[#allocation3 + $0x1c] sm:$0xf] %vm1690_vm15, %v1609_v41  ;;  %v2597_v41 = vsel %vm5565_vm13, %v4763_v20, %v2596_v16  ;;  %v2064_v16 = vshll.u32 %v1928_v4, 16  ;;  %v1931_v20 = vld [vmem:[#allocation2 + $0x48] sm:$0xf] }
 0x12a   : > { %v1611_v48 = vpop.permute.xlu0 %1610  ;;  %3777 = vrot.lane.b32.xlu1 %v3668_v31, %s5131_s29  ;;  %v2599_v31 = vrot.slane %v2488_v18, 5  ;;  %v3146_v18 = vrot.slane %v3145_v2, 4  ;;  %v2085_v39 = vshrl.u32 %v1931_v20, 16  ;;  %v2088_v40 = vshll.u32 %v1931_v20, 16  ;;  %v1933_v2 = vld [vmem:[#allocation2 + $0x50] sm:$0x1] }
 0x12b   : > { %1699 = vst.msk [vmem:[#allocation3 + $0x20] sm:$0xf] %vm1690_vm15, %v1611_v48  ;;  %v3120_v48 = vrot.slane %v3118_v33, 4  ;;  %v1932_v33 = vld [vmem:[#allocation2 + $0x4c] sm:$0xf] }
 0x12c   : > { %3779 = vrot.lane.b32.xlu0 %v3671_v42, %s5131_s29  ;;  %v1613_v54 = vpop.permute.xlu1 %1612  ;;  %v3107_v42 = vrot.slane %v3105_v21, 4  ;;  %v2600_v47 = vsel %vm5565_vm13, %v2598_v28, %v2599_v31  ;;  %v2090_v58 = vrot.slane %v2088_v40, 5  ;;  %v2494_v40 = vld [vmem:[#allocation2 + $0x50] sm:$0x1] }
 0x12d   : > { %1700 = vst.msk [vmem:[#allocation3 + $0x24] sm:$0xf] %vm1690_vm15, %v1613_v54  ;;  %v2819_v54 = vld [vmem:[#allocation2 + $0x30] sm:$0xf]  ;;  %v3121_v60 = vor.u32 %v3120_v48, %v3116_v5 }
 0x12e   : > { %v1615_v26 = vpop.permute.xlu0 %1614  ;;  %3781 = vrot.lane.b32.xlu1 %v3675_v38, %s5131_s29  ;;  %v3016_v38 = vld [vmem:[#allocation2 + $0x38] sm:$0x1] }
 0x12f   : > { %1701 = vst.msk [vmem:[#allocation3 + $0x28] sm:$0xf] %vm1690_vm15, %v1615_v26  ;;  %v3124_v26 = vshll.u32 %v3016_v38, 16  ;;  %v3122_v8 = vrot.slane %v3121_v60, 4  ;;  %v2098_v38 = vshrl.u32 %v1932_v33, 16 }
 0x130   : > { %3783 = vrot.lane.b32.xlu0 %v3678_v55, %s5131_s29  ;;  %v1617_v62 = vpop.permute.xlu1 %1616  ;;  %v3111_v55 = vor.u32 %v3110_v43, %v3107_v42 }
 0x131   : > { %1702 = vst.msk [vmem:[#allocation3 + $0x2c] sm:$0xf] %vm1690_vm15, %v1617_v62  ;;  %v3135_v62 = vor.u32 %v3134_v53, %v3131_v52 }
 0x132   : > { %v1619_v6 = vpop.permute.xlu0 %1618  ;;  %2356 = vrot.lane.b32.xlu1 %v2025_v50, %s5127_s7  ;;  %v3019_v50 = vld [vmem:[#allocation2 + $0x44] sm:$0x1]  ;;  %v3112_v0 = vrot.slane %v3111_v55, 4  ;;  %v4779_v55 = vrot.slane %v3578_v46, 9 }
 0x133   : > { %1703 = vst.msk [vmem:[#allocation3 + $0x30] sm:$0xf] %vm1690_vm15, %v1619_v6  ;;  %v3148_v3 = vshll.u32 %v3019_v50, 16  ;;  %v2822_v6 = vld [vmem:[#allocation2 + $0x40] sm:$0xf]  ;;  %v3136_v11 = vrot.slane %v3135_v62, 4 }
 0x134   : > { %2358 = vrot.lane.b32.xlu0 %v2035_v1, %s5127_s7  ;;  %v1621_v7 = vpop.permute.xlu1 %1620  ;;  %v3117_v13 = vsel %vm5295_vm9, %v3112_v0, %v3116_v5  ;;  %v2100_v0 = vrot.slane %v2098_v38, 4 }
 0x135   : > { %1704 = vst.msk [vmem:[#allocation3 + $0x34] sm:$0xf] %vm1690_vm15, %v1621_v7  ;;  %v3150_v19 = vrot.slane %v3148_v3, 5  ;;  %v3141_v31 = vsel %vm5295_vm9, %v3136_v11, %v5868_v57  ;;  %v2087_v57 = vrot.slane %v2085_v39, 4  ;;  %v3689_v3 = vsel %vm5565_vm13, %v4779_v55, %v3688_v35  ;;  %v3024_v55 = vld [vmem:[#allocation2 + $0x58] sm:$0xf] }
 0x136   : > { %v1623_v17 = vpop.permute.xlu0 %1622  ;;  %2360 = vrot.lane.b32.xlu1 %v2049_v9, %s5127_s7  ;;  %v3126_v9 = vrot.slane %v3124_v26, 5  ;;  %v3690_v26 = vrot.slane %v3688_v35, 4  ;;  %v2606_v39 = vrot.slane %v2491_v24, 5  ;;  %v2826_v24 = vld [vmem:[#allocation2 + $0x58] sm:$0xf] }
 0x137   : > { %1705 = vst.msk [vmem:[#allocation3 + $0x38] sm:$0xf] %vm1690_vm15, %v1623_v17  ;;  %v3151_v42 = vsel %vm5295_vm9, %v3146_v18, %v3150_v19  ;;  %v2489_v18 = vld [vmem:[#allocation2 + $0x3c] sm:$0xe] }
 0x138   : > { %2362 = vrot.lane.b32.xlu0 %v2059_v15, %s5127_s7  ;;  %v1625_v25 = vpop.permute.xlu1 %1624  ;;  %v2061_v15 = vshrl.u32 %v1928_v4, 16  ;;  %v3127_v21 = vsel %vm5295_vm9, %v3122_v8, %v3126_v9 }
 0x139   : > { %1706 = vst.msk [vmem:[#allocation3 + $0x3c] sm:$0xf] %vm1690_vm15, %v1625_v25  ;;  %v2070_v25 = vshll.u32 %v1929_v12, 16 }
 0x13a   : > { %v1627_v37 = vpop.permute.xlu0 %1626  ;;  %2693 = vrot.lane.b32.xlu1 %v2590_v49, %s5128_s8  ;;  %v3681_v49 = vrot.slane %v3576_v10, 5  ;;  %v2063_v36 = vrot.slane %v2061_v15, 4 }
 0x13b   : > { %1707 = vst.msk [vmem:[#allocation3 + $0x40] sm:$0xf] %vm1690_vm15, %v1627_v37  ;;  %v2066_v37 = vrot.slane %v2064_v16, 5  ;;  %v2072_v5 = vrot.slane %v2070_v25, 5  ;;  %v2493_v25 = vld [vmem:[#allocation2 + $0x4c] sm:$0xf] }
 0x13c   : > { %2695 = vrot.lane.b32.xlu0 %v2593_v27, %s5128_s8  ;;  %v1629_v44 = vpop.permute.xlu1 %1628  ;;  %v2074_v27 = vshrl.u32 %v1929_v12, 16  ;;  %v3683_v43 = vrot.slane %v3681_v49, 4  ;;  %v3682_v53 = vsel %vm5565_vm13, %v4778_v32, %v3681_v49  ;;  %v2104_v12 = vshll.u32 %v1933_v2, 16  ;;  %v2492_v32 = vld [vmem:[#allocation2 + $0x48] sm:$0xe] }
 0x13d   : > { %1708 = vst.msk [vmem:[#allocation3 + $0x44] sm:$0xf] %vm1690_vm15, %v1629_v44  ;;  %v3684_v44 = vrot.slane %v3577_v23, 5  ;;  %v4765_v35 = vrot.slane %v2492_v32, 9 }
 0x13e   : > { %v1631_v51 = vpop.permute.xlu0 %1630  ;;  %2697 = vrot.lane.b32.xlu1 %v2597_v41, %s5128_s8  ;;  %v2076_v48 = vrot.slane %v2074_v27, 4  ;;  %v2106_v20 = vrot.slane %v2104_v12, 5  ;;  %v2824_v12 = vld [vmem:[#allocation2 + $0x4c] sm:$0xf] }
 0x13f   : > { %1709 = vst.msk [vmem:[#allocation3 + $0x48] sm:$0xf] %vm1690_vm15, %v1631_v51  ;;  %v2094_v51 = vshll.u32 %v1932_v33, 16  ;;  %v3685_v60 = vsel %vm5565_vm13, %v3683_v43, %v3684_v44  ;;  %v3020_v33 = vld [vmem:[#allocation2 + $0x48] sm:$0xf] }
 0x140   : > { %2699 = vrot.lane.b32.xlu0 %v2600_v47, %s5128_s8  ;;  %v1633_v56 = vpop.permute.xlu1 %1632  ;;  %v3580_v47 = vld [vmem:[#allocation2 + $0x44] sm:$0x1]  ;;  %v3021_v43 = vld [vmem:[#allocation2 + $0x4c] sm:$0xf]  ;;  %v3153_v46 = vshrl.u32 %v3020_v33, 16 }
 0x141   : > { %1710 = vst.msk [vmem:[#allocation3 + $0x4c] sm:$0xf] %vm1690_vm15, %v1633_v56  ;;  %v2067_v56 = vor.u32 %v2066_v37, %v2063_v36  ;;  %v3691_v50 = vrot.slane %v3580_v47, 5  ;;  %v3156_v47 = vshll.u32 %v3020_v33, 16  ;;  %v1935_v33 = vld [vmem:[#allocation2 + $0x58] sm:$0xf] }
 0x142   : > { %v1635_v61 = vpop.permute.xlu0 %1634  ;;  %2887 = vrot.lane.b32.xlu1 %v2819_v54, %s5129_s9  ;;  %v1930_v54 = vld [vmem:[#allocation2 + $0x44] sm:$0x1] }
 0x143   : > { %1711 = vst.msk [vmem:[#allocation3 + $0x50] sm:$0xf] %vm1690_vm15, %v1635_v61  ;;  %v2077_v61 = vor.u32 %v2076_v48, %v2072_v5  ;;  %v2080_v62 = vshll.u32 %v1930_v54, 16  ;;  %v2068_v4 = vrot.slane %v2067_v56, 4  ;;  %v3692_v9 = vsel %vm5565_vm13, %v3690_v26, %v3691_v50 }
 0x144   : > { %2889 = vrot.lane.b32.xlu0 %v2820_v59, %s5129_s9  ;;  %v1637_v1 = vpop.permute.xlu1 %1636  ;;  %v3166_v54 = vshrl.u32 %v3021_v43, 16  ;;  %v3158_v26 = vrot.slane %v3156_v47, 5  ;;  %v3583_v47 = vld [vmem:[#allocation2 + $0x50] sm:$0x1] }
 0x145   : > { %1712 = vst.msk [vmem:[#allocation3 + $0x54] sm:$0xf] %vm1690_vm15, %v1637_v1  ;;  %v2078_v10 = vrot.slane %v2077_v61, 4  ;;  %v2073_v15 = vsel %vm5295_vm9, %v2068_v4, %v2072_v5  ;;  %v3023_v5 = vld [vmem:[#allocation2 + $0x54] sm:$0xf]  ;;  %v3186_v61 = vshll.u32 %v3024_v55, 16 }
 0x146   : > { %v1639_v7 = vpop.permute.xlu0 %1638  ;;  %2891 = vrot.lane.b32.xlu1 %v2821_v63, %s5129_s9  ;;  %v2096_v63 = vrot.slane %v2094_v51, 5  ;;  %v2613_v51 = vrot.slane %v2494_v40, 5 }
 0x147   : > { %1713 = vst.msk [vmem:[#allocation3 + $0x58] sm:$0xf] %vm1690_vm15, %v1639_v7  ;;  %v2082_v7 = vrot.slane %v2080_v62, 5  ;;  %v3190_v62 = vshrl.u32 %v3024_v55, 16 }
 0x148   : > { %2893 = vrot.lane.b32.xlu0 %v2822_v6, %s5129_s9  ;;  %v1641_v17 = vpop.permute.xlu1 %1640  ;;  %v2091_v6 = vor.u32 %v2090_v58, %v2087_v57  ;;  %v2101_v11 = vor.u32 %v2100_v0, %v2096_v63  ;;  %v3177_v57 = vshrl.u32 %v3023_v5, 16  ;;  %v3180_v58 = vshll.u32 %v3023_v5, 16  ;;  %v3585_v5 = vld [vmem:[#allocation2 + $0x58] sm:$0xf] }
 0x149   : > { %1714 = vst.msk [vmem:[#allocation3 + $0x5c] sm:$0xf] %vm1690_vm15, %v1641_v17  ;;  %v2083_v19 = vsel %vm5295_vm9, %v2078_v10, %v2082_v7  ;;  %v5944_v7 = vrot.slane %v3186_v61, 5  ;;  %v3702_v61 = vrot.slane %v3585_v5, 5 }
 0x14a   : > { %v1643_v28 = vpop.permute.xlu0 %1642  ;;  %3448 = vrot.lane.b32.xlu1 %v3117_v13, %s5130_s18  ;;  %v2092_v16 = vrot.slane %v2091_v6, 4  ;;  %v2102_v49 = vrot.slane %v2101_v11, 4  ;;  %v3179_v4 = vrot.slane %v3177_v57, 4  ;;  %v3182_v6 = vrot.slane %v3180_v58, 5 }
 0x14b   : > { %1715 = vst.msk [vmem:[#allocation3 + $0x60] sm:$0xf] %vm1690_vm15, %v1643_v28  ;;  %v4764_v28 = vrot.slane %v2489_v18, 9  ;;  %v3192_v11 = vrot.slane %v3190_v62, 4  ;;  %v2825_v18 = vld [vmem:[#allocation2 + $0x54] sm:$0xf] }
 0x14c   : > { %3450 = vrot.lane.b32.xlu0 %v3127_v21, %s5130_s18  ;;  %v1645_v41 = vpop.permute.xlu1 %1644  ;;  %v2603_v21 = vrot.slane %v2490_v14, 5  ;;  %v2097_v27 = vsel %vm5295_vm9, %v2092_v16, %v2096_v63  ;;  %v2107_v36 = vsel %vm5295_vm9, %v2102_v49, %v2106_v20  ;;  %v3584_v62 = vld [vmem:[#allocation2 + $0x54] sm:$0xe] }
 0x14d   : > { %1716 = vst.msk [vmem:[#allocation3 + $0x64] sm:$0xf] %vm1690_vm15, %v1645_v41  ;;  %v2610_v41 = vrot.slane %v2493_v25, 5  ;;  %v3193_v20 = vor.u32 %v3192_v11, %v5944_v7 }
 0x14e   : > { %v1647_v52 = vpop.permute.xlu0 %1646  ;;  %3452 = vrot.lane.b32.xlu1 %v3141_v31, %s5130_s18  ;;  %v2605_v37 = vrot.slane %v2603_v21, 4  ;;  %v2604_v44 = vsel %vm5565_vm13, %v4764_v28, %v2603_v21  ;;  %v3582_v28 = vld [vmem:[#allocation2 + $0x4c] sm:$0xf] }
 0x14f   : > { %1717 = vst.msk [vmem:[#allocation3 + $0x68] sm:$0xf] %vm1690_vm15, %v1647_v52  ;;  %v2612_v52 = vrot.slane %v2610_v41, 4 }
 0x150   : > { %3454 = vrot.lane.b32.xlu0 %v3151_v42, %s5130_s18  ;;  %v1649_v59 = vpop.permute.xlu1 %1648  ;;  %v2607_v38 = vsel %vm5565_vm13, %v2605_v37, %v2606_v39  ;;  %v3581_v37 = vld [vmem:[#allocation2 + $0x48] sm:$0xe] }
 0x151   : > { %1718 = vst.msk [vmem:[#allocation3 + $0x6c] sm:$0xf] %vm1690_vm15, %v1649_v59  ;;  %v2611_v59 = vsel %vm5565_vm13, %v4765_v35, %v2610_v41  ;;  %v2614_v63 = vsel %vm5565_vm13, %v2612_v52, %v2613_v51  ;;  %v1937_v35 = vld [vmem:[#allocation2 + $0x60] sm:$0xf]  ;;  %v2122_v51 = vshrl.u32 %v1935_v33, 16 }
 0x152   : > { %v1651_v1 = vpop.permute.xlu0 %1650  ;;  %3785 = vrot.lane.b32.xlu1 %v3682_v53, %s5131_s29  ;;  %v3162_v53 = vshll.u32 %v3021_v43, 16  ;;  %v2133_v57 = vshrl.u32 %v1937_v35, 16  ;;  %v2136_v58 = vshll.u32 %v1937_v35, 16 }
 0x153   : > { %1719 = vst.msk [vmem:[#allocation3 + $0x70] sm:$0xf] %vm1690_vm15, %v1651_v1  ;;  %v3168_v1 = vrot.slane %v3166_v54, 4  ;;  %v1938_v54 = vld [vmem:[#allocation2 + $0x64] sm:$0xf] }
 0x154   : > { %3787 = vrot.lane.b32.xlu0 %v3685_v60, %s5131_s29  ;;  %v1653_v8 = vpop.permute.xlu1 %1652  ;;  %v3155_v60 = vrot.slane %v3153_v46, 4  ;;  %v3164_v0 = vrot.slane %v3162_v53, 5  ;;  %v4780_v53 = vrot.slane %v3581_v37, 9  ;;  %v2138_v11 = vrot.slane %v2136_v58, 5  ;;  %v2496_v37 = vld [vmem:[#allocation2 + $0x58] sm:$0xf] }
 0x155   : > { %1720 = vst.msk [vmem:[#allocation3 + $0x74] sm:$0xf] %vm1690_vm15, %v1653_v8  ;;  %v2823_v8 = vld [vmem:[#allocation2 + $0x48] sm:$0xf] }
 0x156   : > { %v1655_v13 = vpop.permute.xlu0 %1654  ;;  %3789 = vrot.lane.b32.xlu1 %v3689_v3, %s5131_s29  ;;  %v3022_v3 = vld [vmem:[#allocation2 + $0x50] sm:$0x1] }
 0x157   : > { %1721 = vst.msk [vmem:[#allocation3 + $0x78] sm:$0xf] %vm1690_vm15, %v1655_v13  ;;  %v3169_v13 = vor.u32 %v3168_v1, %v3164_v0  ;;  %v3172_v14 = vshll.u32 %v3022_v3, 16  ;;  %v2124_v1 = vrot.slane %v2122_v51, 4  ;;  %v2146_v3 = vshrl.u32 %v1938_v54, 16 }
 0x158   : > { %3791 = vrot.lane.b32.xlu0 %v3692_v9, %s5131_s29  ;;  %v1657_v17 = vpop.permute.xlu1 %1656  ;;  %v3159_v9 = vor.u32 %v3158_v26, %v3155_v60 }
 0x159   : > { %1722 = vst.msk [vmem:[#allocation3 + $0x7c] sm:$0xf] %vm1690_vm15, %v1657_v17  ;;  %v3183_v17 = vor.u32 %v3182_v6, %v3179_v4  ;;  %v3170_v25 = vrot.slane %v3169_v13, 4 }
 0x15a   : > { %v1788_v23 = vpop.permute.xlu0 %1787  ;;  %2364 = vrot.lane.b32.xlu1 %v2073_v15, %s5127_s7  ;;  %v3025_v15 = vld [vmem:[#allocation2 + $0x5c] sm:$0x1] }
 0x15b   : > { %1884 = vst.msk [vmem:[#allocation3] sm:$0xf] %vm1883_vm2, %v1788_v23  ;;  %v3196_v21 = vshll.u32 %v3025_v15, 16  ;;  %v1934_v23 = vld [vmem:[#allocation2 + $0x54] sm:$0xf]  ;;  %v3184_v32 = vrot.slane %v3183_v17, 4 }
 0x15c   : > { %2366 = vrot.lane.b32.xlu0 %v2083_v19, %s5127_s7  ;;  %v1790_v31 = vpop.permute.xlu1 %1789  ;;  %v3160_v19 = vrot.slane %v3159_v9, 4  ;;  %v2109_v39 = vshrl.u32 %v1934_v23, 16  ;;  %v2112_v40 = vshll.u32 %v1934_v23, 16  ;;  %v4781_v9 = vrot.slane %v3584_v62, 9 }
 0x15d   : > { %1885 = vst.msk [vmem:[#allocation3 + $0x4] sm:$0xf] %vm1883_vm2, %v1790_v31  ;;  %v3198_v43 = vrot.slane %v3196_v21, 5  ;;  %v3189_v52 = vsel %vm5295_vm9, %v3184_v32, %v5944_v7  ;;  %v2135_v7 = vrot.slane %v2133_v57, 4 }
 0x15e   : > { %v1792_v42 = vpop.permute.xlu0 %1791  ;;  %2368 = vrot.lane.b32.xlu1 %v2097_v27, %s5127_s7  ;;  %v3174_v27 = vrot.slane %v3172_v14, 5  ;;  %v2111_v55 = vrot.slane %v2109_v39, 4  ;;  %v3704_v14 = vrot.slane %v3702_v61, 4  ;;  %v3703_v21 = vsel %vm5565_vm13, %v4781_v9, %v3702_v61 }
 0x15f   : > { %1886 = vst.msk [vmem:[#allocation3 + $0x8] sm:$0xf] %vm1883_vm2, %v1792_v42  ;;  %v3194_v42 = vrot.slane %v3193_v20, 4  ;;  %v1939_v20 = vld [vmem:[#allocation2 + $0x68] sm:$0x1] }
 0x160   : > { %2370 = vrot.lane.b32.xlu0 %v2107_v36, %s5127_s7  ;;  %v1794_v48 = vpop.permute.xlu1 %1793  ;;  %v3165_v36 = vsel %vm5295_vm9, %v3160_v19, %v3164_v0  ;;  %v3175_v46 = vsel %vm5295_vm9, %v3170_v25, %v3174_v27  ;;  %v2148_v19 = vrot.slane %v2146_v3, 4  ;;  %v3029_v3 = vld [vmem:[#allocation2 + $0x6c] sm:$0xf] }
 0x161   : > { %1887 = vst.msk [vmem:[#allocation3 + $0xc] sm:$0xf] %vm1883_vm2, %v1794_v48  ;;  %v2118_v48 = vshll.u32 %v1935_v33, 16  ;;  %v3199_v60 = vsel %vm5295_vm9, %v3194_v42, %v3198_v43  ;;  %v2152_v33 = vshll.u32 %v1939_v20, 16  ;;  %v2495_v42 = vld [vmem:[#allocation2 + $0x54] sm:$0xe] }
 0x162   : > { %v1796_v56 = vpop.permute.xlu0 %1795  ;;  %2701 = vrot.lane.b32.xlu1 %v2604_v44, %s5128_s8  ;;  %v3695_v44 = vrot.slane %v3582_v28, 5 }
 0x163   : > { %1888 = vst.msk [vmem:[#allocation3 + $0x10] sm:$0xf] %vm1883_vm2, %v1796_v56  ;;  %v2114_v56 = vrot.slane %v2112_v40, 5  ;;  %v2120_v0 = vrot.slane %v2118_v48, 5  ;;  %v2154_v35 = vrot.slane %v2152_v33, 5 }
 0x164   : > { %2703 = vrot.lane.b32.xlu0 %v2607_v38, %s5128_s8  ;;  %v1798_v50 = vpop.permute.xlu1 %1797  ;;  %v3697_v26 = vrot.slane %v3695_v44, 4  ;;  %v3696_v6 = vsel %vm5565_vm13, %v4780_v53, %v3695_v44  ;;  %v2497_v48 = vld [vmem:[#allocation2 + $0x5c] sm:$0x1] }
 0x165   : > { %1889 = vst.msk [vmem:[#allocation3 + $0x14] sm:$0xf] %vm1883_vm2, %v1798_v50  ;;  %v3698_v50 = vrot.slane %v3583_v47, 5  ;;  %v2499_v47 = vld [vmem:[#allocation2 + $0x64] sm:$0xf]  ;;  %v2620_v58 = vrot.slane %v2497_v48, 5 }
 0x166   : > { %v1800_v2 = vpop.permute.xlu0 %1799  ;;  %2705 = vrot.lane.b32.xlu1 %v2611_v59, %s5128_s8 }
 0x167   : > { %1890 = vst.msk [vmem:[#allocation3 + $0x18] sm:$0xf] %vm1883_vm2, %v1800_v2  ;;  %v2142_v2 = vshll.u32 %v1938_v54, 16  ;;  %v3699_v13 = vsel %vm5565_vm13, %v3697_v26, %v3698_v50  ;;  %v2624_v54 = vrot.slane %v2499_v47, 5  ;;  %v3027_v50 = vld [vmem:[#allocation2 + $0x64] sm:$0xf] }
 0x168   : > { %2707 = vrot.lane.b32.xlu0 %v2614_v63, %s5128_s8  ;;  %v1802_v10 = vpop.permute.xlu1 %1801  ;;  %v3586_v63 = vld [vmem:[#allocation2 + $0x5c] sm:$0x1] }
 0x169   : > { %1891 = vst.msk [vmem:[#allocation3 + $0x1c] sm:$0xf] %vm1883_vm2, %v1802_v10  ;;  %v2115_v10 = vor.u32 %v2114_v56, %v2111_v55  ;;  %v3705_v15 = vrot.slane %v3586_v63, 5  ;;  %v3026_v55 = vld [vmem:[#allocation2 + $0x60] sm:$0xf] }
 0x16a   : > { %v1804_v16 = vpop.permute.xlu0 %1803  ;;  %2895 = vrot.lane.b32.xlu1 %v2823_v8, %s5129_s9  ;;  %v1936_v8 = vld [vmem:[#allocation2 + $0x5c] sm:$0x1]  ;;  %v3201_v62 = vshrl.u32 %v3026_v55, 16  ;;  %v3204_v63 = vshll.u32 %v3026_v55, 16 }
 0x16b   : > { %1892 = vst.msk [vmem:[#allocation3 + $0x20] sm:$0xf] %vm1883_vm2, %v1804_v16  ;;  %v2125_v16 = vor.u32 %v2124_v1, %v2120_v0  ;;  %v2128_v17 = vshll.u32 %v1936_v8, 16  ;;  %v2116_v23 = vrot.slane %v2115_v10, 4  ;;  %v3706_v27 = vsel %vm5565_vm13, %v3704_v14, %v3705_v15 }
 0x16c   : > { %2897 = vrot.lane.b32.xlu0 %v2824_v12, %s5129_s9  ;;  %v1806_v49 = vpop.permute.xlu1 %1805  ;;  %v2626_v1 = vrot.slane %v2624_v54, 4  ;;  %v3214_v8 = vshrl.u32 %v3027_v50, 16  ;;  %v3228_v14 = vshll.u32 %v3029_v3, 16 }
 0x16d   : > { %1893 = vst.msk [vmem:[#allocation3 + $0x24] sm:$0xf] %vm1883_vm2, %v1806_v49  ;;  %v2126_v28 = vrot.slane %v2125_v16, 4  ;;  %v2121_v39 = vsel %vm5295_vm9, %v2116_v23, %v2120_v0  ;;  %v2827_v23 = vld [vmem:[#allocation2 + $0x60] sm:$0xf] }
 0x16e   : > { %v1808_v31 = vpop.permute.xlu0 %1807  ;;  %2899 = vrot.lane.b32.xlu1 %v2825_v18, %s5129_s9  ;;  %v2144_v18 = vrot.slane %v2142_v2, 5 }
 0x16f   : > { %1894 = vst.msk [vmem:[#allocation3 + $0x28] sm:$0xf] %vm1883_vm2, %v1808_v31  ;;  %v2130_v31 = vrot.slane %v2128_v17, 5 }
 0x170   : > { %2901 = vrot.lane.b32.xlu0 %v2826_v24, %s5129_s9  ;;  %v1810_v41 = vpop.permute.xlu1 %1809  ;;  %v2139_v24 = vor.u32 %v2138_v11, %v2135_v7  ;;  %v2149_v32 = vor.u32 %v2148_v19, %v2144_v18  ;;  %v3030_v7 = vld [vmem:[#allocation2 + $0x70] sm:$0xf]  ;;  %v3203_v11 = vrot.slane %v3201_v62, 4 }
 0x171   : > { %1895 = vst.msk [vmem:[#allocation3 + $0x2c] sm:$0xf] %vm1883_vm2, %v1810_v41  ;;  %v2131_v43 = vsel %vm5295_vm9, %v2126_v28, %v2130_v31  ;;  %v3234_v19 = vshll.u32 %v3030_v7, 16  ;;  %v2828_v31 = vld [vmem:[#allocation2 + $0x64] sm:$0xf] }
 0x172   : > { %v1812_v38 = vpop.permute.xlu0 %1811  ;;  %3456 = vrot.lane.b32.xlu1 %v3165_v36, %s5130_s18  ;;  %v2140_v40 = vrot.slane %v2139_v24, 4  ;;  %v2150_v44 = vrot.slane %v2149_v32, 4 }
 0x173   : > { %1896 = vst.msk [vmem:[#allocation3 + $0x30] sm:$0xf] %vm1883_vm2, %v1812_v38  ;;  %v4766_v38 = vrot.slane %v2495_v42, 9 }
 0x174   : > { %3458 = vrot.lane.b32.xlu0 %v3175_v46, %s5130_s18  ;;  %v1814_v59 = vpop.permute.xlu1 %1813  ;;  %v2617_v46 = vrot.slane %v2496_v37, 5  ;;  %v2145_v51 = vsel %vm5295_vm9, %v2140_v40, %v2144_v18  ;;  %v2155_v56 = vsel %vm5295_vm9, %v2150_v44, %v2154_v35  ;;  %v3216_v18 = vrot.slane %v3214_v8, 4  ;;  %v3031_v40 = vld [vmem:[#allocation2 + $0x74] sm:$0x1]  ;;  %v2830_v35 = vld [vmem:[#allocation2 + $0x70] sm:$0xf] }
 0x175   : > { %1897 = vst.msk [vmem:[#allocation3 + $0x34] sm:$0xf] %vm1883_vm2, %v1814_v59  ;;  %v2500_v59 = vld [vmem:[#allocation2 + $0x68] sm:$0x1]  ;;  %v3244_v48 = vshll.u32 %v3031_v40, 16 }
 0x176   : > { %v1816_v4 = vpop.permute.xlu0 %1815  ;;  %3460 = vrot.lane.b32.xlu1 %v3189_v52, %s5130_s18  ;;  %v2498_v52 = vld [vmem:[#allocation2 + $0x60] sm:$0xe]  ;;  %v2619_v57 = vrot.slane %v2617_v46, 4  ;;  %v2618_v61 = vsel %vm5565_vm13, %v4766_v38, %v2617_v46  ;;  %v2627_v2 = vrot.slane %v2500_v59, 5  ;;  %v1942_v40 = vld [vmem:[#allocation2 + $0x74] sm:$0x1] }
 0x177   : > { %1898 = vst.msk [vmem:[#allocation3 + $0x38] sm:$0xf] %vm1883_vm2, %v1816_v4  ;;  %v4767_v26 = vrot.slane %v2498_v52, 9  ;;  %v3246_v59 = vrot.slane %v3244_v48, 5 }
 0x178   : > { %3462 = vrot.lane.b32.xlu0 %v3199_v60, %s5130_s18  ;;  %v1818_v12 = vpop.permute.xlu1 %1817  ;;  %v2621_v4 = vsel %vm5565_vm13, %v2619_v57, %v2620_v58  ;;  %v2628_v16 = vsel %vm5565_vm13, %v2626_v1, %v2627_v2 }
 0x179   : > { %1899 = vst.msk [vmem:[#allocation3 + $0x3c] sm:$0xf] %vm1883_vm2, %v1818_v12  ;;  %v2625_v10 = vsel %vm5565_vm13, %v4767_v26, %v2624_v54  ;;  %v3206_v12 = vrot.slane %v3204_v63, 5  ;;  %v3591_v26 = vld [vmem:[#allocation2 + $0x70] sm:$0xf] }
 0x17a   : > { %v1820_v49 = vpop.permute.xlu0 %1819  ;;  %3793 = vrot.lane.b32.xlu1 %v3696_v6, %s5131_s29  ;;  %v3210_v6 = vshll.u32 %v3027_v50, 16 }
 0x17b   : > { %1900 = vst.msk [vmem:[#allocation3 + $0x40] sm:$0xf] %vm1883_vm2, %v1820_v49  ;;  %v3238_v49 = vshrl.u32 %v3030_v7, 16  ;;  %v3207_v24 = vor.u32 %v3206_v12, %v3203_v11 }
 0x17c   : > { %3795 = vrot.lane.b32.xlu0 %v3699_v13, %s5131_s29  ;;  %v2349_v25 = vpop.permute.xlu1 %2348  ;;  %v3225_v13 = vshrl.u32 %v3029_v3, 16  ;;  %v3212_v17 = vrot.slane %v3210_v6, 5  ;;  %v1941_v6 = vld [vmem:[#allocation2 + $0x70] sm:$0xf] }
 0x17d   : > { %2445 = vst.msk [vmem:[#allocation3] sm:$0xf] %vm2444_vm3, %v2349_v25  ;;  %v3240_v37 = vrot.slane %v3238_v49, 4  ;;  %v3208_v42 = vrot.slane %v3207_v24, 4 }
 0x17e   : > { %v2351_v36 = vpop.permute.xlu0 %2350  ;;  %3797 = vrot.lane.b32.xlu1 %v3703_v21, %s5131_s29  ;;  %v3028_v21 = vld [vmem:[#allocation2 + $0x68] sm:$0x1]  ;;  %v3227_v25 = vrot.slane %v3225_v13, 4  ;;  %v3217_v32 = vor.u32 %v3216_v18, %v3212_v17  ;;  %v1943_v13 = vld [vmem:[#allocation2 + $0x78] sm:$0xf] }
 0x17f   : > { %2446 = vst.msk [vmem:[#allocation3 + $0x4] sm:$0xf] %vm2444_vm3, %v2351_v36  ;;  %v3220_v33 = vshll.u32 %v3028_v21, 16  ;;  %v3236_v36 = vrot.slane %v3234_v19, 5  ;;  %v3213_v52 = vsel %vm5295_vm9, %v3208_v42, %v3212_v17  ;;  %v2181_v24 = vshrl.u32 %v1943_v13, 16 }
 0x180   : > { %3799 = vrot.lane.b32.xlu0 %v3706_v27, %s5131_s29  ;;  %v2353_v41 = vpop.permute.xlu1 %2352  ;;  %v3230_v27 = vrot.slane %v3228_v14, 5  ;;  %v3218_v46 = vrot.slane %v3217_v32, 4 }
 0x181   : > { %2447 = vst.msk [vmem:[#allocation3 + $0x8] sm:$0xf] %vm2444_vm3, %v2353_v41  ;;  %v2829_v41 = vld [vmem:[#allocation2 + $0x6c] sm:$0xf]  ;;  %v3222_v47 = vrot.slane %v3220_v33, 5  ;;  %v2183_v42 = vrot.slane %v2181_v24, 4 }
 0x182   : > { %v2355_v5 = vpop.permute.xlu0 %2354  ;;  %2372 = vrot.lane.b32.xlu1 %v2121_v39, %s5127_s7 }
 0x183   : > { %2448 = vst.msk [vmem:[#allocation3 + $0xc] sm:$0xf] %vm2444_vm3, %v2355_v5  ;;  %v3241_v5 = vor.u32 %v3240_v37, %v3236_v36  ;;  %v3223_v57 = vsel %vm5295_vm9, %v3218_v46, %v3222_v47  ;;  %v1740_v46 = vld [vmem:[#allocation2 + $0x70] sm:$0xf] }
 0x184   : > { %2374 = vrot.lane.b32.xlu0 %v2131_v43, %s5127_s7  ;;  %v2686_v53 = vpop.permute.xlu1 %2685  ;;  %v3231_v43 = vor.u32 %v3230_v27, %v3227_v25  ;;  %v2184_v25 = vshll.u32 %v1943_v13, 16 }
 0x185   : > { %2782 = vst.msk [vmem:[#allocation3] sm:$0xf] %vm2781_vm4, %v2686_v53  ;;  %v3242_v58 = vrot.slane %v3241_v5, 4  ;;  %v2176_v5 = vshll.u32 %v1942_v40, 16 }
 0x186   : > { %v2688_v60 = vpop.permute.xlu0 %2687  ;;  %2376 = vrot.lane.b32.xlu1 %v2145_v51, %s5127_s7  ;;  %v3588_v51 = vld [vmem:[#allocation2 + $0x64] sm:$0xf]  ;;  %v3232_v53 = vrot.slane %v3231_v43, 4  ;;  %v2186_v43 = vrot.slane %v2184_v25, 5 }
 0x187   : > { %2783 = vst.msk [vmem:[#allocation3 + $0x4] sm:$0xf] %vm2781_vm4, %v2688_v60  ;;  %v3709_v55 = vrot.slane %v3588_v51, 5  ;;  %v3589_v60 = vld [vmem:[#allocation2 + $0x68] sm:$0x1]  ;;  %v3247_v8 = vsel %vm5295_vm9, %v3242_v58, %v3246_v59 }
 0x188   : > { %2378 = vrot.lane.b32.xlu0 %v2155_v56, %s5127_s7  ;;  %v2690_v0 = vpop.permute.xlu1 %2689  ;;  %v3587_v56 = vld [vmem:[#allocation2 + $0x60] sm:$0xe]  ;;  %v3237_v62 = vsel %vm5295_vm9, %v3232_v53, %v3236_v36  ;;  %v3712_v3 = vrot.slane %v3589_v60, 5  ;;  %v1945_v51 = vld [vmem:[#allocation2 + $0x80] sm:$0x1] }
 0x189   : > { %2784 = vst.msk [vmem:[#allocation3 + $0x8] sm:$0xf] %vm2781_vm4, %v2690_v0  ;;  %v4782_v63 = vrot.slane %v3587_v56, 9  ;;  %v3590_v0 = vld [vmem:[#allocation2 + $0x6c] sm:$0xe]  ;;  %v3711_v2 = vrot.slane %v3709_v55, 4 }
 0x18a   : > { %v2692_v9 = vpop.permute.xlu0 %2691  ;;  %2709 = vrot.lane.b32.xlu1 %v2618_v61, %s5128_s8  ;;  %v1940_v61 = vld [vmem:[#allocation2 + $0x6c] sm:$0xf]  ;;  %v4783_v12 = vrot.slane %v3590_v0, 9  ;;  %v1741_v53 = vld [vmem:[#allocation2 + $0x78] sm:$0xf]  ;;  %v2200_v58 = vshll.u32 %v1945_v51, 16 }
 0x18b   : > { %2785 = vst.msk [vmem:[#allocation3 + $0xc] sm:$0xf] %vm2781_vm4, %v2692_v9  ;;  %v3592_v9 = vld [vmem:[#allocation2 + $0x74] sm:$0x1]  ;;  %v2160_v7 = vshll.u32 %v1940_v61, 16  ;;  %v3710_v14 = vsel %vm5565_vm13, %v4782_v63, %v3709_v55  ;;  %v3713_v18 = vsel %vm5565_vm13, %v3711_v2, %v3712_v3  ;;  %v2187_v55 = vor.u32 %v2186_v43, %v2183_v42 }
 0x18c   : > { %2711 = vrot.lane.b32.xlu0 %v2621_v4, %s5128_s8  ;;  %v2880_v15 = vpop.permute.xlu1 %2879  ;;  %v3716_v4 = vrot.slane %v3591_v26, 5  ;;  %v3719_v49 = vrot.slane %v3592_v9, 5  ;;  %v1742_v59 = vld [vmem:[#allocation2 + $0x7c] sm:$0xf]  ;;  %v2178_v26 = vrot.slane %v2176_v5, 5  ;;  %v2202_v2 = vrot.slane %v2200_v58, 5 }
 0x18d   : > { %2976 = vst.msk [vmem:[#allocation3] sm:$0xf] %vm2975_vm5, %v2880_v15  ;;  %v2166_v15 = vshll.u32 %v1941_v6, 16  ;;  %v2188_v0 = vrot.slane %v2187_v55, 4  ;;  %v2501_v3 = vld [vmem:[#allocation2 + $0x6c] sm:$0xe] }
 0x18e   : > { %v2882_v20 = vpop.permute.xlu0 %2881  ;;  %2713 = vrot.lane.b32.xlu1 %v2625_v10, %s5128_s8  ;;  %v2157_v10 = vshrl.u32 %v1940_v61, 16  ;;  %v3718_v19 = vrot.slane %v3716_v4, 4  ;;  %v3035_v5 = vld [vmem:[#allocation2 + $0x84] sm:$0xf]  ;;  %v3036_v55 = vld [vmem:[#allocation2 + $0x88] sm:$0xf] }
 0x18f   : > { %2977 = vst.msk [vmem:[#allocation3 + $0x4] sm:$0xf] %vm2975_vm5, %v2882_v20  ;;  %v1944_v20 = vld [vmem:[#allocation2 + $0x7c] sm:$0xf]  ;;  %v3273_v58 = vshrl.u32 %v3035_v5, 16 }
 0x190   : > { %2715 = vrot.lane.b32.xlu0 %v2628_v16, %s5128_s8  ;;  %v2884_v28 = vpop.permute.xlu1 %2883  ;;  %v2170_v16 = vshrl.u32 %v1941_v6, 16  ;;  %v2159_v21 = vrot.slane %v2157_v10, 4  ;;  %v2190_v33 = vshll.u32 %v1944_v20, 16  ;;  %v2194_v36 = vshrl.u32 %v1944_v20, 16  ;;  %v312_v10 = vld [vmem:[%s5274_s30 + $0x78] sm:$0xf] }
 0x191   : > { %2978 = vst.msk [vmem:[#allocation3 + $0x8] sm:$0xf] %vm2975_vm5, %v2884_v28  ;;  %v3717_v28 = vsel %vm5565_vm13, %v4783_v12, %v3716_v4  ;;  %v2505_v4 = vld [vmem:[#allocation2 + $0x7c] sm:$0xf]  ;;  %v2503_v12 = vld [vmem:[#allocation2 + $0x74] sm:$0x1] }
 0x192   : > { %v2886_v39 = vpop.permute.xlu0 %2885  ;;  %2903 = vrot.lane.b32.xlu1 %v2827_v23, %s5129_s9  ;;  %v2162_v23 = vrot.slane %v2160_v7, 5  ;;  %v2172_v32 = vrot.slane %v2170_v16, 4  ;;  %v2192_v48 = vrot.slane %v2190_v33, 5  ;;  %v313_v7 = vld [vmem:[%s5274_s30 + $0x7c] sm:$0xf]  ;;  %v573_v13 = vshrl.u32 %v312_v10, 16 }
 0x193   : > { %2979 = vst.msk [vmem:[#allocation3 + $0xc] sm:$0xf] %vm2975_vm5, %v2886_v39  ;;  %v3720_v39 = vsel %vm5565_vm13, %v3718_v19, %v3719_v49  ;;  %v4768_v16 = vrot.slane %v2501_v3, 9  ;;  %v3032_v49 = vld [vmem:[#allocation2 + $0x78] sm:$0xf]  ;;  %v584_v24 = vshll.u32 %v313_v7, 16 }
 0x194   : > { %2905 = vrot.lane.b32.xlu0 %v2828_v31, %s5129_s9  ;;  %v3441_v44 = vpop.permute.xlu1 %3440  ;;  %v2168_v31 = vrot.slane %v2166_v15, 5  ;;  %v2193_v15 = vsel %vm5295_vm9, %v2188_v0, %v2192_v48  ;;  %v575_v20 = vrot.slane %v573_v13, 7  ;;  %v3249_v42 = vshrl.u32 %v3032_v49, 16  ;;  %v3034_v3 = vld [vmem:[#allocation2 + $0x80] sm:$0x1] }
 0x195   : > { %3537 = vst.msk [vmem:[#allocation3] sm:$0xf] %vm3536_vm6, %v3441_v44  ;;  %v3252_v43 = vshll.u32 %v3032_v49, 16  ;;  %v3282_v0 = vshll.u32 %v3036_v55, 16  ;;  %v2834_v49 = vld [vmem:[#allocation2 + $0x88] sm:$0xf] }
 0x196   : > { %v3443_v38 = vpop.permute.xlu0 %3442  ;;  %2907 = vrot.lane.b32.xlu1 %v2829_v41, %s5129_s9  ;;  %v2163_v41 = vor.u32 %v2162_v23, %v2159_v21  ;;  %v2173_v47 = vor.u32 %v2172_v32, %v2168_v31  ;;  %v576_v21 = vshll.u32 %v312_v10, 16  ;;  %v3251_v30 = vrot.slane %v3249_v42, 4 }
 0x197   : > { %3538 = vst.msk [vmem:[#allocation3 + $0x4] sm:$0xf] %vm3536_vm6, %v3443_v38  ;;  %v2196_v38 = vrot.slane %v2194_v36, 4  ;;  %v3033_v36 = vld [vmem:[#allocation2 + $0x7c] sm:$0xf] }
 0x198   : > { %2909 = vrot.lane.b32.xlu0 %v2830_v35, %s5129_s9  ;;  %v3445_v54 = vpop.permute.xlu1 %3444  ;;  %v2174_v60 = vrot.slane %v2173_v47, 4 }
 0x199   : > { %3539 = vst.msk [vmem:[#allocation3 + $0x8] sm:$0xf] %vm3536_vm6, %v3445_v54  ;;  %v2164_v54 = vrot.slane %v2163_v41, 4 }
 0x19a   : > { %v3447_v50 = vpop.permute.xlu0 %3446  ;;  %3464 = vrot.lane.b32.xlu1 %v3213_v52, %s5130_s18  ;;  %v2179_v6 = vsel %vm5295_vm9, %v2174_v60, %v2178_v26  ;;  %v752_v60 = vld [vmem:[#allocation2 + $0xc8] sm:$0x1] }
 0x19b   : > { %3540 = vst.msk [vmem:[#allocation3 + $0xc] sm:$0xf] %vm3536_vm6, %v3447_v50  ;;  %v2197_v50 = vor.u32 %v2196_v38, %v2192_v48  ;;  %v2169_v63 = vsel %vm5295_vm9, %v2164_v54, %v2168_v31  ;;  %v2506_v31 = vld [vmem:[#allocation2 + $0x80] sm:$0x1] }
 0x19c   : > { %3466 = vrot.lane.b32.xlu0 %v3223_v57, %s5130_s18  ;;  %v3778_v1 = vpop.permute.xlu1 %3777  ;;  %v2641_v47 = vrot.slane %v2506_v31, 5 }
 0x19d   : > { %3874 = vst.msk [vmem:[#allocation3] sm:$0xf] %vm3873_vm11, %v3778_v1 }
 0x19e   : > { %v3780_v11 = vpop.permute.xlu0 %3779  ;;  %3468 = vrot.lane.b32.xlu1 %v3237_v62, %s5130_s18  ;;  %v2502_v62 = vld [vmem:[#allocation2 + $0x70] sm:$0xf] }
 0x19f   : > { %3875 = vst.msk [vmem:[#allocation3 + $0x4] sm:$0xf] %vm3873_vm11, %v3780_v11  ;;  %v2631_v9 = vrot.slane %v2502_v62, 5 }
 0x1a0   : > { %3470 = vrot.lane.b32.xlu0 %v3247_v8, %s5130_s18  ;;  %v3782_v17 = vpop.permute.xlu1 %3781  ;;  %v2198_v8 = vrot.slane %v2197_v50, 4 }
 0x1a1   : > { %3876 = vst.msk [vmem:[#allocation3 + $0x8] sm:$0xf] %vm3873_vm11, %v3782_v17  ;;  %v2504_v17 = vld [vmem:[#allocation2 + $0x78] sm:$0xe]  ;;  %v2632_v41 = vsel %vm5565_vm13, %v4768_v16, %v2631_v9  ;;  %v2833_v16 = vld [vmem:[#allocation2 + $0x84] sm:$0xf] }
 0x1a2   : > { %v3784_v27 = vpop.permute.xlu0 %3783  ;;  %3801 = vrot.lane.b32.xlu1 %v3710_v14, %s5131_s29  ;;  %v581_v14 = vshrl.u32 %v313_v7, 16  ;;  %v2203_v25 = vsel %vm5295_vm9, %v2198_v8, %v2202_v2  ;;  %v4769_v33 = vrot.slane %v2504_v17, 9  ;;  %v3275_v8 = vrot.slane %v3273_v58, 4 }
 0x1a3   : > { %3877 = vst.msk [vmem:[#allocation3 + $0xc] sm:$0xf] %vm3873_vm11, %v3784_v27  ;;  %v2633_v27 = vrot.slane %v2631_v9, 4 }
 0x1a4   : > { %3803 = vrot.lane.b32.xlu0 %v3713_v18, %s5131_s29  ;;  %v2357_v37 = vpop.permute.xlu1 %2356  ;;  %v2638_v18 = vrot.slane %v2505_v4, 5  ;;  %v583_v23 = vrot.slane %v581_v14, 7  ;;  %v2831_v4 = vld [vmem:[#allocation2 + $0x78] sm:$0xf] }
 0x1a5   : > { %2449 = vst.msk [vmem:[#allocation3 + $0x10] sm:$0xf] %vm2444_vm3, %v2357_v37  ;;  %v578_v37 = vor.u32 %v576_v21, %v575_v20 }
 0x1a6   : > { %v2359_v44 = vpop.permute.xlu0 %2358  ;;  %3805 = vrot.lane.b32.xlu1 %v3717_v28, %s5131_s29  ;;  %v5029_v35 = vld [vmem:[#allocation3] sm:$0xff]   ;;  %v2634_v28 = vrot.slane %v2503_v12, 5  ;;  %v586_v40 = vor.u32 %v584_v24, %v583_v23  ;;  %v2639_v22 = vsel %vm5565_vm13, %v4769_v33, %v2638_v18  ;;  %v3284_v12 = vrot.slane %v3282_v0, 5 }
 0x1a7   : > { %2450 = vst.msk [vmem:[#allocation3 + $0x14] sm:$0xf] %vm2444_vm3, %v2359_v44  ;;  %4922 = vmatprep.mubr.msk.bf16.mxu0 %vm4038_vm12, %v5029_v35  ;;  %v748_v44 = vld [vmem:[#allocation2 + $0xc0] sm:$0xf]  ;;  %v3593_v33 = vld [vmem:[#allocation2 + $0x78] sm:$0xe] }
 0x1a8   : > { %3807 = vrot.lane.b32.xlu0 %v3720_v39, %s5131_s29  ;;  %v2361_v52 = vpop.permute.xlu1 %2360  ;;  %v579_v39 = vrot.slane %v575_v20, 4  ;;  %v749_v48 = vsel %vm5281_vm7, %v578_v37, %v748_v44  ;;  %v2635_v38 = vsel %vm5565_vm13, %v2633_v27, %v2634_v28  ;;  %v3594_v27 = vld [vmem:[#allocation2 + $0x7c] sm:$0xf]  ;;  %vm4252_vm7 = vcmask 64512  }
 0x1a9   : > { %2451 = vst.msk [vmem:[#allocation3 + $0x18] sm:$0xf] %vm2444_vm3, %v2361_v52  ;;  %v3258_v52 = vshll.u32 %v3033_v36, 16  ;;  %750 = vst [vmem:[#allocation2 + $0xc0] sm:$0xf] %v749_v48 }
 0x1aa   : > { %v2363_v56 = vpop.permute.xlu0 %2362  ;;  %1821 = vrot.lane.b32.xlu1 %v1740_v46, %s5126_s6  ;;  %v5030_v57 = vld [vmem:[#allocation3 + $0x8] sm:$0xff]   ;;  %v2640_v46 = vrot.slane %v2638_v18, 4  ;;  %v587_v51 = vsel %vm5288_vm8, %v579_v39, %v586_v40  ;;  %vm4423_vm8 = vcmask 1040384  }
 0x1ab   : > { %2452 = vst.msk [vmem:[#allocation3 + $0x1c] sm:$0xf] %vm2444_vm3, %v2363_v56  ;;  %4923 = vmatmul.mubr.msk.bf16.vlgmr.msra.gmra.mxu0 %vm4038_vm12, %v5030_v57  ;;  %v588_v56 = vrot.slane %v583_v23, 4  ;;  %v3254_v57 = vrot.slane %v3252_v43, 5  ;;  %v3260_v62 = vrot.slane %v3258_v52, 5 }
 0x1ac   : > { %v2694_v61 = vpop.permute.xlu1 %2693  ;;  %1823 = vrot.lane.b32.xlu0 %v1741_v53, %s5126_s6  ;;  %v3262_v53 = vshrl.u32 %v3033_v36, 16  ;;  %751 = vst.msk [vmem:[#allocation2 + $0xc4] sm:$0xf] %vm226_vm0, %v587_v51  ;;  %v2642_v50 = vsel %vm5565_vm13, %v2640_v46, %v2641_v47  ;;  %v3597_v36 = vld [vmem:[#allocation2 + $0x88] sm:$0xf]  ;;  %vm4555_vm0 = vcmask 60416  }
 0x1ad   : > { %2786 = vst.msk [vmem:[#allocation3 + $0x10] sm:$0xf] %vm2781_vm4, %v2694_v61  ;;  %v753_v61 = vsel %vm5303_vm10, %v588_v56, %v752_v60  ;;  %v3595_v43 = vld [vmem:[#allocation2 + $0x80] sm:$0x1]  ;;  %v3596_v46 = vld [vmem:[#allocation2 + $0x84] sm:$0xe] }
 0x1ae   : > { %v2696_v1 = vpop.permute.xlu0 %2695  ;;  %1825 = vrot.lane.b32.xlu1 %v1742_v59, %s5126_s6  ;;  %v3276_v59 = vshll.u32 %v3035_v5, 16  ;;  %754 = vst [vmem:[#allocation2 + $0xc8] sm:$0x1] %v753_v61  ;;  %v3730_v47 = vrot.slane %v3597_v36, 5  ;;  %v1946_v48 = vld [vmem:[#allocation2 + $0x84] sm:$0xf] }
 0x1af   : > { %2787 = vst.msk [vmem:[#allocation3 + $0x14] sm:$0xf] %vm2781_vm4, %v2696_v1  ;;  %v3286_v1 = vshrl.u32 %v3036_v55, 16  ;;  %v3726_v52 = vrot.slane %v3595_v43, 5  ;;  %v1947_v55 = vld [vmem:[#allocation2 + $0x88] sm:$0xf] }
 0x1b0   : > { %v2698_v11 = vpop.permute.xlu1 %2697  ;;  %2380 = vrot.lane.b32.xlu0 %v2169_v63, %s5127_s7  ;;  %v3264_v63 = vrot.slane %v3262_v53, 4  ;;  %v3278_v9 = vrot.slane %v3276_v59, 5  ;;  %v3598_v53 = vld [vmem:[#allocation2 + $0x8c] sm:$0x1]  ;;  %v2208_v58 = vshll.u32 %v1946_v48, 16 }
 0x1b1   : > { %2788 = vst.msk [vmem:[#allocation3 + $0x18] sm:$0xf] %vm2781_vm4, %v2698_v11  ;;  %v3268_v11 = vshll.u32 %v3034_v3, 16  ;;  %v3288_v13 = vrot.slane %v3286_v1, 4 }
 0x1b2   : > { %v2700_v19 = vpop.permute.xlu0 %2699  ;;  %2382 = vrot.lane.b32.xlu1 %v2179_v6, %s5127_s7  ;;  %v3255_v6 = vor.u32 %v3254_v57, %v3251_v30  ;;  %v3265_v7 = vor.u32 %v3264_v63, %v3260_v62  ;;  %v3279_v18 = vor.u32 %v3278_v9, %v3275_v8  ;;  %v3732_v30 = vrot.slane %v3730_v47, 4 }
 0x1b3   : > { %2789 = vst.msk [vmem:[#allocation3 + $0x1c] sm:$0xf] %vm2781_vm4, %v2700_v19  ;;  %v3270_v21 = vrot.slane %v3268_v11, 5  ;;  %v3289_v23 = vor.u32 %v3288_v13, %v3284_v12  ;;  %v2205_v57 = vshrl.u32 %v1946_v48, 16  ;;  %v2218_v63 = vshrl.u32 %v1947_v55, 16 }
 0x1b4   : > { %v2888_v32 = vpop.permute.xlu1 %2887  ;;  %2384 = vrot.lane.b32.xlu0 %v2193_v15, %s5127_s7  ;;  %v3037_v15 = vld [vmem:[#allocation2 + $0x8c] sm:$0x1]  ;;  %v3256_v17 = vrot.slane %v3255_v6, 4  ;;  %v3266_v20 = vrot.slane %v3265_v7, 4  ;;  %v3280_v31 = vrot.slane %v3279_v18, 4 }
 0x1b5   : > { %2980 = vst.msk [vmem:[#allocation3 + $0x10] sm:$0xf] %vm2975_vm5, %v2888_v32  ;;  %v3292_v24 = vshll.u32 %v3037_v15, 16  ;;  %v3290_v39 = vrot.slane %v3289_v23, 4  ;;  %v2207_v3 = vrot.slane %v2205_v57, 4  ;;  %v2220_v11 = vrot.slane %v2218_v63, 4 }
 0x1b6   : > { %v2890_v35 = vpop.permute.xlu0 %2889  ;;  %2386 = vrot.lane.b32.xlu1 %v2203_v25, %s5127_s7  ;;  %v3261_v28 = vsel %vm5295_vm9, %v3256_v17, %v3260_v62  ;;  %v3271_v37 = vsel %vm5295_vm9, %v3266_v20, %v3270_v21  ;;  %v3285_v44 = vsel %vm5295_vm9, %v3280_v31, %v3284_v12  ;;  %v2214_v62 = vshll.u32 %v1947_v55, 16  ;;  %v1948_v15 = vld [vmem:[#allocation2 + $0x8c] sm:$0x1]  ;;  %v1744_v20 = vld [vmem:[#allocation2 + $0x88] sm:$0xf] }
 0x1b7   : > { %2981 = vst.msk [vmem:[#allocation3 + $0x14] sm:$0xf] %vm2975_vm5, %v2890_v35  ;;  %v3294_v40 = vrot.slane %v3292_v24, 5  ;;  %v4784_v35 = vrot.slane %v3593_v33, 9  ;;  %v2224_v23 = vshll.u32 %v1948_v15, 16 }
 0x1b8   : > { %v2892_v54 = vpop.permute.xlu1 %2891  ;;  %2717 = vrot.lane.b32.xlu0 %v2632_v41, %s5128_s8  ;;  %v3723_v41 = vrot.slane %v3594_v27, 5  ;;  %v2216_v7 = vrot.slane %v2214_v62, 5  ;;  %v1745_v31 = vld [vmem:[#allocation2 + $0x90] sm:$0xf] }
 0x1b9   : > { %2982 = vst.msk [vmem:[#allocation3 + $0x18] sm:$0xf] %vm2975_vm5, %v2892_v54  ;;  %v3295_v51 = vsel %vm5295_vm9, %v3290_v39, %v3294_v40  ;;  %v2226_v40 = vrot.slane %v2224_v23, 5 }
 0x1ba   : > { %v2894_v26 = vpop.permute.xlu0 %2893  ;;  %2719 = vrot.lane.b32.xlu1 %v2635_v38, %s5128_s8  ;;  %v3725_v38 = vrot.slane %v3723_v41, 4  ;;  %v3724_v56 = vsel %vm5565_vm13, %v4784_v35, %v3723_v41  ;;  %v2221_v21 = vor.u32 %v2220_v11, %v2216_v7 }
 0x1bb   : > { %2983 = vst.msk [vmem:[#allocation3 + $0x1c] sm:$0xf] %vm2975_vm5, %v2894_v26  ;;  %v3733_v26 = vrot.slane %v3598_v53, 5  ;;  %v2511_v53 = vld [vmem:[#allocation2 + $0x94] sm:$0xf] }
 0x1bc   : > { %v3449_v2 = vpop.permute.xlu1 %3448  ;;  %2721 = vrot.lane.b32.xlu0 %v2639_v22, %s5128_s8  ;;  %v4785_v22 = vrot.slane %v3596_v46, 9  ;;  %v3727_v61 = vsel %vm5565_vm13, %v3725_v38, %v3726_v52  ;;  %v2222_v39 = vrot.slane %v2221_v21, 4 }
 0x1bd   : > { %3541 = vst.msk [vmem:[#allocation3 + $0x10] sm:$0xf] %vm3536_vm6, %v3449_v2  ;;  %v1950_v2 = vld [vmem:[#allocation2 + $0x94] sm:$0xf] }
 0x1be   : > { %v3451_v10 = vpop.permute.xlu0 %3450  ;;  %2723 = vrot.lane.b32.xlu1 %v2642_v50, %s5128_s8  ;;  %v1949_v50 = vld [vmem:[#allocation2 + $0x90] sm:$0xf]  ;;  %v3731_v1 = vsel %vm5565_vm13, %v4785_v22, %v3730_v47  ;;  %v2238_v12 = vshll.u32 %v1950_v2, 16  ;;  %v2242_v13 = vshrl.u32 %v1950_v2, 16  ;;  %v2227_v48 = vsel %vm5295_vm9, %v2222_v39, %v2226_v40  ;;  %v2509_v22 = vld [vmem:[#allocation2 + $0x8c] sm:$0x1] }
 0x1bf   : > { %3542 = vst.msk [vmem:[#allocation3 + $0x14] sm:$0xf] %vm3536_vm6, %v3451_v10  ;;  %v2229_v6 = vshrl.u32 %v1949_v50, 16  ;;  %v2232_v8 = vshll.u32 %v1949_v50, 16  ;;  %v2648_v50 = vrot.slane %v2509_v22, 5 }
 0x1c0   : > { %v3453_v14 = vpop.permute.xlu1 %3452  ;;  %2911 = vrot.lane.b32.xlu0 %v2831_v4, %s5129_s9  ;;  %v2210_v4 = vrot.slane %v2208_v58, 5  ;;  %v2240_v24 = vrot.slane %v2238_v12, 5  ;;  %v2652_v58 = vrot.slane %v2511_v53, 5 }
 0x1c1   : > { %3543 = vst.msk [vmem:[#allocation3 + $0x18] sm:$0xf] %vm3536_vm6, %v3453_v14  ;;  %v2231_v18 = vrot.slane %v2229_v6, 4 }
 0x1c2   : > { %v3455_v19 = vpop.permute.xlu0 %3454  ;;  %2913 = vrot.lane.b32.xlu1 %v2832_v45, %s5129_s9  ;;  %v3734_v45 = vsel %vm5565_vm13, %v3732_v30, %v3733_v26  ;;  %v2211_v17 = vor.u32 %v2210_v4, %v2207_v3  ;;  %v2510_v30 = vld [vmem:[#allocation2 + $0x90] sm:$0xe]  ;;  %v2654_v6 = vrot.slane %v2652_v58, 4 }
 0x1c3   : > { %3544 = vst.msk [vmem:[#allocation3 + $0x1c] sm:$0xf] %vm3536_vm6, %v3455_v19  ;;  %v2234_v19 = vrot.slane %v2232_v8, 5  ;;  %v4771_v63 = vrot.slane %v2510_v30, 9 }
 0x1c4   : > { %v3786_v25 = vpop.permute.xlu1 %3785  ;;  %2915 = vrot.lane.b32.xlu0 %v2833_v16, %s5129_s9  ;;  %v1743_v16 = vld [vmem:[#allocation2 + $0x84] sm:$0xf] }
 0x1c5   : > { %3878 = vst.msk [vmem:[#allocation3 + $0x10] sm:$0xf] %vm3873_vm11, %v3786_v25  ;;  %v2244_v25 = vrot.slane %v2242_v13, 4  ;;  %v2235_v33 = vor.u32 %v2234_v19, %v2231_v18  ;;  %v2653_v12 = vsel %vm5565_vm13, %v4771_v63, %v2652_v58  ;;  %v3042_v13 = vld [vmem:[#allocation2 + $0xa0] sm:$0xf] }
 0x1c6   : > { %v3788_v32 = vpop.permute.xlu0 %3787  ;;  %2917 = vrot.lane.b32.xlu1 %v2834_v49, %s5129_s9  ;;  %v3330_v21 = vshll.u32 %v3042_v13, 16  ;;  %v3334_v23 = vshrl.u32 %v3042_v13, 16 }
 0x1c7   : > { %3879 = vst.msk [vmem:[#allocation3 + $0x14] sm:$0xf] %vm3873_vm11, %v3788_v32  ;;  %v2212_v32 = vrot.slane %v2211_v17, 4  ;;  %v2245_v41 = vor.u32 %v2244_v25, %v2240_v24  ;;  %v2236_v46 = vrot.slane %v2235_v33, 4  ;;  %v3040_v25 = vld [vmem:[#allocation2 + $0x98] sm:$0x1] }
 0x1c8   : > { %v3790_v42 = vpop.permute.xlu1 %3789  ;;  %3472 = vrot.lane.b32.xlu0 %v3261_v28, %s5130_s18  ;;  %v1951_v28 = vld [vmem:[#allocation2 + $0x98] sm:$0x1]  ;;  %v3316_v39 = vshll.u32 %v3040_v25, 16  ;;  %v3332_v40 = vrot.slane %v3330_v21, 5  ;;  %v1956_v25 = vld [vmem:[#allocation2 + $0xac] sm:$0xf] }
 0x1c9   : > { %3880 = vst.msk [vmem:[#allocation3 + $0x18] sm:$0xf] %vm3873_vm11, %v3790_v42  ;;  %v2248_v42 = vshll.u32 %v1951_v28, 16  ;;  %v2217_v35 = vsel %vm5295_vm9, %v2212_v32, %v2216_v7  ;;  %v2241_v55 = vsel %vm5295_vm9, %v2236_v46, %v2240_v24 }
 0x1ca   : > { %v3792_v5 = vpop.permute.xlu0 %3791  ;;  %3474 = vrot.lane.b32.xlu1 %v3271_v37, %s5130_s18  ;;  %v1746_v37 = vld [vmem:[#allocation2 + $0x94] sm:$0xf] }
 0x1cb   : > { %3881 = vst.msk [vmem:[#allocation3 + $0x1c] sm:$0xf] %vm3873_vm11, %v3792_v5  ;;  %v2507_v5 = vld [vmem:[#allocation2 + $0x84] sm:$0xe]  ;;  %v2250_v38 = vrot.slane %v2248_v42, 5 }
 0x1cc   : > { %v2365_v54 = vpop.permute.xlu1 %2364  ;;  %3476 = vrot.lane.b32.xlu0 %v3285_v44, %s5130_s18  ;;  %v2508_v44 = vld [vmem:[#allocation2 + $0x88] sm:$0xf] }
 0x1cd   : > { %2453 = vst.msk [vmem:[#allocation3 + $0x20] sm:$0xf] %vm2444_vm3, %v2365_v54  ;;  %v2645_v52 = vrot.slane %v2508_v44, 5  ;;  %v2837_v44 = vld [vmem:[#allocation2 + $0x9c] sm:$0xf] }
 0x1ce   : > { %v2367_v59 = vpop.permute.xlu0 %2366  ;;  %3478 = vrot.lane.b32.xlu1 %v3295_v51, %s5130_s18  ;;  %v5031_v60 = vld [vmem:[#allocation3 + $0x10] sm:$0xff]   ;;  %v2246_v51 = vrot.slane %v2245_v41, 4  ;;  %v3336_v41 = vrot.slane %v3334_v23, 4 }
 0x1cf   : > { %2454 = vst.msk [vmem:[#allocation3 + $0x24] sm:$0xf] %vm2444_vm3, %v2367_v59  ;;  %4926 = vmatprep.mubr.msk.bf16.mxu0 %vm4038_vm12, %v5031_v60  ;;  %v3038_v59 = vld [vmem:[#allocation2 + $0x90] sm:$0xf]  ;;  %v2647_v26 = vrot.slane %v2645_v52, 4 }
 0x1d0   : > { %v2369_v0 = vpop.permute.xlu1 %2368  ;;  %3809 = vrot.lane.b32.xlu0 %v3724_v56, %s5131_s29  ;;  %v4770_v56 = vrot.slane %v2507_v5, 9  ;;  %v2251_v60 = vsel %vm5295_vm9, %v2246_v51, %v2250_v38  ;;  %v3297_v2 = vshrl.u32 %v3038_v59, 16  ;;  %v3300_v3 = vshll.u32 %v3038_v59, 16  ;;  %v2838_v5 = vld [vmem:[#allocation2 + $0xa0] sm:$0xf] }
 0x1d1   : > { %2455 = vst.msk [vmem:[#allocation3 + $0x28] sm:$0xf] %vm2444_vm3, %v2369_v0  ;;  %v3039_v0 = vld [vmem:[#allocation2 + $0x94] sm:$0xf]  ;;  %v3318_v51 = vrot.slane %v3316_v39, 5  ;;  %v3337_v38 = vor.u32 %v3336_v41, %v3332_v40  ;;  %v2290_v41 = vshrl.u32 %v1956_v25, 16 }
 0x1d2   : > { %v2371_v9 = vpop.permute.xlu0 %2370  ;;  %3811 = vrot.lane.b32.xlu1 %v3727_v61, %s5131_s29  ;;  %v5032_v10 = vld [vmem:[#allocation3 + $0x18] sm:$0xff]   ;;  %v2512_v61 = vld [vmem:[#allocation2 + $0x98] sm:$0x1]  ;;  %v3310_v7 = vshrl.u32 %v3039_v0, 16  ;;  %v3302_v15 = vrot.slane %v3300_v3, 5 }
 0x1d3   : > { %2456 = vst.msk [vmem:[#allocation3 + $0x2c] sm:$0xf] %vm2444_vm3, %v2371_v9  ;;  %4927 = vmatmul.mubr.msk.bf16.gmra.mxu0 %vm4038_vm12, %v5032_v10  ;;  %v2655_v8 = vrot.slane %v2512_v61, 5  ;;  %v3041_v9 = vld [vmem:[#allocation2 + $0x9c] sm:$0xf]  ;;  %v2649_v10 = vsel %vm5565_vm13, %v2647_v26, %v2648_v50  ;;  %v3338_v59 = vrot.slane %v3337_v38, 4 }
 0x1d4   : > { %v2702_v14 = vpop.permute.xlu1 %2701  ;;  %3813 = vrot.lane.b32.xlu0 %v3731_v1, %s5131_s29  ;;  %v2646_v1 = vsel %vm5565_vm13, %v4770_v56, %v2645_v52  ;;  %v3324_v17 = vshll.u32 %v3041_v9, 16  ;;  %v3603_v50 = vld [vmem:[#allocation2 + $0xa0] sm:$0xf] }
 0x1d5   : > { %2790 = vst.msk [vmem:[#allocation3 + $0x20] sm:$0xf] %vm2781_vm4, %v2702_v14  ;;  %v3299_v14 = vrot.slane %v3297_v2, 4  ;;  %v2656_v19 = vsel %vm5565_vm13, %v2654_v6, %v2655_v8  ;;  %v1952_v6 = vld [vmem:[#allocation2 + $0x9c] sm:$0xf] }
 0x1d6   : > { %v2704_v49 = vpop.permute.xlu0 %2703  ;;  %3815 = vrot.lane.b32.xlu1 %v3734_v45, %s5131_s29  ;;  %v3306_v45 = vshll.u32 %v3039_v0, 16  ;;  %v3326_v32 = vrot.slane %v3324_v17, 5 }
 0x1d7   : > { %2791 = vst.msk [vmem:[#allocation3 + $0x24] sm:$0xf] %vm2781_vm4, %v2704_v49  ;;  %v3303_v28 = vor.u32 %v3302_v15, %v3299_v14  ;;  %v2253_v14 = vshrl.u32 %v1952_v6, 16  ;;  %v2256_v15 = vshll.u32 %v1952_v6, 16 }
 0x1d8   : > { %v2706_v27 = vpop.permute.xlu1 %2705  ;;  %1827 = vrot.lane.b32.xlu0 %v1743_v16, %s5126_s6  ;;  %v3321_v16 = vshrl.u32 %v3041_v9, 16  ;;  %v3308_v49 = vrot.slane %v3306_v45, 5  ;;  %v3604_v45 = vld [vmem:[#allocation2 + $0xa4] sm:$0x1] }
 0x1d9   : > { %2792 = vst.msk [vmem:[#allocation3 + $0x28] sm:$0xf] %vm2781_vm4, %v2706_v27  ;;  %v2835_v27 = vld [vmem:[#allocation2 + $0x90] sm:$0xf] }
 0x1da   : > { %v2708_v36 = vpop.permute.xlu0 %2707  ;;  %1829 = vrot.lane.b32.xlu1 %v1744_v20, %s5126_s6  ;;  %v3312_v20 = vrot.slane %v3310_v7, 4 }
 0x1db   : > { %2793 = vst.msk [vmem:[#allocation3 + $0x2c] sm:$0xf] %vm2781_vm4, %v2708_v36  ;;  %v2836_v36 = vld [vmem:[#allocation2 + $0x94] sm:$0xf] }
 0x1dc   : > { %v2896_v43 = vpop.permute.xlu1 %2895  ;;  %1831 = vrot.lane.b32.xlu0 %v1745_v31, %s5126_s6  ;;  %v3323_v31 = vrot.slane %v3321_v16, 4 }
 0x1dd   : > { %2984 = vst.msk [vmem:[#allocation3 + $0x20] sm:$0xf] %vm2975_vm5, %v2896_v43  ;;  %v3043_v43 = vld [vmem:[#allocation2 + $0xa4] sm:$0x1] }
 0x1de   : > { %v2898_v47 = vpop.permute.xlu0 %2897  ;;  %1833 = vrot.lane.b32.xlu1 %v1746_v37, %s5126_s6  ;;  %v3313_v37 = vor.u32 %v3312_v20, %v3308_v49  ;;  %v3327_v46 = vor.u32 %v3326_v32, %v3323_v31  ;;  %v3340_v52 = vshll.u32 %v3043_v43, 16  ;;  %v1954_v43 = vld [vmem:[#allocation2 + $0xa4] sm:$0x1] }
 0x1df   : > { %2985 = vst.msk [vmem:[#allocation3 + $0x24] sm:$0xf] %vm2975_vm5, %v2898_v47  ;;  %v2272_v38 = vshll.u32 %v1954_v43, 16 }
 0x1e0   : > { %v2900_v54 = vpop.permute.xlu1 %2899  ;;  %2388 = vrot.lane.b32.xlu0 %v2217_v35, %s5127_s7  ;;  %v3304_v35 = vrot.slane %v3303_v28, 4  ;;  %v2258_v28 = vrot.slane %v2256_v15, 5  ;;  %v3044_v15 = vld [vmem:[#allocation2 + $0xa8] sm:$0xf] }
 0x1e1   : > { %2986 = vst.msk [vmem:[#allocation3 + $0x28] sm:$0xf] %vm2975_vm5, %v2900_v54  ;;  %v3600_v54 = vld [vmem:[#allocation2 + $0x94] sm:$0xf] }
 0x1e2   : > { %v2902_v57 = vpop.permute.xlu0 %2901  ;;  %2390 = vrot.lane.b32.xlu1 %v2227_v48, %s5127_s7  ;;  %v3314_v48 = vrot.slane %v3313_v37, 4  ;;  %v3309_v22 = vsel %vm5295_vm9, %v3304_v35, %v3308_v49  ;;  %v3737_v26 = vrot.slane %v3600_v54, 5 }
 0x1e3   : > { %2987 = vst.msk [vmem:[#allocation3 + $0x2c] sm:$0xf] %vm2975_vm5, %v2902_v57  ;;  %v3599_v57 = vld [vmem:[#allocation2 + $0x90] sm:$0xe] }
 0x1e4   : > { %v3457_v62 = vpop.permute.xlu1 %3456  ;;  %2392 = vrot.lane.b32.xlu0 %v2241_v55, %s5127_s7  ;;  %v3328_v55 = vrot.slane %v3327_v46, 4  ;;  %v3319_v58 = vsel %vm5295_vm9, %v3314_v48, %v3318_v51  ;;  %v4786_v0 = vrot.slane %v3599_v57, 9  ;;  %v3739_v9 = vrot.slane %v3737_v26, 4  ;;  %v1748_v48 = vld [vmem:[#allocation2 + $0xa0] sm:$0xf] }
 0x1e5   : > { %3545 = vst.msk [vmem:[#allocation3 + $0x20] sm:$0xf] %vm3536_vm6, %v3457_v62  ;;  %v3601_v62 = vld [vmem:[#allocation2 + $0x98] sm:$0x1] }
 0x1e6   : > { %v3459_v4 = vpop.permute.xlu0 %3458  ;;  %2394 = vrot.lane.b32.xlu1 %v2251_v60, %s5127_s7  ;;  %v3342_v60 = vrot.slane %v3340_v52, 5  ;;  %v3333_v63 = vsel %vm5295_vm9, %v3328_v55, %v3332_v40  ;;  %v3738_v13 = vsel %vm5565_vm13, %v4786_v0, %v3737_v26  ;;  %v2286_v40 = vshll.u32 %v1956_v25, 16  ;;  %v1749_v55 = vld [vmem:[#allocation2 + $0xa8] sm:$0xf] }
 0x1e7   : > { %3546 = vst.msk [vmem:[#allocation3 + $0x24] sm:$0xf] %vm3536_vm6, %v3459_v4  ;;  %v3744_v4 = vrot.slane %v3603_v50, 5  ;;  %v3348_v25 = vshll.u32 %v3044_v15, 16 }
 0x1e8   : > { %v3461_v11 = vpop.permute.xlu1 %3460  ;;  %2725 = vrot.lane.b32.xlu0 %v2646_v1, %s5128_s8  ;;  %v3602_v1 = vld [vmem:[#allocation2 + $0x9c] sm:$0xe]  ;;  %v3343_v8 = vsel %vm5295_vm9, %v3338_v59, %v3342_v60  ;;  %v2288_v52 = vrot.slane %v2286_v40, 5  ;;  %v2274_v60 = vrot.slane %v2272_v38, 5 }
 0x1e9   : > { %3547 = vst.msk [vmem:[#allocation3 + $0x28] sm:$0xf] %vm3536_vm6, %v3461_v11  ;;  %v4787_v11 = vrot.slane %v3602_v1, 9  ;;  %v3746_v17 = vrot.slane %v3744_v4, 4  ;;  %v3350_v43 = vrot.slane %v3348_v25, 5 }
 0x1ea   : > { %v3463_v18 = vpop.permute.xlu0 %3462  ;;  %2727 = vrot.lane.b32.xlu1 %v2649_v10, %s5128_s8  ;;  %v3740_v10 = vrot.slane %v3601_v62, 5  ;;  %v2514_v62 = vld [vmem:[#allocation2 + $0xa0] sm:$0xf] }
 0x1eb   : > { %3548 = vst.msk [vmem:[#allocation3 + $0x2c] sm:$0xf] %vm3536_vm6, %v3463_v18  ;;  %v3747_v18 = vrot.slane %v3604_v45, 5  ;;  %v2515_v45 = vld [vmem:[#allocation2 + $0xa4] sm:$0x1] }
 0x1ec   : > { %v3794_v24 = vpop.permute.xlu1 %3793  ;;  %2729 = vrot.lane.b32.xlu0 %v2653_v12, %s5128_s8  ;;  %v1953_v12 = vld [vmem:[#allocation2 + $0xa0] sm:$0xf]  ;;  %v3741_v49 = vsel %vm5565_vm13, %v3739_v9, %v3740_v10  ;;  %v2517_v9 = vld [vmem:[#allocation2 + $0xac] sm:$0xf] }
 0x1ed   : > { %3882 = vst.msk [vmem:[#allocation3 + $0x20] sm:$0xf] %vm3873_vm11, %v3794_v24  ;;  %v2262_v20 = vshll.u32 %v1953_v12, 16  ;;  %v2266_v21 = vshrl.u32 %v1953_v12, 16  ;;  %v3745_v24 = vsel %vm5565_vm13, %v4787_v11, %v3744_v4  ;;  %v2516_v12 = vld [vmem:[#allocation2 + $0xa8] sm:$0xe] }
 0x1ee   : > { %v3796_v33 = vpop.permute.xlu0 %3795  ;;  %2731 = vrot.lane.b32.xlu1 %v2656_v19, %s5128_s8  ;;  %v1955_v19 = vld [vmem:[#allocation2 + $0xa8] sm:$0xf] }
 0x1ef   : > { %3883 = vst.msk [vmem:[#allocation3 + $0x24] sm:$0xf] %vm3873_vm11, %v3796_v33  ;;  %v2277_v31 = vshrl.u32 %v1955_v19, 16  ;;  %v2280_v32 = vshll.u32 %v1955_v19, 16  ;;  %v2264_v37 = vrot.slane %v2262_v20, 5  ;;  %v2268_v39 = vrot.slane %v2266_v21, 4 }
 0x1f0   : > { %v3798_v42 = vpop.permute.xlu1 %3797  ;;  %2919 = vrot.lane.b32.xlu0 %v2835_v27, %s5129_s9  ;;  %v2255_v27 = vrot.slane %v2253_v14, 4  ;;  %v2666_v14 = vrot.slane %v2517_v9, 5  ;;  %v2518_v19 = vld [vmem:[#allocation2 + $0xb0] sm:$0x1]  ;;  %v4773_v20 = vrot.slane %v2516_v12, 9 }
 0x1f1   : > { %3884 = vst.msk [vmem:[#allocation3 + $0x28] sm:$0xf] %vm3873_vm11, %v3798_v42  ;;  %v2279_v46 = vrot.slane %v2277_v31, 4  ;;  %v2269_v51 = vor.u32 %v2268_v39, %v2264_v37  ;;  %v3045_v21 = vld [vmem:[#allocation2 + $0xac] sm:$0xf]  ;;  %v2669_v31 = vrot.slane %v2518_v19, 5 }
 0x1f2   : > { %v3800_v47 = vpop.permute.xlu0 %3799  ;;  %2921 = vrot.lane.b32.xlu1 %v2836_v36, %s5129_s9  ;;  %v3748_v36 = vsel %vm5565_vm13, %v3746_v17, %v3747_v18  ;;  %v2259_v35 = vor.u32 %v2258_v28, %v2255_v27  ;;  %v2662_v18 = vrot.slane %v2515_v45, 5  ;;  %v2668_v28 = vrot.slane %v2666_v14, 4  ;;  %v3609_v19 = vld [vmem:[#allocation2 + $0xb8] sm:$0xf] }
 0x1f3   : > { %3885 = vst.msk [vmem:[#allocation3 + $0x2c] sm:$0xf] %vm3873_vm11, %v3800_v47  ;;  %v2282_v47 = vrot.slane %v2280_v32, 5  ;;  %v2270_v59 = vrot.slane %v2269_v51, 4  ;;  %v3047_v32 = vld [vmem:[#allocation2 + $0xb4] sm:$0xf]  ;;  %v2667_v40 = vsel %vm5565_vm13, %v4773_v20, %v2666_v14 }
 0x1f4   : > { %v2373_v53 = vpop.permute.xlu1 %2372  ;;  %2923 = vrot.lane.b32.xlu0 %v2837_v44, %s5129_s9  ;;  %v1747_v44 = vld [vmem:[#allocation2 + $0x9c] sm:$0xf]  ;;  %v3605_v14 = vld [vmem:[#allocation2 + $0xa8] sm:$0xe]  ;;  %v3607_v20 = vld [vmem:[#allocation2 + $0xb0] sm:$0x1] }
 0x1f5   : > { %2457 = vst.msk [vmem:[#allocation3 + $0x30] sm:$0xf] %vm2444_vm3, %v2373_v53  ;;  %v2292_v53 = vrot.slane %v2290_v41, 4  ;;  %v3048_v41 = vld [vmem:[#allocation2 + $0xb8] sm:$0xf] }
 0x1f6   : > { %v2375_v56 = vpop.permute.xlu0 %2374  ;;  %2925 = vrot.lane.b32.xlu1 %v2838_v5, %s5129_s9  ;;  %v5033_v30 = vld [vmem:[#allocation3 + $0x20] sm:$0xff]   ;;  %v3378_v51 = vshll.u32 %v3048_v41, 16  ;;  %v3382_v38 = vshrl.u32 %v3048_v41, 16 }
 0x1f7   : > { %2458 = vst.msk [vmem:[#allocation3 + $0x34] sm:$0xf] %vm2444_vm3, %v2375_v56  ;;  %4930 = vmatprep.mubr.msk.bf16.mxu0 %vm4038_vm12, %v5033_v30  ;;  %v2260_v56 = vrot.slane %v2259_v35, 4  ;;  %v2283_v30 = vor.u32 %v2282_v47, %v2279_v46  ;;  %v2293_v26 = vor.u32 %v2292_v53, %v2288_v52  ;;  %v3372_v35 = vshll.u32 %v3047_v32, 16  ;;  %v3046_v53 = vld [vmem:[#allocation2 + $0xb0] sm:$0x1] }
 0x1f8   : > { %v2377_v61 = vpop.permute.xlu1 %2376  ;;  %3480 = vrot.lane.b32.xlu0 %v3309_v22, %s5130_s18  ;;  %v1957_v22 = vld [vmem:[#allocation2 + $0xb0] sm:$0x1]  ;;  %v2670_v47 = vsel %vm5565_vm13, %v2668_v28, %v2669_v31  ;;  %v1958_v28 = vld [vmem:[#allocation2 + $0xb4] sm:$0xf] }
 0x1f9   : > { %2459 = vst.msk [vmem:[#allocation3 + $0x38] sm:$0xf] %vm2444_vm3, %v2377_v61  ;;  %v2296_v50 = vshll.u32 %v1957_v22, 16  ;;  %v2284_v0 = vrot.slane %v2283_v30, 4  ;;  %v2294_v4 = vrot.slane %v2293_v26, 4  ;;  %v3380_v26 = vrot.slane %v3378_v51, 5 }
 0x1fa   : > { %v2379_v2 = vpop.permute.xlu0 %2378  ;;  %3482 = vrot.lane.b32.xlu1 %v3319_v58, %s5130_s18  ;;  %v5034_v3 = vld [vmem:[#allocation3 + $0x28] sm:$0xff]   ;;  %v1750_v58 = vld [vmem:[#allocation2 + $0xac] sm:$0xf] }
 0x1fb   : > { %2460 = vst.msk [vmem:[#allocation3 + $0x3c] sm:$0xf] %vm2444_vm3, %v2379_v2  ;;  %4931 = vmatmul.mubr.msk.bf16.gmra.mxu0 %vm4038_vm12, %v5034_v3  ;;  %v2513_v2 = vld [vmem:[#allocation2 + $0x9c] sm:$0xe]  ;;  %v2275_v3 = vsel %vm5295_vm9, %v2270_v59, %v2274_v60  ;;  %v2298_v6 = vrot.slane %v2296_v50, 5  ;;  %v3364_v60 = vshll.u32 %v3046_v53, 16 }
 0x1fc   : > { %v2710_v7 = vpop.permute.xlu1 %2709  ;;  %3484 = vrot.lane.b32.xlu0 %v3333_v63, %s5130_s18  ;;  %v2265_v63 = vsel %vm5295_vm9, %v2260_v56, %v2264_v37  ;;  %v4772_v11 = vrot.slane %v2513_v2, 9  ;;  %v3358_v37 = vshrl.u32 %v3045_v21, 16  ;;  %v3374_v56 = vrot.slane %v3372_v35, 5  ;;  %v1962_v53 = vld [vmem:[#allocation2 + $0xc4] sm:$0xf] }
 0x1fd   : > { %2794 = vst.msk [vmem:[#allocation3 + $0x30] sm:$0xf] %vm2781_vm4, %v2710_v7  ;;  %v2289_v7 = vsel %vm5295_vm9, %v2284_v0, %v2288_v52  ;;  %v3384_v50 = vrot.slane %v3382_v38, 4 }
 0x1fe   : > { %v2712_v16 = vpop.permute.xlu0 %2711  ;;  %3486 = vrot.lane.b32.xlu1 %v3343_v8, %s5130_s18  ;;  %v2659_v8 = vrot.slane %v2514_v62, 5  ;;  %v3049_v62 = vld [vmem:[#allocation2 + $0xbc] sm:$0x1] }
 0x1ff   : > { %2795 = vst.msk [vmem:[#allocation3 + $0x34] sm:$0xf] %vm2781_vm4, %v2712_v16  ;;  %v2299_v16 = vsel %vm5295_vm9, %v2294_v4, %v2298_v6  ;;  %v2842_v4 = vld [vmem:[#allocation2 + $0xb8] sm:$0xf]  ;;  %v3385_v9 = vor.u32 %v3384_v50, %v3380_v26 }
 0x200   : > { %v2714_v23 = vpop.permute.xlu1 %2713  ;;  %3817 = vrot.lane.b32.xlu0 %v3738_v13, %s5131_s29  ;;  %v2661_v17 = vrot.slane %v2659_v8, 4 }
 0x201   : > { %2796 = vst.msk [vmem:[#allocation3 + $0x38] sm:$0xf] %vm2781_vm4, %v2714_v23  ;;  %v2660_v23 = vsel %vm5565_vm13, %v4772_v11, %v2659_v8  ;;  %v3366_v8 = vrot.slane %v3364_v60, 5  ;;  %v2334_v60 = vshll.u32 %v1962_v53, 16 }
 0x202   : > { %v2716_v33 = vpop.permute.xlu0 %2715  ;;  %3819 = vrot.lane.b32.xlu1 %v3741_v49, %s5131_s29 }
 0x203   : > { %2797 = vst.msk [vmem:[#allocation3 + $0x3c] sm:$0xf] %vm2781_vm4, %v2716_v33  ;;  %v2663_v33 = vsel %vm5565_vm13, %v2661_v17, %v2662_v18 }
 0x204   : > { %v2904_v42 = vpop.permute.xlu1 %2903  ;;  %3821 = vrot.lane.b32.xlu0 %v3745_v24, %s5131_s29  ;;  %v3345_v24 = vshrl.u32 %v3044_v15, 16 }
 0x205   : > { %2988 = vst.msk [vmem:[#allocation3 + $0x30] sm:$0xf] %vm2975_vm5, %v2904_v42 }
 0x206   : > { %v2906_v5 = vpop.permute.xlu0 %2905  ;;  %3823 = vrot.lane.b32.xlu1 %v3748_v36, %s5131_s29  ;;  %v3354_v36 = vshll.u32 %v3045_v21, 16  ;;  %v3347_v42 = vrot.slane %v3345_v24, 4  ;;  %v3608_v24 = vld [vmem:[#allocation2 + $0xb4] sm:$0xe] }
 0x207   : > { %2989 = vst.msk [vmem:[#allocation3 + $0x34] sm:$0xf] %vm2975_vm5, %v2906_v5 }
 0x208   : > { %v2908_v54 = vpop.permute.xlu1 %2907  ;;  %1835 = vrot.lane.b32.xlu0 %v1747_v44, %s5126_s6  ;;  %v3369_v44 = vshrl.u32 %v3047_v32, 16  ;;  %v3356_v5 = vrot.slane %v3354_v36, 5  ;;  %v3351_v22 = vor.u32 %v3350_v43, %v3347_v42  ;;  %v3610_v36 = vld [vmem:[#allocation2 + $0xbc] sm:$0x1]  ;;  %v2301_v42 = vshrl.u32 %v1958_v28, 16 }
 0x209   : > { %2990 = vst.msk [vmem:[#allocation3 + $0x38] sm:$0xf] %vm2975_vm5, %v2908_v54  ;;  %v2839_v54 = vld [vmem:[#allocation2 + $0xa8] sm:$0xf]  ;;  %v2304_v43 = vshll.u32 %v1958_v28, 16 }
 0x20a   : > { %v2910_v57 = vpop.permute.xlu0 %2909  ;;  %1837 = vrot.lane.b32.xlu1 %v1748_v48, %s5126_s6  ;;  %v3360_v48 = vrot.slane %v3358_v37, 4  ;;  %v3352_v0 = vrot.slane %v3351_v22, 4 }
 0x20b   : > { %2991 = vst.msk [vmem:[#allocation3 + $0x3c] sm:$0xf] %vm2975_vm5, %v2910_v57  ;;  %v2306_v22 = vrot.slane %v2304_v43, 5  ;;  %v3050_v43 = vld [vmem:[#allocation2 + $0xc0] sm:$0xf] }
 0x20c   : > { %v3465_v61 = vpop.permute.xlu1 %3464  ;;  %1839 = vrot.lane.b32.xlu0 %v1749_v55, %s5126_s6  ;;  %v3371_v55 = vrot.slane %v3369_v44, 4  ;;  %v3361_v59 = vor.u32 %v3360_v48, %v3356_v5  ;;  %v3357_v11 = vsel %vm5295_vm9, %v3352_v0, %v3356_v5 }
 0x20d   : > { %3549 = vst.msk [vmem:[#allocation3 + $0x30] sm:$0xf] %vm3536_vm6, %v3465_v61 }
 0x20e   : > { %v3467_v1 = vpop.permute.xlu0 %3466  ;;  %1841 = vrot.lane.b32.xlu1 %v1750_v58, %s5126_s6  ;;  %v2840_v58 = vld [vmem:[#allocation2 + $0xac] sm:$0xf]  ;;  %v3362_v6 = vrot.slane %v3361_v59, 4 }
 0x20f   : > { %3550 = vst.msk [vmem:[#allocation3 + $0x34] sm:$0xf] %vm3536_vm6, %v3467_v1  ;;  %v3375_v1 = vor.u32 %v3374_v56, %v3371_v55 }
 0x210   : > { %v3469_v10 = vpop.permute.xlu1 %3468  ;;  %2396 = vrot.lane.b32.xlu0 %v2265_v63, %s5127_s7  ;;  %v2841_v63 = vld [vmem:[#allocation2 + $0xb4] sm:$0xf]  ;;  %v3367_v15 = vsel %vm5295_vm9, %v3362_v6, %v3366_v8  ;;  %v2336_v8 = vrot.slane %v2334_v60, 5 }
 0x211   : > { %3551 = vst.msk [vmem:[#allocation3 + $0x38] sm:$0xf] %vm3536_vm6, %v3469_v10  ;;  %v3388_v10 = vshll.u32 %v3049_v62, 16  ;;  %v3376_v12 = vrot.slane %v3375_v1, 4  ;;  %v1751_v62 = vld [vmem:[#allocation2 + $0xb4] sm:$0xf] }
 0x212   : > { %v3471_v13 = vpop.permute.xlu0 %3470  ;;  %2398 = vrot.lane.b32.xlu1 %v2275_v3, %s5127_s7 }
 0x213   : > { %3552 = vst.msk [vmem:[#allocation3 + $0x3c] sm:$0xf] %vm3536_vm6, %v3471_v13  ;;  %v3390_v17 = vrot.slane %v3388_v10, 5  ;;  %v3381_v21 = vsel %vm5295_vm9, %v3376_v12, %v3380_v26  ;;  %v2338_v26 = vshrl.u32 %v1962_v53, 16  ;;  %v3396_v53 = vshll.u32 %v3050_v43, 16 }
 0x214   : > { %v3802_v49 = vpop.permute.xlu1 %3801  ;;  %2400 = vrot.lane.b32.xlu0 %v2289_v7, %s5127_s7  ;;  %v3606_v7 = vld [vmem:[#allocation2 + $0xac] sm:$0xf] }
 0x215   : > { %3886 = vst.msk [vmem:[#allocation3 + $0x30] sm:$0xf] %vm3873_vm11, %v3802_v49  ;;  %v3751_v18 = vrot.slane %v3606_v7, 5  ;;  %v1753_v7 = vld [vmem:[#allocation2 + $0xc0] sm:$0xf] }
 0x216   : > { %v3804_v27 = vpop.permute.xlu0 %3803  ;;  %2402 = vrot.lane.b32.xlu1 %v2299_v16, %s5127_s7  ;;  %v3386_v16 = vrot.slane %v3385_v9, 4  ;;  %v2340_v9 = vrot.slane %v2338_v26, 4  ;;  %v3054_v26 = vld [vmem:[#allocation2 + $0xd0] sm:$0xf] }
 0x217   : > { %3887 = vst.msk [vmem:[#allocation3 + $0x34] sm:$0xf] %vm3873_vm11, %v3804_v27  ;;  %v3758_v27 = vrot.slane %v3609_v19, 5  ;;  %v3753_v32 = vrot.slane %v3751_v18, 4 }
 0x218   : > { %v3806_v39 = vpop.permute.xlu1 %3805  ;;  %2733 = vrot.lane.b32.xlu0 %v2660_v23, %s5128_s8  ;;  %v4788_v23 = vrot.slane %v3605_v14, 9  ;;  %v3391_v31 = vsel %vm5295_vm9, %v3386_v16, %v3390_v17  ;;  %v1754_v14 = vld [vmem:[#allocation2 + $0xc4] sm:$0xf]  ;;  %v2341_v17 = vor.u32 %v2340_v9, %v2336_v8 }
 0x219   : > { %3888 = vst.msk [vmem:[#allocation3 + $0x38] sm:$0xf] %vm3873_vm11, %v3806_v39  ;;  %v4789_v39 = vrot.slane %v3608_v24, 9  ;;  %v3760_v35 = vrot.slane %v3758_v27, 4  ;;  %v2519_v24 = vld [vmem:[#allocation2 + $0xb4] sm:$0xe] }
 0x21a   : > { %v3808_v46 = vpop.permute.xlu0 %3807  ;;  %2735 = vrot.lane.b32.xlu1 %v2663_v33, %s5128_s8  ;;  %v3754_v33 = vrot.slane %v3607_v20, 5  ;;  %v3752_v41 = vsel %vm5565_vm13, %v4788_v23, %v3751_v18 }
 0x21b   : > { %3889 = vst.msk [vmem:[#allocation3 + $0x3c] sm:$0xf] %vm3873_vm11, %v3808_v46  ;;  %v3761_v46 = vrot.slane %v3610_v36, 5  ;;  %v2521_v36 = vld [vmem:[#allocation2 + $0xbc] sm:$0x1] }
 0x21c   : > { %v1822_v52 = vpop.permute.xlu1 %1821  ;;  %2737 = vrot.lane.b32.xlu0 %v2667_v40, %s5128_s8  ;;  %v1959_v40 = vld [vmem:[#allocation2 + $0xb8] sm:$0xf]  ;;  %v3755_v5 = vsel %vm5565_vm13, %v3753_v32, %v3754_v33  ;;  %v2523_v32 = vld [vmem:[#allocation2 + $0xc4] sm:$0xf] }
 0x21d   : > { %1901 = vst.msk [vmem:[#allocation3 + $0x44] sm:$0xf] %vm1883_vm2, %v1822_v52  ;;  %v2310_v48 = vshll.u32 %v1959_v40, 16  ;;  %v2314_v51 = vshrl.u32 %v1959_v40, 16  ;;  %v3759_v52 = vsel %vm5565_vm13, %v4789_v39, %v3758_v27  ;;  %v2342_v27 = vrot.slane %v2341_v17, 4 }
 0x21e   : > { %2739 = vrot.lane.b32.xlu1 %v2670_v47, %s5128_s8  ;;  %v5035_v30 = vld [vmem:[#allocation3 + $0x30] sm:$0xff]   ;;  %v1824_v57 = vpop.permute.xlu0 %1823  ;;  %v1961_v47 = vld [vmem:[#allocation2 + $0xc0] sm:$0xf]  ;;  %v4774_v39 = vrot.slane %v2519_v24, 9 }
 0x21f   : > { %1902 = vst.msk [vmem:[#allocation3 + $0x48] sm:$0xf] %vm1883_vm2, %v1824_v57  ;;  %4934 = vmatprep.mubr.msk.bf16.mxu0 %vm4038_vm12, %v5035_v30  ;;  %v2325_v55 = vshrl.u32 %v1961_v47, 16  ;;  %v2328_v56 = vshll.u32 %v1961_v47, 16  ;;  %v3762_v57 = vsel %vm5565_vm13, %v3760_v35, %v3761_v46  ;;  %v2316_v59 = vrot.slane %v2314_v51, 4 }
 0x220   : > { %v1826_v61 = vpop.permute.xlu1 %1825  ;;  %2927 = vrot.lane.b32.xlu0 %v2839_v54, %s5129_s9  ;;  %v2303_v54 = vrot.slane %v2301_v42, 4  ;;  %v2522_v40 = vld [vmem:[#allocation2 + $0xc0] sm:$0xe]  ;;  %v2680_v42 = vrot.slane %v2523_v32, 5  ;;  %v2676_v46 = vrot.slane %v2521_v36, 5 }
 0x221   : > { %1903 = vst.msk [vmem:[#allocation3 + $0x4c] sm:$0xf] %vm1883_vm2, %v1826_v61  ;;  %v1960_v61 = vld [vmem:[#allocation2 + $0xbc] sm:$0x1]  ;;  %v2327_v0 = vrot.slane %v2325_v55, 4  ;;  %v2330_v1 = vrot.slane %v2328_v56, 5 }
 0x222   : > { %2929 = vrot.lane.b32.xlu1 %v2840_v58, %s5129_s9  ;;  %v5036_v2 = vld [vmem:[#allocation3 + $0x38] sm:$0xff]   ;;  %v2381_v3 = vpop.permute.xlu0 %2380  ;;  %v2312_v58 = vrot.slane %v2310_v48, 5  ;;  %v2320_v6 = vshll.u32 %v1960_v61, 16  ;;  %v2524_v47 = vld [vmem:[#allocation2 + $0xc8] sm:$0x1]  ;;  %v4775_v48 = vrot.slane %v2522_v40, 9 }
 0x223   : > { %2461 = vst.msk [vmem:[#allocation3 + $0x40] sm:$0xf] %vm2444_vm3, %v2381_v3  ;;  %4935 = vmatmul.mubr.msk.bf16.gmra.mxu0 %vm4038_vm12, %v5036_v2  ;;  %v1752_v3 = vld [vmem:[#allocation2 + $0xb8] sm:$0xf]  ;;  %v2331_v12 = vor.u32 %v2330_v1, %v2327_v0  ;;  %v3051_v51 = vld [vmem:[#allocation2 + $0xc4] sm:$0xf] }
 0x224   : > { %v2383_v45 = vpop.permute.xlu1 %2382  ;;  %2931 = vrot.lane.b32.xlu0 %v2841_v63, %s5129_s9  ;;  %v2307_v63 = vor.u32 %v2306_v22, %v2303_v54  ;;  %v2322_v16 = vrot.slane %v2320_v6, 5  ;;  %v2682_v22 = vrot.slane %v2680_v42, 4  ;;  %v2683_v55 = vrot.slane %v2524_v47, 5  ;;  %v3053_v56 = vld [vmem:[#allocation2 + $0xcc] sm:$0xf] }
 0x225   : > { %2462 = vst.msk [vmem:[#allocation3 + $0x44] sm:$0xf] %vm2444_vm3, %v2383_v45  ;;  %v1963_v45 = vld [vmem:[#allocation2 + $0xc8] sm:$0x1]  ;;  %v2681_v60 = vsel %vm5565_vm13, %v4775_v48, %v2680_v42  ;;  %v3398_v61 = vrot.slane %v3396_v53, 5  ;;  %v3430_v6 = vshrl.u32 %v3054_v26, 16 }
 0x226   : > { %2933 = vrot.lane.b32.xlu1 %v2842_v4, %s5129_s9  ;;  %v2385_v13 = vpop.permute.xlu0 %2384  ;;  %v2317_v4 = vor.u32 %v2316_v59, %v2312_v58  ;;  %v2344_v18 = vshll.u32 %v1963_v45, 16  ;;  %v2684_v1 = vsel %vm5565_vm13, %v2682_v22, %v2683_v55  ;;  %v2843_v45 = vld [vmem:[#allocation2 + $0xc0] sm:$0xf]  ;;  %v3615_v48 = vld [vmem:[#allocation2 + $0xd0] sm:$0xf] }
 0x227   : > { %2463 = vst.msk [vmem:[#allocation3 + $0x48] sm:$0xf] %vm2444_vm3, %v2385_v13  ;;  %v3611_v42 = vld [vmem:[#allocation2 + $0xc0] sm:$0xe]  ;;  %v3614_v53 = vld [vmem:[#allocation2 + $0xcc] sm:$0xe] }
 0x228   : > { %v2387_v49 = vpop.permute.xlu1 %2386  ;;  %3488 = vrot.lane.b32.xlu0 %v3357_v11, %s5130_s18  ;;  %v2308_v11 = vrot.slane %v2307_v63, 4  ;;  %v2346_v28 = vrot.slane %v2344_v18, 5  ;;  %v3420_v63 = vshll.u32 %v3053_v56, 16  ;;  %v3432_v18 = vrot.slane %v3430_v6, 4 }
 0x229   : > { %2464 = vst.msk [vmem:[#allocation3 + $0x4c] sm:$0xf] %vm2444_vm3, %v2387_v49  ;;  %v2520_v49 = vld [vmem:[#allocation2 + $0xb8] sm:$0xf] }
 0x22a   : > { %3490 = vrot.lane.b32.xlu1 %v3367_v15, %s5130_s18  ;;  %v2718_v25 = vpop.permute.xlu0 %2717  ;;  %v2318_v15 = vrot.slane %v2317_v4, 4  ;;  %v2313_v20 = vsel %vm5295_vm9, %v2308_v11, %v2312_v58  ;;  %v3406_v58 = vshrl.u32 %v3051_v51, 16  ;;  %v3426_v4 = vshll.u32 %v3054_v26, 16 }
 0x22b   : > { %2798 = vst.msk [vmem:[#allocation3 + $0x40] sm:$0xf] %vm2781_vm4, %v2718_v25 }
 0x22c   : > { %v2720_v37 = vpop.permute.xlu1 %2719  ;;  %3492 = vrot.lane.b32.xlu0 %v3381_v21, %s5130_s18  ;;  %v2332_v21 = vrot.slane %v2331_v12, 4  ;;  %v2323_v25 = vsel %vm5295_vm9, %v2318_v15, %v2322_v16  ;;  %v3422_v12 = vrot.slane %v3420_v63, 5  ;;  %v3428_v17 = vrot.slane %v3426_v4, 5 }
 0x22d   : > { %2799 = vst.msk [vmem:[#allocation3 + $0x44] sm:$0xf] %vm2781_vm4, %v2720_v37 }
 0x22e   : > { %3494 = vrot.lane.b32.xlu1 %v3391_v31, %s5130_s18  ;;  %v2722_v44 = vpop.permute.xlu0 %2721  ;;  %v2673_v31 = vrot.slane %v2520_v49, 5  ;;  %v2337_v37 = vsel %vm5295_vm9, %v2332_v21, %v2336_v8  ;;  %v2845_v21 = vld [vmem:[#allocation2 + $0xcc] sm:$0xf]  ;;  %v3433_v32 = vor.u32 %v3432_v18, %v3428_v17 }
 0x22f   : > { %2800 = vst.msk [vmem:[#allocation3 + $0x48] sm:$0xf] %vm2781_vm4, %v2722_v44  ;;  %v2347_v44 = vsel %vm5295_vm9, %v2342_v27, %v2346_v28  ;;  %v2846_v27 = vld [vmem:[#allocation2 + $0xd0] sm:$0xf] }
 0x230   : > { %v2724_v38 = vpop.permute.xlu1 %2723  ;;  %3825 = vrot.lane.b32.xlu0 %v3752_v41, %s5131_s29  ;;  %v2675_v35 = vrot.slane %v2673_v31, 4 }
 0x231   : > { %2801 = vst.msk [vmem:[#allocation3 + $0x4c] sm:$0xf] %vm2781_vm4, %v2724_v38  ;;  %v2674_v38 = vsel %vm5565_vm13, %v4774_v39, %v2673_v31 }
 0x232   : > { %3827 = vrot.lane.b32.xlu1 %v3755_v5, %s5131_s29  ;;  %v2912_v30 = vpop.permute.xlu0 %2911 }
 0x233   : > { %2992 = vst.msk [vmem:[#allocation3 + $0x40] sm:$0xf] %vm2975_vm5, %v2912_v30  ;;  %v2677_v30 = vsel %vm5565_vm13, %v2675_v35, %v2676_v46 }
 0x234   : > { %v2914_v50 = vpop.permute.xlu1 %2913  ;;  %3829 = vrot.lane.b32.xlu0 %v3759_v52, %s5131_s29  ;;  %v3393_v52 = vshrl.u32 %v3050_v43, 16 }
 0x235   : > { %2993 = vst.msk [vmem:[#allocation3 + $0x44] sm:$0xf] %vm2975_vm5, %v2914_v50 }
 0x236   : > { %3831 = vrot.lane.b32.xlu1 %v3762_v57, %s5131_s29  ;;  %v2916_v2 = vpop.permute.xlu0 %2915  ;;  %v3402_v57 = vshll.u32 %v3051_v51, 16  ;;  %v3395_v50 = vrot.slane %v3393_v52, 4 }
 0x237   : > { %2994 = vst.msk [vmem:[#allocation3 + $0x48] sm:$0xf] %vm2975_vm5, %v2916_v2 }
 0x238   : > { %v2918_v10 = vpop.permute.xlu1 %2917  ;;  %1843 = vrot.lane.b32.xlu0 %v1751_v62, %s5126_s6  ;;  %v3417_v62 = vshrl.u32 %v3053_v56, 16  ;;  %v3404_v2 = vrot.slane %v3402_v57, 5  ;;  %v3772_v56 = vrot.slane %v3615_v48, 5  ;;  %v3616_v57 = vld [vmem:[#allocation2 + $0xd4] sm:$0x1] }
 0x239   : > { %2995 = vst.msk [vmem:[#allocation3 + $0x4c] sm:$0xf] %vm2975_vm5, %v2918_v10  ;;  %v3052_v10 = vld [vmem:[#allocation2 + $0xc8] sm:$0x1] }
 0x23a   : > { %1845 = vrot.lane.b32.xlu1 %v1752_v3, %s5126_s6  ;;  %v3473_v13 = vpop.permute.xlu0 %3472  ;;  %v3408_v3 = vrot.slane %v3406_v58, 4  ;;  %v3419_v11 = vrot.slane %v3417_v62, 4  ;;  %v3412_v16 = vshll.u32 %v3052_v10, 16  ;;  %v3774_v26 = vrot.slane %v3772_v56, 4 }
 0x23b   : > { %3553 = vst.msk [vmem:[#allocation3 + $0x40] sm:$0xf] %vm3536_vm6, %v3473_v13 }
 0x23c   : > { %v3475_v19 = vpop.permute.xlu1 %3474  ;;  %1847 = vrot.lane.b32.xlu0 %v1753_v7, %s5126_s6  ;;  %v3399_v7 = vor.u32 %v3398_v61, %v3395_v50  ;;  %v3409_v15 = vor.u32 %v3408_v3, %v3404_v2  ;;  %v3423_v24 = vor.u32 %v3422_v12, %v3419_v11  ;;  %v3414_v31 = vrot.slane %v3412_v16, 5 }
 0x23d   : > { %3554 = vst.msk [vmem:[#allocation3 + $0x44] sm:$0xf] %vm3536_vm6, %v3475_v19  ;;  %v3775_v50 = vrot.slane %v3616_v57, 5 }
 0x23e   : > { %1849 = vrot.lane.b32.xlu1 %v1754_v14, %s5126_s6  ;;  %v3477_v23 = vpop.permute.xlu0 %3476  ;;  %v2844_v14 = vld [vmem:[#allocation2 + $0xc4] sm:$0xf]  ;;  %v3410_v28 = vrot.slane %v3409_v15, 4  ;;  %v3424_v40 = vrot.slane %v3423_v24, 4  ;;  %s4860_s6 = sshll.u32 %s5113_s15, 5  ;;  %s5132_s15 = smov [#allocation4]  }
 0x23f   : > { %3555 = vst.msk [vmem:[#allocation3 + $0x48] sm:$0xf] %vm3536_vm6, %v3477_v23  ;;  %v3400_v23 = vrot.slane %v3399_v7, 4  ;;  %s6601_s11 = scalar_lea.hbm %s6644_s3, %s4860_s6  ;;  %s5049_s21 = sshll.u32 %s5132_s15, 4  ;;  %s5050_s21 = int_to_ptr.vmem [resolvable:$false] %s5049_s21 }
 0x240   : > { %v3479_v33 = vpop.permute.xlu1 %3478  ;;  %2404 = vrot.lane.b32.xlu0 %v2313_v20, %s5127_s7  ;;  %v3055_v20 = vld [vmem:[#allocation2 + $0xd4] sm:$0x1]  ;;  %v3415_v43 = vsel %vm5295_vm9, %v3410_v28, %v3414_v31  ;;  %v3429_v51 = vsel %vm5295_vm9, %v3424_v40, %v3428_v17  ;;  %s5051_s23 = scalar_lea.vmem %s5050_s21, 64 }
 0x241   : > { %3556 = vst.msk [vmem:[#allocation3 + $0x4c] sm:$0xf] %vm3536_vm6, %v3479_v33  ;;  %v3436_v33 = vshll.u32 %v3055_v20, 16  ;;  %v3405_v39 = vsel %vm5295_vm9, %v3400_v23, %v3404_v2 }
 0x242   : > { %2406 = vrot.lane.b32.xlu1 %v2323_v25, %s5127_s7  ;;  %v3810_v41 = vpop.permute.xlu0 %3809 }
 0x243   : > { %3890 = vst.msk [vmem:[#allocation3 + $0x40] sm:$0xf] %vm3873_vm11, %v3810_v41  ;;  %v3438_v35 = vrot.slane %v3436_v33, 5 }
 0x244   : > { %v3812_v5 = vpop.permute.xlu1 %3811  ;;  %2408 = vrot.lane.b32.xlu0 %v2337_v37, %s5127_s7  ;;  %v3612_v37 = vld [vmem:[#allocation2 + $0xc4] sm:$0xf] }
 0x245   : > { %3891 = vst.msk [vmem:[#allocation3 + $0x44] sm:$0xf] %vm3873_vm11, %v3812_v5  ;;  %v3765_v46 = vrot.slane %v3612_v37, 5  ;;  %v3613_v5 = vld [vmem:[#allocation2 + $0xc8] sm:$0x1] }
 0x246   : > { %2410 = vrot.lane.b32.xlu1 %v2347_v44, %s5127_s7  ;;  %v3814_v54 = vpop.permute.xlu0 %3813  ;;  %v3434_v44 = vrot.slane %v3433_v32, 4  ;;  %v3768_v55 = vrot.slane %v3613_v5, 5  ;;  %s203_s7 = scalar_lea.vmem [#allocation4], %s4739_s27 }
 0x247   : > { %3892 = vst.msk [vmem:[#allocation3 + $0x48] sm:$0xf] %vm3873_vm11, %v3814_v54  ;;  %v3767_v22 = vrot.slane %v3765_v46, 4 }
 0x248   : > { %v3816_v59 = vpop.permute.xlu1 %3815  ;;  %2741 = vrot.lane.b32.xlu0 %v2674_v38, %s5128_s8  ;;  %v4790_v38 = vrot.slane %v3611_v42, 9  ;;  %v3439_v54 = vsel %vm5295_vm9, %v3434_v44, %v3438_v35  ;;  %vm4425_vm9 = vcmask 58368  }
 0x249   : > { %3893 = vst.msk [vmem:[#allocation3 + $0x4c] sm:$0xf] %vm3873_vm11, %v3816_v59  ;;  %v4791_v59 = vrot.slane %v3614_v53, 9  ;;  %v3769_v34 = vsel %vm5565_vm13, %v3767_v22, %v3768_v55 }
 0x24a   : > { %2743 = vrot.lane.b32.xlu1 %v2677_v30, %s5128_s8  ;;  %v1828_v0 = vpop.permute.xlu0 %1827  ;;  %v3766_v58 = vsel %vm5565_vm13, %v4790_v38, %v3765_v46 }
 0x24b   : > { %1904 = vst.msk [vmem:[#allocation3 + $0x50] sm:$0xf] %vm1883_vm2, %v1828_v0  ;;  %v3773_v62 = vsel %vm5565_vm13, %v4791_v59, %v3772_v56  ;;  %v3776_v0 = vsel %vm5565_vm13, %v3774_v26, %v3775_v50 }
 0x24c   : > { %v1830_v8 = vpop.permute.xlu1 %1829  ;;  %2745 = vrot.lane.b32.xlu0 %v2681_v60, %s5128_s8  ;;  %v5037_v9 = vld [vmem:[#allocation3 + $0x40] sm:$0xff]  }
 0x24d   : > { %1905 = vst.msk [vmem:[#allocation3 + $0x54] sm:$0xf] %vm1883_vm2, %v1830_v8  ;;  %4938 = vmatprep.mubr.msk.bf16.mxu1 %vm4038_vm12, %v5037_v9 }
 0x24e   : > { %2747 = vrot.lane.b32.xlu1 %v2684_v1, %s5128_s8  ;;  %v1832_v13 = vpop.permute.xlu0 %1831  ;;  %s4614_s8 = sshll.u32 %s203_s7, 4  ;;  %s4615_s8 = int_to_ptr.vmem [resolvable:$true] %s4614_s8 }
 0x24f   : > { %1906 = vst.msk [vmem:[#allocation3 + $0x58] sm:$0xf] %vm1883_vm2, %v1832_v13  ;;  %s5045_s19 = scalar_lea.vmem %s4615_s8, 32  ;;  %p5052_p1 = scmp.lt.s32.totalorder %s4615_s8, %s5050_s21 }
 0x250   : > { %v1834_v19 = vpop.permute.xlu1 %1833  ;;  %2935 = vrot.lane.b32.xlu0 %v2843_v45, %s5129_s9  ;;  %v5038_v49 = vld [vmem:[#allocation3 + $0x48] sm:$0xff]   ;;  %p5046_p12 = scmp.ne.s32.totalorder %s4615_s8, %s5045_s19  ;;  %p5053_p2 = scmp.lt.s32.totalorder %s5051_s23, %s5045_s19 }
 0x251   : > { %1907 = vst.msk [vmem:[#allocation3 + $0x5c] sm:$0xf] %vm1883_vm2, %v1834_v19  ;;  %4939 = vmatmul.mubr.msk.bf16.vlgmr.msra.gmra.mxu1 %vm4038_vm12, %v5038_v49 }
 0x252   : > { %2937 = vrot.lane.b32.xlu1 %v2844_v14, %s5129_s9  ;;  %v2389_v25 = vpop.permute.xlu0 %2388  ;;  %p5047_p13 = pnand %p5046_p12, %p5193_p4  ;;  %p5054_p3 = por %p5053_p2, %p5052_p1 }
 0x253   : > { %2465 = vst.msk [vmem:[#allocation3 + $0x50] sm:$0xf] %vm2444_vm3, %v2389_v25 }
 0x254   : > { %v2391_v36 = vpop.permute.xlu1 %2390  ;;  %2939 = vrot.lane.b32.xlu0 %v2845_v21, %s5129_s9  ;;  %p5048_p0 = pneg %p5047_p13 }
 0x255   : > { %2466 = vst.msk [vmem:[#allocation3 + $0x54] sm:$0xf] %vm2444_vm3, %v2391_v36 }
 0x256   : > { %2941 = vrot.lane.b32.xlu1 %v2846_v27, %s5129_s9  ;;  %v2393_v41 = vpop.permute.xlu0 %2392  ;;  %p5055_p5 = pnand %p5054_p3, %p5048_p0 }
 0x257   : > { %2467 = vst.msk [vmem:[#allocation3 + $0x58] sm:$0xf] %vm2444_vm3, %v2393_v41 }
 0x258   : > { %v2395_v47 = vpop.permute.xlu1 %2394  ;;  %3496 = vrot.lane.b32.xlu0 %v3405_v39, %s5130_s18 }
 0x259   : > { %2468 = vst.msk [vmem:[#allocation3 + $0x5c] sm:$0xf] %vm2444_vm3, %v2395_v47 }
 0x25a   : > { %3498 = vrot.lane.b32.xlu1 %v3415_v43, %s5130_s18  ;;  %v2726_v52 = vpop.permute.xlu0 %2725 }
 0x25b   : > { %2802 = vst.msk [vmem:[#allocation3 + $0x50] sm:$0xf] %vm2781_vm4, %v2726_v52 }
 0x25c   : > { %v2728_v30 = vpop.permute.xlu1 %2727  ;;  %3500 = vrot.lane.b32.xlu0 %v3429_v51, %s5130_s18 }
 0x25d   : > { %2803 = vst.msk [vmem:[#allocation3 + $0x54] sm:$0xf] %vm2781_vm4, %v2728_v30 }
 0x25e   : > { %3502 = vrot.lane.b32.xlu1 %v3439_v54, %s5130_s18  ;;  %v2730_v60 = vpop.permute.xlu0 %2729  ;;  %s4597_s18 = scalar_lea.sflag [#allocation5], %s201_s26 }
 0x25f   : > { %2804 = vst.msk [vmem:[#allocation3 + $0x58] sm:$0xf] %vm2781_vm4, %v2730_v60 }
 0x260   : > { %v2732_v61 = vpop.permute.xlu1 %2731  ;;  %3833 = vrot.lane.b32.xlu0 %v3766_v58, %s5131_s29 }
 0x261   : > { %2805 = vst.msk [vmem:[#allocation3 + $0x5c] sm:$0xf] %vm2781_vm4, %v2732_v61 }
 0x262   : > { %3835 = vrot.lane.b32.xlu1 %v3769_v34, %s5131_s29  ;;  %v2920_v63 = vpop.permute.xlu0 %2919 }
 0x263   : > { %2996 = vst.msk [vmem:[#allocation3 + $0x50] sm:$0xf] %vm2975_vm5, %v2920_v63 }
 0x264   : > { %v2922_v1 = vpop.permute.xlu1 %2921  ;;  %3837 = vrot.lane.b32.xlu0 %v3773_v62, %s5131_s29 }
 0x265   : > { %2997 = vst.msk [vmem:[#allocation3 + $0x54] sm:$0xf] %vm2975_vm5, %v2922_v1 }
 0x266   : > { %3839 = vrot.lane.b32.xlu1 %v3776_v0, %s5131_s29  ;;  %v2924_v2 = vpop.permute.xlu0 %2923 }
 0x267   : > { %2998 = vst.msk [vmem:[#allocation3 + $0x58] sm:$0xf] %vm2975_vm5, %v2924_v2 }
 0x268   : > { %v2926_v3 = vpop.permute.xlu1 %2925 }
 0x269   : > { %2999 = vst.msk [vmem:[#allocation3 + $0x5c] sm:$0xf] %vm2975_vm5, %v2926_v3 }
 0x26a   : > { %v3481_v4 = vpop.permute.xlu0 %3480 }
 0x26b   : > { %3557 = vst.msk [vmem:[#allocation3 + $0x50] sm:$0xf] %vm3536_vm6, %v3481_v4  ;;  %v4924_v29 = vpop.f32.mrf.mxu0 }
 0x26c   : > { %v3483_v6 = vpop.permute.xlu1 %3482  ;;  %v4867_v8 = vpack.c.bf16 %v4924_v29, %v4924_v29  ;;  %v4324_v14 = vmul.f32 %v4924_v29, %v4924_v29  ;;  %v4256_v23 = vsel %vm4252_vm7, %v4924_v29, 0.0 }
 0x26d   : > { %3558 = vst.msk [vmem:[#allocation3 + $0x54] sm:$0xf] %vm3536_vm6, %v3483_v6  ;;  %v4125_v9 = vpop.f32.mrf.mxu0 }
 0x26e   : > { %v3485_v10 = vpop.permute.xlu0 %3484  ;;  %4558 = vst.msk [vmem:[%s6405_s5 + $0x8] sm:$0xf] %vm4555_vm0, %v4867_v8  ;;  %v4865_v45 = vpack.c.bf16 %v4125_v9, %v4125_v9  ;;  %v4322_v12 = vmul.f32 %v4125_v9, %v4125_v9  ;;  %v4253_v17 = vsel %vm4252_vm7, %v4125_v9, 0.0  ;;  %v4357_v33 = vsel %vm4252_vm7, %v4324_v14, 0.0 }
 0x26f   : > { %3559 = vst.msk [vmem:[#allocation3 + $0x58] sm:$0xf] %vm3536_vm6, %v3485_v10  ;;  %v4925_v7 = vpop.f32.mrf.mxu0 }
 0x270   : > { %v3487_v11 = vpop.permute.xlu1 %3486  ;;  %4556 = vst.msk [vmem:[%s6405_s5] sm:$0xf] %vm4555_vm0, %v4865_v45  ;;  %v4868_v13 = vpack.c.bf16 %v4925_v7, %v4925_v7  ;;  %v4354_v24 = vsel %vm4252_vm7, %v4322_v12, 0.0  ;;  %v4325_v25 = vmul.f32 %v4925_v7, %v4925_v7  ;;  %v4258_v36 = vsel %vm4252_vm7, %v4925_v7, 0.0 }
 0x271   : > { %3560 = vst.msk [vmem:[#allocation3 + $0x5c] sm:$0xf] %vm3536_vm6, %v3487_v11  ;;  %v4128_v15 = vpop.f32.mrf.mxu0 }
 0x272   : > { %v3818_v16 = vpop.permute.xlu0 %3817  ;;  %4559 = vst.msk [vmem:[%s6405_s5 + $0xc] sm:$0xf] %vm4555_vm0, %v4868_v13  ;;  %v4254_v18 = vsel %vm4252_vm7, %v4128_v15, 0.0  ;;  %v4323_v19 = vmul.f32 %v4128_v15, %v4128_v15  ;;  %v4866_v49 = vpack.c.bf16 %v4128_v15, %v4128_v15  ;;  %v4359_v41 = vsel %vm4252_vm7, %v4325_v25, 0.0 }
 0x273   : > { %3894 = vst.msk [vmem:[#allocation3 + $0x50] sm:$0xf] %vm3873_vm11, %v3818_v16  ;;  %v4255_v20 = vadd.f32 %v4254_v18, %v4253_v17 }
 0x274   : > { %v3820_v21 = vpop.permute.xlu1 %3819  ;;  %v4355_v27 = vsel %vm4252_vm7, %v4323_v19, 0.0  ;;  %4557 = vst.msk [vmem:[%s6405_s5 + $0x4] sm:$0xf] %vm4555_vm0, %v4866_v49 }
 0x275   : > { %3895 = vst.msk [vmem:[#allocation3 + $0x54] sm:$0xf] %vm3873_vm11, %v3820_v21  ;;  %v4257_v28 = vadd.f32 %v4256_v23, %v4255_v20  ;;  %v4356_v31 = vadd.f32 %v4355_v27, %v4354_v24 }
 0x276   : > { %v3822_v32 = vpop.permute.xlu0 %3821 }
 0x277   : > { %3896 = vst.msk [vmem:[#allocation3 + $0x58] sm:$0xf] %vm3873_vm11, %v3822_v32  ;;  %v4358_v37 = vadd.f32 %v4357_v33, %v4356_v31  ;;  %v4259_v40 = vadd.f32 %v4258_v36, %v4257_v28 }
 0x278   : > { %v3824_v39 = vpop.permute.xlu1 %3823 }
 0x279   : > { %3897 = vst.msk [vmem:[#allocation3 + $0x5c] sm:$0xf] %vm3873_vm11, %v3824_v39  ;;  %v4360_v43 = vadd.f32 %v4359_v41, %v4358_v37 }
 0x27a   : > { %v1836_v42 = vpop.permute.xlu0 %1835 }
 0x27b   : > { %1908 = vst.msk [vmem:[#allocation3 + $0x60] sm:$0xf] %vm1883_vm2, %v1836_v42 }
 0x27c   : > { %v1838_v44 = vpop.permute.xlu1 %1837  ;;  %v5039_v35 = vld [vmem:[#allocation3 + $0x50] sm:$0xff]  }
 0x27d   : > { %1909 = vst.msk [vmem:[#allocation3 + $0x64] sm:$0xf] %vm1883_vm2, %v1838_v44  ;;  %4942 = vmatprep.mubr.msk.bf16.mxu1 %vm4038_vm12, %v5039_v35 }
 0x27e   : > { %v1840_v46 = vpop.permute.xlu0 %1839 }
 0x27f   : > { %1910 = vst.msk [vmem:[#allocation3 + $0x68] sm:$0xf] %vm1883_vm2, %v1840_v46 }
 0x280   : > { %v1842_v47 = vpop.permute.xlu1 %1841  ;;  %v5040_v5 = vld [vmem:[#allocation3 + $0x58] sm:$0xff]  }
 0x281   : > { %1911 = vst.msk [vmem:[#allocation3 + $0x6c] sm:$0xf] %vm1883_vm2, %v1842_v47  ;;  %4943 = vmatmul.mubr.msk.bf16.gmra.mxu1 %vm4038_vm12, %v5040_v5 }
 0x282   : > { %v2397_v48 = vpop.permute.xlu0 %2396 }
 0x283   : > { %2469 = vst.msk [vmem:[#allocation3 + $0x60] sm:$0xf] %vm2444_vm3, %v2397_v48 }
 0x284   : > { %v2399_v51 = vpop.permute.xlu1 %2398 }
 0x285   : > { %2470 = vst.msk [vmem:[#allocation3 + $0x64] sm:$0xf] %vm2444_vm3, %v2399_v51 }
 0x286   : > { %v2401_v38 = vpop.permute.xlu0 %2400 }
 0x287   : > { %2471 = vst.msk [vmem:[#allocation3 + $0x68] sm:$0xf] %vm2444_vm3, %v2401_v38 }
 0x288   : > { %v2403_v52 = vpop.permute.xlu1 %2402 }
 0x289   : > { %2472 = vst.msk [vmem:[#allocation3 + $0x6c] sm:$0xf] %vm2444_vm3, %v2403_v52 }
 0x28a   : > { %v2734_v53 = vpop.permute.xlu0 %2733 }
 0x28b   : > { %2806 = vst.msk [vmem:[#allocation3 + $0x60] sm:$0xf] %vm2781_vm4, %v2734_v53 }
 0x28c   : > { %v2736_v54 = vpop.permute.xlu1 %2735 }
 0x28d   : > { %2807 = vst.msk [vmem:[#allocation3 + $0x64] sm:$0xf] %vm2781_vm4, %v2736_v54 }
 0x28e   : > { %v2738_v22 = vpop.permute.xlu0 %2737 }
 0x28f   : > { %2808 = vst.msk [vmem:[#allocation3 + $0x68] sm:$0xf] %vm2781_vm4, %v2738_v22 }
 0x290   : > { %v2740_v55 = vpop.permute.xlu1 %2739 }
 0x291   : > { %2809 = vst.msk [vmem:[#allocation3 + $0x6c] sm:$0xf] %vm2781_vm4, %v2740_v55 }
 0x292   : > { %v2928_v56 = vpop.permute.xlu0 %2927 }
 0x293   : > { %3000 = vst.msk [vmem:[#allocation3 + $0x60] sm:$0xf] %vm2975_vm5, %v2928_v56  ;;  %v4928_v30 = vpop.f32.mrf.mxu0 }
 0x294   : > { %v2930_v57 = vpop.permute.xlu1 %2929  ;;  %v4871_v58 = vpack.c.bf16 %v4928_v30, %v4928_v30  ;;  %v4328_v29 = vmul.f32 %v4928_v30, %v4928_v30  ;;  %v4264_v7 = vsel %vm4252_vm7, %v4928_v30, 0.0 }
 0x295   : > { %3001 = vst.msk [vmem:[#allocation3 + $0x64] sm:$0xf] %vm2975_vm5, %v2930_v57  ;;  %v4141_v59 = vpop.f32.mrf.mxu0 }
 0x296   : > { %v2932_v60 = vpop.permute.xlu0 %2931  ;;  %4562 = vst.msk [vmem:[%s6405_s5 + $0x18] sm:$0xf] %vm4555_vm0, %v4871_v58  ;;  %v4260_v34 = vsel %vm4252_vm7, %v4141_v59, 0.0  ;;  %v4326_v26 = vmul.f32 %v4141_v59, %v4141_v59  ;;  %v4869_v50 = vpack.c.bf16 %v4141_v59, %v4141_v59  ;;  %v4365_v16 = vsel %vm4252_vm7, %v4328_v29, 0.0 }
 0x297   : > { %3002 = vst.msk [vmem:[#allocation3 + $0x68] sm:$0xf] %vm2975_vm5, %v2932_v60  ;;  %v4261_v61 = vadd.f32 %v4260_v34, %v4259_v40  ;;  %v4929_v62 = vpop.f32.mrf.mxu0 }
 0x298   : > { %v2934_v63 = vpop.permute.xlu1 %2933  ;;  %v4361_v0 = vsel %vm4252_vm7, %v4326_v26, 0.0  ;;  %4560 = vst.msk [vmem:[%s6405_s5 + $0x10] sm:$0xf] %vm4555_vm0, %v4869_v50  ;;  %v4872_v1 = vpack.c.bf16 %v4929_v62, %v4929_v62  ;;  %v4329_v11 = vmul.f32 %v4929_v62, %v4929_v62  ;;  %v4266_v17 = vsel %vm4252_vm7, %v4929_v62, 0.0 }
 0x299   : > { %3003 = vst.msk [vmem:[#allocation3 + $0x6c] sm:$0xf] %vm2975_vm5, %v2934_v63  ;;  %v4362_v2 = vadd.f32 %v4361_v0, %v4360_v43  ;;  %v4144_v3 = vpop.f32.mrf.mxu0 }
 0x29a   : > { %v3489_v4 = vpop.permute.xlu0 %3488  ;;  %4563 = vst.msk [vmem:[%s6405_s5 + $0x1c] sm:$0xf] %vm4555_vm0, %v4872_v1  ;;  %v4262_v6 = vsel %vm4252_vm7, %v4144_v3, 0.0  ;;  %v4327_v8 = vmul.f32 %v4144_v3, %v4144_v3  ;;  %v4870_v9 = vpack.c.bf16 %v4144_v3, %v4144_v3  ;;  %v4367_v20 = vsel %vm4252_vm7, %v4329_v11, 0.0 }
 0x29b   : > { %3561 = vst.msk [vmem:[#allocation3 + $0x60] sm:$0xf] %vm3536_vm6, %v3489_v4  ;;  %v4263_v10 = vadd.f32 %v4262_v6, %v4261_v61 }
 0x29c   : > { %v3491_v45 = vpop.permute.xlu1 %3490  ;;  %v4363_v12 = vsel %vm4252_vm7, %v4327_v8, 0.0  ;;  %4561 = vst.msk [vmem:[%s6405_s5 + $0x14] sm:$0xf] %vm4555_vm0, %v4870_v9 }
 0x29d   : > { %3562 = vst.msk [vmem:[#allocation3 + $0x64] sm:$0xf] %vm3536_vm6, %v3491_v45  ;;  %v4265_v13 = vadd.f32 %v4264_v7, %v4263_v10  ;;  %v4364_v14 = vadd.f32 %v4363_v12, %v4362_v2 }
 0x29e   : > { %v3493_v15 = vpop.permute.xlu0 %3492 }
 0x29f   : > { %3563 = vst.msk [vmem:[#allocation3 + $0x68] sm:$0xf] %vm3536_vm6, %v3493_v15  ;;  %v4366_v18 = vadd.f32 %v4365_v16, %v4364_v14  ;;  %v4267_v49 = vadd.f32 %v4266_v17, %v4265_v13 }
 0x2a0   : > { %v3495_v19 = vpop.permute.xlu1 %3494 }
 0x2a1   : > { %3564 = vst.msk [vmem:[#allocation3 + $0x6c] sm:$0xf] %vm3536_vm6, %v3495_v19  ;;  %v4368_v23 = vadd.f32 %v4367_v20, %v4366_v18 }
 0x2a2   : > { %v3826_v21 = vpop.permute.xlu0 %3825 }
 0x2a3   : > { %3898 = vst.msk [vmem:[#allocation3 + $0x60] sm:$0xf] %vm3873_vm11, %v3826_v21 }
 0x2a4   : > { %v3828_v24 = vpop.permute.xlu1 %3827 }
 0x2a5   : > { %3899 = vst.msk [vmem:[#allocation3 + $0x64] sm:$0xf] %vm3873_vm11, %v3828_v24 }
 0x2a6   : > { %v3830_v25 = vpop.permute.xlu0 %3829 }
 0x2a7   : > { %3900 = vst.msk [vmem:[#allocation3 + $0x68] sm:$0xf] %vm3873_vm11, %v3830_v25 }
 0x2a8   : > { %v3832_v27 = vpop.permute.xlu1 %3831 }
 0x2a9   : > { %3901 = vst.msk [vmem:[#allocation3 + $0x6c] sm:$0xf] %vm3873_vm11, %v3832_v27 }
 0x2aa   : > { %v1844_v28 = vpop.permute.xlu0 %1843 }
 0x2ab   : > { %1912 = vst.msk [vmem:[#allocation3 + $0x70] sm:$0xf] %vm1883_vm2, %v1844_v28 }
 0x2ac   : > { %v1846_v31 = vpop.permute.xlu1 %1845  ;;  %v5041_v32 = vld [vmem:[#allocation3 + $0x60] sm:$0xff]  }
 0x2ad   : > { %1913 = vst.msk [vmem:[#allocation3 + $0x74] sm:$0xf] %vm1883_vm2, %v1846_v31  ;;  %4946 = vmatprep.mubr.msk.bf16.mxu1 %vm4038_vm12, %v5041_v32 }
 0x2ae   : > { %v1848_v33 = vpop.permute.xlu0 %1847 }
 0x2af   : > { %1914 = vst.msk [vmem:[#allocation3 + $0x78] sm:$0xf] %vm1883_vm2, %v1848_v33 }
 0x2b0   : > { %v1850_v36 = vpop.permute.xlu1 %1849  ;;  %v5042_v37 = vld [vmem:[#allocation3 + $0x68] sm:$0xff]  }
 0x2b1   : > { %1915 = vst.msk [vmem:[#allocation3 + $0x7c] sm:$0xf] %vm1883_vm2, %v1850_v36  ;;  %4947 = vmatmul.mubr.msk.bf16.gmra.mxu1 %vm4038_vm12, %v5042_v37 }
 0x2b2   : > { %v2405_v39 = vpop.permute.xlu0 %2404 }
 0x2b3   : > { %2473 = vst.msk [vmem:[#allocation3 + $0x70] sm:$0xf] %vm2444_vm3, %v2405_v39 }
 0x2b4   : > { %v2407_v40 = vpop.permute.xlu1 %2406 }
 0x2b5   : > { %2474 = vst.msk [vmem:[#allocation3 + $0x74] sm:$0xf] %vm2444_vm3, %v2407_v40 }
 0x2b6   : > { %v2409_v41 = vpop.permute.xlu0 %2408 }
 0x2b7   : > { %2475 = vst.msk [vmem:[#allocation3 + $0x78] sm:$0xf] %vm2444_vm3, %v2409_v41 }
 0x2b8   : > { %v2411_v42 = vpop.permute.xlu1 %2410 }
 0x2b9   : > { %2476 = vst.msk [vmem:[#allocation3 + $0x7c] sm:$0xf] %vm2444_vm3, %v2411_v42 }
 0x2ba   : > { %v2742_v43 = vpop.permute.xlu0 %2741 }
 0x2bb   : > { %2810 = vst.msk [vmem:[#allocation3 + $0x70] sm:$0xf] %vm2781_vm4, %v2742_v43  ;;  %v4932_v44 = vpop.f32.mrf.mxu0 }
 0x2bc   : > { %v2744_v35 = vpop.permute.xlu1 %2743  ;;  %v4875_v46 = vpack.c.bf16 %v4932_v44, %v4932_v44  ;;  %v4332_v58 = vmul.f32 %v4932_v44, %v4932_v44  ;;  %v4272_v61 = vsel %vm4252_vm7, %v4932_v44, 0.0 }
 0x2bd   : > { %2811 = vst.msk [vmem:[#allocation3 + $0x74] sm:$0xf] %vm2781_vm4, %v2744_v35  ;;  %v4157_v47 = vpop.f32.mrf.mxu0 }
 0x2be   : > { %v2746_v5 = vpop.permute.xlu0 %2745  ;;  %4566 = vst.msk [vmem:[%s6405_s5 + $0x28] sm:$0xf] %vm4555_vm0, %v4875_v46  ;;  %v4268_v48 = vsel %vm4252_vm7, %v4157_v47, 0.0  ;;  %v4330_v51 = vmul.f32 %v4157_v47, %v4157_v47  ;;  %v4873_v38 = vpack.c.bf16 %v4157_v47, %v4157_v47  ;;  %v4373_v3 = vsel %vm4252_vm7, %v4332_v58, 0.0 }
 0x2bf   : > { %2812 = vst.msk [vmem:[#allocation3 + $0x78] sm:$0xf] %vm2781_vm4, %v2746_v5  ;;  %v4269_v52 = vadd.f32 %v4268_v48, %v4267_v49  ;;  %v4933_v53 = vpop.f32.mrf.mxu0 }
 0x2c0   : > { %v2748_v54 = vpop.permute.xlu1 %2747  ;;  %v4369_v22 = vsel %vm4252_vm7, %v4330_v51, 0.0  ;;  %4564 = vst.msk [vmem:[%s6405_s5 + $0x20] sm:$0xf] %vm4555_vm0, %v4873_v38  ;;  %v4876_v55 = vpack.c.bf16 %v4933_v53, %v4933_v53  ;;  %v4333_v62 = vmul.f32 %v4933_v53, %v4933_v53  ;;  %v4274_v4 = vsel %vm4252_vm7, %v4933_v53, 0.0 }
 0x2c1   : > { %2813 = vst.msk [vmem:[#allocation3 + $0x7c] sm:$0xf] %vm2781_vm4, %v2748_v54  ;;  %v4370_v56 = vadd.f32 %v4369_v22, %v4368_v23  ;;  %v4160_v30 = vpop.f32.mrf.mxu0 }
 0x2c2   : > { %v2936_v57 = vpop.permute.xlu0 %2935  ;;  %4567 = vst.msk [vmem:[%s6405_s5 + $0x2c] sm:$0xf] %vm4555_vm0, %v4876_v55  ;;  %v4270_v59 = vsel %vm4252_vm7, %v4160_v30, 0.0  ;;  %v4331_v60 = vmul.f32 %v4160_v30, %v4160_v30  ;;  %v4874_v34 = vpack.c.bf16 %v4160_v30, %v4160_v30  ;;  %v4375_v9 = vsel %vm4252_vm7, %v4333_v62, 0.0 }
 0x2c3   : > { %3004 = vst.msk [vmem:[#allocation3 + $0x70] sm:$0xf] %vm2975_vm5, %v2936_v57  ;;  %v4271_v26 = vadd.f32 %v4270_v59, %v4269_v52 }
 0x2c4   : > { %v2938_v50 = vpop.permute.xlu1 %2937  ;;  %v4371_v63 = vsel %vm4252_vm7, %v4331_v60, 0.0  ;;  %4565 = vst.msk [vmem:[%s6405_s5 + $0x24] sm:$0xf] %vm4555_vm0, %v4874_v34 }
 0x2c5   : > { %3005 = vst.msk [vmem:[#allocation3 + $0x74] sm:$0xf] %vm2975_vm5, %v2938_v50  ;;  %v4273_v0 = vadd.f32 %v4272_v61, %v4271_v26  ;;  %v4372_v1 = vadd.f32 %v4371_v63, %v4370_v56 }
 0x2c6   : > { %v2940_v2 = vpop.permute.xlu0 %2939 }
 0x2c7   : > { %3006 = vst.msk [vmem:[#allocation3 + $0x78] sm:$0xf] %vm2975_vm5, %v2940_v2  ;;  %v4374_v29 = vadd.f32 %v4373_v3, %v4372_v1  ;;  %v4275_v8 = vadd.f32 %v4274_v4, %v4273_v0 }
 0x2c8   : > { %v2942_v6 = vpop.permute.xlu1 %2941 }
 0x2c9   : > { %3007 = vst.msk [vmem:[#allocation3 + $0x7c] sm:$0xf] %vm2975_vm5, %v2942_v6  ;;  %v4376_v45 = vadd.f32 %v4375_v9, %v4374_v29 }
 0x2ca   : > { %v3497_v10 = vpop.permute.xlu0 %3496 }
 0x2cb   : > { %3565 = vst.msk [vmem:[#allocation3 + $0x70] sm:$0xf] %vm3536_vm6, %v3497_v10 }
 0x2cc   : > { %v3499_v7 = vpop.permute.xlu1 %3498 }
 0x2cd   : > { %3566 = vst.msk [vmem:[#allocation3 + $0x74] sm:$0xf] %vm3536_vm6, %v3499_v7 }
 0x2ce   : > { %v3501_v11 = vpop.permute.xlu0 %3500 }
 0x2cf   : > { %3567 = vst.msk [vmem:[#allocation3 + $0x78] sm:$0xf] %vm3536_vm6, %v3501_v11 }
 0x2d0   : > { %v3503_v12 = vpop.permute.xlu1 %3502 }
 0x2d1   : > { %3568 = vst.msk [vmem:[#allocation3 + $0x7c] sm:$0xf] %vm3536_vm6, %v3503_v12 }
 0x2d2   : > { %v3834_v13 = vpop.permute.xlu0 %3833 }
 0x2d3   : > { %3902 = vst.msk [vmem:[#allocation3 + $0x70] sm:$0xf] %vm3873_vm11, %v3834_v13 }
 0x2d4   : > { %v3836_v14 = vpop.permute.xlu1 %3835 }
 0x2d5   : > { %3903 = vst.msk [vmem:[#allocation3 + $0x74] sm:$0xf] %vm3873_vm11, %v3836_v14 }
 0x2d6   : > { %v3838_v15 = vpop.permute.xlu0 %3837 }
 0x2d7   : > { %3904 = vst.msk [vmem:[#allocation3 + $0x78] sm:$0xf] %vm3873_vm11, %v3838_v15 }
 0x2d8   : > { %v3840_v16 = vpop.permute.xlu1 %3839 }
 0x2d9   : > { %3905 = vst.msk [vmem:[#allocation3 + $0x7c] sm:$0xf] %vm3873_vm11, %v3840_v16 }
 0x2dc   : > { %v5043_v17 = vld [vmem:[#allocation3 + $0x70] sm:$0xff]  }
 0x2dd   : > { %4950 = vmatprep.mubr.msk.bf16.mxu1 %vm4038_vm12, %v5043_v17 }
 0x2e0   : > { %v5044_v18 = vld [vmem:[#allocation3 + $0x78] sm:$0xff]  }
 0x2e1   : > { %4951 = vmatmul.mubr.msk.bf16.gmra.mxu1 %vm4038_vm12, %v5044_v18 }
 0x2e3   : > { %v4936_v19 = vpop.f32.mrf.mxu0 }
 0x2e4   : > { %v4879_v49 = vpack.c.bf16 %v4936_v19, %v4936_v19  ;;  %v4336_v36 = vmul.f32 %v4936_v19, %v4936_v19  ;;  %v4280_v42 = vsel %vm4252_vm7, %v4936_v19, 0.0 }
 0x2e5   : > { %v4173_v20 = vpop.f32.mrf.mxu0 }
 0x2e6   : > { %4570 = vst.msk [vmem:[%s6405_s5 + $0x38] sm:$0xf] %vm4555_vm0, %v4879_v49  ;;  %v4276_v21 = vsel %vm4252_vm7, %v4173_v20, 0.0  ;;  %v4334_v23 = vmul.f32 %v4173_v20, %v4173_v20  ;;  %v4877_v24 = vpack.c.bf16 %v4173_v20, %v4173_v20  ;;  %v4381_v47 = vsel %vm4252_vm7, %v4336_v36, 0.0 }
 0x2e7   : > { %v4277_v25 = vadd.f32 %v4276_v21, %v4275_v8  ;;  %v4937_v27 = vpop.f32.mrf.mxu0 }
 0x2e8   : > { %v4377_v28 = vsel %vm4252_vm7, %v4334_v23, 0.0  ;;  %4568 = vst.msk [vmem:[%s6405_s5 + $0x30] sm:$0xf] %vm4555_vm0, %v4877_v24  ;;  %v4880_v31 = vpack.c.bf16 %v4937_v27, %v4937_v27  ;;  %v4337_v43 = vmul.f32 %v4937_v27, %v4937_v27  ;;  %v4282_v5 = vsel %vm4252_vm7, %v4937_v27, 0.0 }
 0x2e9   : > { %v4378_v32 = vadd.f32 %v4377_v28, %v4376_v45  ;;  %v4176_v33 = vpop.f32.mrf.mxu0 }
 0x2ea   : > { %4571 = vst.msk [vmem:[%s6405_s5 + $0x3c] sm:$0xf] %vm4555_vm0, %v4880_v31  ;;  %v4278_v37 = vsel %vm4252_vm7, %v4176_v33, 0.0  ;;  %v4335_v39 = vmul.f32 %v4176_v33, %v4176_v33  ;;  %v4878_v40 = vpack.c.bf16 %v4176_v33, %v4176_v33  ;;  %v4383_v38 = vsel %vm4252_vm7, %v4337_v43, 0.0 }
 0x2eb   : > { %v4279_v41 = vadd.f32 %v4278_v37, %v4277_v25 }
 0x2ec   : > { %v4379_v44 = vsel %vm4252_vm7, %v4335_v39, 0.0  ;;  %4569 = vst.msk [vmem:[%s6405_s5 + $0x34] sm:$0xf] %vm4555_vm0, %v4878_v40 }
 0x2ed   : > { %v4281_v35 = vadd.f32 %v4280_v42, %v4279_v41  ;;  %v4380_v46 = vadd.f32 %v4379_v44, %v4378_v32 }
 0x2ef   : > { %v4382_v48 = vadd.f32 %v4381_v47, %v4380_v46  ;;  %v4283_v51 = vadd.f32 %v4282_v5, %v4281_v35 }
 0x2f1   : > { %v4384_v52 = vadd.f32 %v4383_v38, %v4382_v48 }
 0x311   : > { %v4940_v53 = vpop.f32.mrf.mxu1 }
 0x312   : > { %v4883_v54 = vpack.c.bf16 %v4940_v53, %v4940_v53  ;;  %v4340_v50 = vmul.f32 %v4940_v53, %v4940_v53  ;;  %v4288_v1 = vsel %vm4252_vm7, %v4940_v53, 0.0 }
 0x313   : > { %v4189_v22 = vpop.f32.mrf.mxu1 }
 0x314   : > { %4574 = vst.msk [vmem:[%s6405_s5 + $0x48] sm:$0xf] %vm4555_vm0, %v4883_v54  ;;  %v4284_v55 = vsel %vm4252_vm7, %v4189_v22, 0.0  ;;  %v4338_v56 = vmul.f32 %v4189_v22, %v4189_v22  ;;  %v4881_v30 = vpack.c.bf16 %v4189_v22, %v4189_v22  ;;  %v4389_v6 = vsel %vm4252_vm7, %v4340_v50, 0.0 }
 0x315   : > { %v4285_v57 = vadd.f32 %v4284_v55, %v4283_v51  ;;  %v4941_v58 = vpop.f32.mrf.mxu1 }
 0x316   : > { %v4385_v59 = vsel %vm4252_vm7, %v4338_v56, 0.0  ;;  %4572 = vst.msk [vmem:[%s6405_s5 + $0x40] sm:$0xf] %vm4555_vm0, %v4881_v30  ;;  %v4884_v60 = vpack.c.bf16 %v4941_v58, %v4941_v58  ;;  %v4341_v2 = vmul.f32 %v4941_v58, %v4941_v58  ;;  %v4290_v8 = vsel %vm4252_vm7, %v4941_v58, 0.0 }
 0x317   : > { %v4386_v34 = vadd.f32 %v4385_v59, %v4384_v52  ;;  %v4192_v26 = vpop.f32.mrf.mxu1 }
 0x318   : > { %4575 = vst.msk [vmem:[%s6405_s5 + $0x4c] sm:$0xf] %vm4555_vm0, %v4884_v60  ;;  %v4286_v61 = vsel %vm4252_vm7, %v4192_v26, 0.0  ;;  %v4339_v62 = vmul.f32 %v4192_v26, %v4192_v26  ;;  %v4882_v63 = vpack.c.bf16 %v4192_v26, %v4192_v26  ;;  %v4391_v45 = vsel %vm4252_vm7, %v4341_v2, 0.0 }
 0x319   : > { %v4287_v0 = vadd.f32 %v4286_v61, %v4285_v57 }
 0x31a   : > { %v4387_v3 = vsel %vm4252_vm7, %v4339_v62, 0.0  ;;  %4573 = vst.msk [vmem:[%s6405_s5 + $0x44] sm:$0xf] %vm4555_vm0, %v4882_v63 }
 0x31b   : > { %v4289_v4 = vadd.f32 %v4288_v1, %v4287_v0  ;;  %v4388_v29 = vadd.f32 %v4387_v3, %v4386_v34 }
 0x31d   : > { %v4390_v9 = vadd.f32 %v4389_v6, %v4388_v29  ;;  %v4291_v10 = vadd.f32 %v4290_v8, %v4289_v4 }
 0x31f   : > { %v4392_v7 = vadd.f32 %v4391_v45, %v4390_v9 }
 0x341   : > { %v4944_v11 = vpop.f32.mrf.mxu1 }
 0x342   : > { %v4887_v12 = vpack.c.bf16 %v4944_v11, %v4944_v11  ;;  %v4344_v23 = vmul.f32 %v4944_v11, %v4944_v11  ;;  %v4296_v31 = vsel %vm4252_vm7, %v4944_v11, 0.0 }
 0x343   : > { %v4205_v13 = vpop.f32.mrf.mxu1 }
 0x344   : > { %4578 = vst.msk [vmem:[%s6405_s5 + $0x58] sm:$0xf] %vm4555_vm0, %v4887_v12  ;;  %v4292_v14 = vsel %vm4252_vm7, %v4205_v13, 0.0  ;;  %v4342_v15 = vmul.f32 %v4205_v13, %v4205_v13  ;;  %v4885_v16 = vpack.c.bf16 %v4205_v13, %v4205_v13  ;;  %v4397_v39 = vsel %vm4252_vm7, %v4344_v23, 0.0 }
 0x345   : > { %v4293_v17 = vadd.f32 %v4292_v14, %v4291_v10  ;;  %v4945_v18 = vpop.f32.mrf.mxu1 }
 0x346   : > { %v4393_v19 = vsel %vm4252_vm7, %v4342_v15, 0.0  ;;  %4576 = vst.msk [vmem:[%s6405_s5 + $0x50] sm:$0xf] %vm4555_vm0, %v4885_v16  ;;  %v4888_v49 = vpack.c.bf16 %v4945_v18, %v4945_v18  ;;  %v4345_v32 = vmul.f32 %v4945_v18, %v4945_v18  ;;  %v4298_v40 = vsel %vm4252_vm7, %v4945_v18, 0.0 }
 0x347   : > { %v4394_v20 = vadd.f32 %v4393_v19, %v4392_v7  ;;  %v4208_v21 = vpop.f32.mrf.mxu1 }
 0x348   : > { %4579 = vst.msk [vmem:[%s6405_s5 + $0x5c] sm:$0xf] %vm4555_vm0, %v4888_v49  ;;  %v4294_v24 = vsel %vm4252_vm7, %v4208_v21, 0.0  ;;  %v4343_v25 = vmul.f32 %v4208_v21, %v4208_v21  ;;  %v4886_v27 = vpack.c.bf16 %v4208_v21, %v4208_v21  ;;  %v4399_v43 = vsel %vm4252_vm7, %v4345_v32, 0.0 }
 0x349   : > { %v4295_v28 = vadd.f32 %v4294_v24, %v4293_v17 }
 0x34a   : > { %v4395_v33 = vsel %vm4252_vm7, %v4343_v25, 0.0  ;;  %4577 = vst.msk [vmem:[%s6405_s5 + $0x54] sm:$0xf] %vm4555_vm0, %v4886_v27 }
 0x34b   : > { %v4297_v36 = vadd.f32 %v4296_v31, %v4295_v28  ;;  %v4396_v37 = vadd.f32 %v4395_v33, %v4394_v20 }
 0x34d   : > { %v4398_v41 = vadd.f32 %v4397_v39, %v4396_v37  ;;  %v4299_v42 = vadd.f32 %v4298_v40, %v4297_v36 }
 0x34f   : > { %v4400_v44 = vadd.f32 %v4399_v43, %v4398_v41 }
 0x371   : > { %v4948_v35 = vpop.f32.mrf.mxu1 }
 0x372   : > { %v4891_v46 = vpack.c.bf16 %v4948_v35, %v4948_v35  ;;  %v4348_v60 = vmul.f32 %v4948_v35, %v4948_v35  ;;  %v4304_v26 = vsel %vm4252_vm7, %v4948_v35, 0.0 }
 0x373   : > { %v4221_v47 = vpop.f32.mrf.mxu1 }
 0x374   : > { %4582 = vst.msk [vmem:[%s6405_s5 + $0x68] sm:$0xf] %vm4555_vm0, %v4891_v46  ;;  %v4889_v5 = vpack.c.bf16 %v4221_v47, %v4221_v47  ;;  %v4346_v53 = vmul.f32 %v4221_v47, %v4221_v47  ;;  %v4300_v54 = vsel %vm4252_vm7, %v4221_v47, 0.0  ;;  %v4405_v62 = vsel %vm4252_vm7, %v4348_v60, 0.0 }
 0x375   : > { %v4949_v48 = vpop.f32.mrf.mxu1  ;;  %v4301_v30 = vadd.f32 %v4300_v54, %v4299_v42 }
 0x376   : > { %4580 = vst.msk [vmem:[%s6405_s5 + $0x60] sm:$0xf] %vm4555_vm0, %v4889_v5  ;;  %v4892_v51 = vpack.c.bf16 %v4949_v48, %v4949_v48  ;;  %v4401_v55 = vsel %vm4252_vm7, %v4346_v53, 0.0  ;;  %v4349_v63 = vmul.f32 %v4949_v48, %v4949_v48  ;;  %v4306_v3 = vsel %vm4252_vm7, %v4949_v48, 0.0 }
 0x377   : > { %v4224_v38 = vpop.f32.mrf.mxu1  ;;  %v4402_v58 = vadd.f32 %v4401_v55, %v4400_v44 }
 0x378   : > { %4583 = vst.msk [vmem:[%s6405_s5 + $0x6c] sm:$0xf] %vm4555_vm0, %v4892_v51  ;;  %v4890_v52 = vpack.c.bf16 %v4224_v38, %v4224_v38  ;;  %v4347_v22 = vmul.f32 %v4224_v38, %v4224_v38  ;;  %v4302_v56 = vsel %vm4252_vm7, %v4224_v38, 0.0  ;;  %v4407_v10 = vsel %vm4252_vm7, %v4349_v63, 0.0 }
 0x379   : > { %v4303_v59 = vadd.f32 %v4302_v56, %v4301_v30 }
 0x37a   : > { %4581 = vst.msk [vmem:[%s6405_s5 + $0x64] sm:$0xf] %vm4555_vm0, %v4890_v52  ;;  %v4403_v57 = vsel %vm4252_vm7, %v4347_v22, 0.0 }
 0x37b   : > { %v4404_v34 = vadd.f32 %v4403_v57, %v4402_v58  ;;  %v4305_v50 = vadd.f32 %v4304_v26, %v4303_v59 }
 0x37d   : > { %v4406_v1 = vadd.f32 %v4405_v62, %v4404_v34  ;;  %v4307_v8 = vadd.f32 %v4306_v3, %v4305_v50 }
 0x37f   : > { %v4408_v12 = vadd.f32 %v4407_v10, %v4406_v1 }
 0x3a1   : > { %v4952_v61 = vpop.f32.mrf.mxu1 }
 0x3a2   : > { %v4895_v0 = vpack.c.bf16 %v4952_v61, %v4952_v61  ;;  %v4352_v14 = vmul.f32 %v4952_v61, %v4952_v61  ;;  %v4312_v49 = vsel %vm4252_vm7, %v4952_v61, 0.0 }
 0x3a3   : > { %v4237_v2 = vpop.f32.mrf.mxu1 }
 0x3a4   : > { %4586 = vst.msk [vmem:[%s6405_s5 + $0x78] sm:$0xf] %vm4555_vm0, %v4895_v0  ;;  %v4308_v4 = vsel %vm4252_vm7, %v4237_v2, 0.0  ;;  %v4350_v29 = vmul.f32 %v4237_v2, %v4237_v2  ;;  %v4893_v6 = vpack.c.bf16 %v4237_v2, %v4237_v2  ;;  %v4413_v25 = vsel %vm4252_vm7, %v4352_v14, 0.0 }
 0x3a5   : > { %v4953_v9 = vpop.f32.mrf.mxu1  ;;  %v4309_v11 = vadd.f32 %v4308_v4, %v4307_v8 }
 0x3a6   : > { %v4409_v45 = vsel %vm4252_vm7, %v4350_v29, 0.0  ;;  %4584 = vst.msk [vmem:[%s6405_s5 + $0x70] sm:$0xf] %vm4555_vm0, %v4893_v6  ;;  %v4896_v7 = vpack.c.bf16 %v4953_v9, %v4953_v9  ;;  %v4353_v20 = vmul.f32 %v4953_v9, %v4953_v9  ;;  %v4314_v27 = vsel %vm4252_vm7, %v4953_v9, 0.0 }
 0x3a7   : > { %v4240_v13 = vpop.f32.mrf.mxu1  ;;  %v4410_v18 = vadd.f32 %v4409_v45, %v4408_v12 }
 0x3a8   : > { %4587 = vst.msk [vmem:[%s6405_s5 + $0x7c] sm:$0xf] %vm4555_vm0, %v4896_v7  ;;  %v4310_v15 = vsel %vm4252_vm7, %v4240_v13, 0.0  ;;  %v4351_v16 = vmul.f32 %v4240_v13, %v4240_v13  ;;  %v4894_v17 = vpack.c.bf16 %v4240_v13, %v4240_v13  ;;  %v4415_v32 = vsel %vm4252_vm7, %v4353_v20, 0.0 }
 0x3a9   : > { %v4311_v19 = vadd.f32 %v4310_v15, %v4309_v11 }
 0x3aa   : > { %v4411_v21 = vsel %vm4252_vm7, %v4351_v16, 0.0  ;;  %4585 = vst.msk [vmem:[%s6405_s5 + $0x74] sm:$0xf] %vm4555_vm0, %v4894_v17 }
 0x3ab   : > { %v4313_v23 = vadd.f32 %v4312_v49, %v4311_v19  ;;  %v4412_v24 = vadd.f32 %v4411_v21, %v4410_v18 }
 0x3ad   : > { %v4315_v28 = vadd.f32 %v4314_v27, %v4313_v23  ;;  %v4414_v31 = vadd.f32 %v4413_v25, %v4412_v24 }
 0x3af   : > { %v4316_v33 = vrot.slane %v4315_v28, 4  ;;  %v4416_v36 = vadd.f32 %v4415_v32, %v4414_v31 }
 0x3b1   : > { %v4317_v37 = vadd.f32 %v4316_v33, %v4315_v28  ;;  %v4417_v39 = vrot.slane %v4416_v36, 4 }
 0x3b3   : > { %v4318_v40 = vrot.slane %v4317_v37, 2  ;;  %v4418_v41 = vadd.f32 %v4417_v39, %v4416_v36 }
 0x3b5   : > { %v4319_v42 = vadd.f32 %v4318_v40, %v4317_v37  ;;  %v4419_v43 = vrot.slane %v4418_v41, 2 }
 0x3b7   : > { %v4320_v44 = vrot.slane %v4319_v42, 1  ;;  %v4420_v35 = vadd.f32 %v4419_v43, %v4418_v41 }
 0x3b9   : > { %v4421_v46 = vrot.slane %v4420_v35, 1  ;;  %v4321_v47 = vadd.f32 %v4320_v44, %v4319_v42 }
 0x3bb   : > { %v4422_v5 = vadd.f32 %v4421_v46, %v4420_v35 }
 0x3bd   : > { %v4424_v48 = vsel %vm4423_vm8, %v4321_v47, %v4422_v5 }
 0x3be   : > { %4426 = vst.msk [vmem:[%s203_s7] sm:$0x3] %vm4425_vm9, %v4424_v48 }
 0x3bf   : > { %5058 = shalt.err (!%p5055_p5)
}
 0x3c0   : > { %s5059_s28 = scalar_lea.hbm %s6601_s11, 32  ;;  %s5063_s4 = scalar_lea.hbm %s6644_s3, 64 }
 0x3c1   : > { %p5060_p6 = scmp.ne.s32.totalorder %s6601_s11, %s5059_s28  ;;  %p5064_p10 = scmp.lt.s32.totalorder %s6601_s11, %s6644_s3 }
 0x3c2   : > { %p5065_p11 = scmp.lt.s32.totalorder %s5063_s4, %s5059_s28 }
 0x3c3   : > { %p5061_p7 = pnand %p5060_p6, %p5193_p4 }
 0x3c4   : > { %p5066_p12 = por %p5065_p11, %p5064_p10 }
 0x3c5   : > { %p5062_p9 = pneg %p5061_p7 }
 0x3c7   : > { %p5067_p13 = pnand %p5066_p12, %p5062_p9 }
 0x3c9   : > { %5070 = shalt.err (!%p5067_p13)
}
 0x3ca   : > { %4962 = dma.vmem_to_hbm [thread:$0]  (%p5193_p4), %s4615_s8, 32, %s6601_s11, %s4597_s18  }
 0x3cb PF: > { %p4968_p0 = scmp.ge.s32.totalorder %s5121_s17, 2  ;;  %s4637_s27 = sand.u32 1, %s5101_s12  }
 0x3cc   : > { %s4638_s6 = scalar_lea.sflag [#allocation5], %s4637_s27 }
 0x3cd   : > { %p4965_p1 = pnand %p4968_p0, %p5200_p8 }
 0x3cf   : > { %p4966_p2 = pneg %p4965_p1 }
 0x3d1   : > { %5096 = dma.done.wait (%p4966_p2), %s4638_s6, 32  }
 0x3d2   : > { %5098 = vsyncadd (%p4966_p2), %s4638_s6, 4294967264  ;;  %s17_s17 = sadd.s32 1, %s5121_s17   ;;  %s6657_s12 = smov %s5105_s13 }
 0x3d3   : > { %p14_p3 = scmp.ge.s32.totalorder %s17_s17, 4   ;;  %s6658_s13 = smov %s5109_s14 }
 0x3d4   : > { %s6659_s14 = smov %s5206_s25  ;;  %s6660_s15 = smov %s5117_s16 }
 0x3d5   : > { %s6661_s16 = smov %s6663_s20  ;;  %16 = sbr.rel (!%p14_p3) target bundleno = 4 (0x4), region = 84 }
 0x3da   :  { %4643 = vsyncpa [#allocation5], 1 }
 0x3db   :  { %4645 = vsyncpa [#allocation5 + $0x1], 1 }

</bundles_post_ra>
